<compile_context>
chip_gen: v5e
topology: v5e:2x2
jax: 0.10.0
libtpu: 0.0.40
codegen_flags: <defaults>
</compile_context>

<pallas_src>
import functools

import numpy as np

import jax
import jax.numpy as jnp
from jax import lax
from jax.experimental import pallas as pl
from jax.experimental.pallas import tpu as pltpu

EPS = 1e-5
_PREC = lax.Precision.HIGHEST   # see header note; only DEFAULT/HIGHEST lower on Mosaic


# ----------------------------- in-kernel helpers -----------------------------

def _conv3x3_one_dot(x, w_ref, masks_ref, mask_row0, im_ref, *, C, W, NHW, d):
    """Dilated 3x3 conv of a channels-major activation as ONE MXU dot.

    x:         (C, NHW) f32 value, spatial flattened as f = n*H*W + h*W + w.
    w_ref:     (Cout, 9*C) VMEM ref, columns ordered (kh, kw, ci).
    masks_ref: (27, NHW) f32 border masks; rows [mask_row0, mask_row0+9) belong
               to this stage's dilation.
    im_ref:    (>= 9*C, NHW) VMEM scratch receiving the im2col slab.
    Returns (Cout, NHW) f32.
    """
    for kh in range(3):
        for kw in range(3):
            t = kh * 3 + kw
            s = ((kh - 1) * W + (kw - 1)) * d          # want slab[:, f] = x[:, f + s]
            if s == 0:
                slab = x                               # centre tap: no shift, no mask
            else:
                # Lane-axis rotation (XLU) + border mask; any wrapped lanes are
                # always in the masked-out region, so the roll is exact.
                slab = pltpu.roll(x, shift=(-s) % NHW, axis=1)
                slab = slab * masks_ref[mask_row0 + t:mask_row0 + t + 1, :]
            im_ref[t * C:(t + 1) * C, :] = slab        # sublane-aligned, lane-dense
    return jnp.dot(w_ref[...], im_ref[:9 * C, :],
                   preferred_element_type=jnp.float32, precision=_PREC)


def _bn_train(y, gamma, beta, inv_count):
    """Training-mode BatchNorm over the lane (N*H*W) axis of a (C, NHW) slab.

    Two-pass (mean, then centered sum of squares): same op count as the
    E[x^2]-mean^2 form at this size, but immune to cancellation.  Biased
    variance, eps=1e-5, matching nn.BatchNorm2d in training mode.
    """
    mean = jnp.sum(y, axis=1, keepdims=True) * inv_count          # (C, 1)
    yc = y - mean
    var = jnp.sum(yc * yc, axis=1, keepdims=True) * inv_count     # (C, 1), biased
    return yc * (lax.rsqrt(var + EPS) * gamma) + beta


# --------------------------------- kernel ------------------------------------

def fused_block_kernel(x_ref, masks_ref,
                       w1_ref, b1_ref, g1_ref, be1_ref,
                       w2_ref, b2_ref, g2_ref, be2_ref,
                       w3_ref, b3_ref, g3_ref, be3_ref,
                       wid_ref, bid_ref,
                       out_ref, im_ref,
                       *, CinP, Cout, W, NHW):
    inv_n = 1.0 / NHW
    x = x_ref[...]                                    # (CinP, NHW), channels-major

    # ---- stage 1: conv(d=1) -> BN -> ReLU ----------------------------------
    y1 = _conv3x3_one_dot(x, w1_ref, masks_ref, 0, im_ref,
                          C=CinP, W=W, NHW=NHW, d=1) + b1_ref[...]
    h1 = jnp.maximum(_bn_train(y1, g1_ref[...], be1_ref[...], inv_n), 0.0)

    # ---- stage 2: conv(d=2) -> BN -> ReLU ----------------------------------
    y2 = _conv3x3_one_dot(h1, w2_ref, masks_ref, 9, im_ref,
                          C=Cout, W=W, NHW=NHW, d=2) + b2_ref[...]
    h2 = jnp.maximum(_bn_train(y2, g2_ref[...], be2_ref[...], inv_n), 0.0)

    # ---- stage 3: conv(d=5) -> BN ; + 1x1(identity) ; ReLU ------------------
    y3 = _conv3x3_one_dot(h2, w3_ref, masks_ref, 18, im_ref,
                          C=Cout, W=W, NHW=NHW, d=5) + b3_ref[...]
    z3 = _bn_train(y3, g3_ref[...], be3_ref[...], inv_n)

    idv = jnp.dot(wid_ref[...], x, preferred_element_type=jnp.float32,
                  precision=_PREC) + bid_ref[...]

    out_ref[...] = jnp.maximum(z3 + idv, 0.0)         # unmasked lane-dense store


# -------------------------------- wrapper ------------------------------------

_VMEM = pl.BlockSpec(memory_space=pltpu.MemorySpace.VMEM)


def _round_up(v, m):
    return ((v + m - 1) // m) * m


def _tap_masks(dilations, N, H, W):
    """(len(dilations)*9, N*H*W) f32 validity masks for every (dilation, tap)."""
    f = np.arange(N * H * W)
    h = (f // W) % H
    w = f % W
    rows = []
    for d in dilations:
        for kh in range(3):
            for kw in range(3):
                dh, dw = (kh - 1) * d, (kw - 1) * d
                ok = ((h + dh >= 0) & (h + dh < H) & (w + dw >= 0) & (w + dw < W))
                rows.append(ok.astype(np.float32))
    return jnp.asarray(np.stack(rows))


def residual_regular_block(x_nchw, params):
    """Full forward pass.  x_nchw: (N, Cin, H, W) f32 -> (N, Cout, H, W) f32."""
    p = params
    N, Cin, H, W = x_nchw.shape
    Cout = p["w1"].shape[-1]
    NHW = N * H * W
    CinP = _round_up(Cin, 8)             # pad input channels so im2col rows stay
                                         # sublane-aligned; padded rows are zero.

    # NCHW -> channels-major (C, N*H*W): only a leading-axis (N, C) swap, the
    # minor (H, W) dims are untouched, then a contiguous flatten.
    x2d = jnp.transpose(x_nchw, (1, 0, 2, 3)).reshape(Cin, NHW).astype(jnp.float32)
    if CinP != Cin:
        x2d = jnp.pad(x2d, ((0, CinP - Cin), (0, 0)))

    masks = _tap_masks((1, 2, 5), N, H, W)            # (27, NHW) f32

    def w_slab(w_hwio, cin, cinp):
        w = w_hwio.astype(jnp.float32)                # (3, 3, cin, Cout)
        if cinp != cin:
            w = jnp.pad(w, ((0, 0), (0, 0), (0, cinp - cin), (0, 0)))
        return w.reshape(9 * cinp, Cout).T            # (Cout, 9*cinp), cols (kh,kw,ci)

    def col(v):
        return v.reshape(-1, 1).astype(jnp.float32)   # (Cout, 1) per-channel column

    w1 = w_slab(p["w1"], Cin, CinP)
    w2 = w_slab(p["w2"], Cout, Cout)
    w3 = w_slab(p["w3"], Cout, Cout)
    wid = p["w1x1"].astype(jnp.float32)
    if CinP != Cin:
        wid = jnp.pad(wid, ((0, CinP - Cin), (0, 0)))
    wid = wid.T                                       # (Cout, CinP)

    kern = functools.partial(fused_block_kernel,
                             CinP=CinP, Cout=Cout, W=W, NHW=NHW)

    out2d = pl.pallas_call(
        kern,
        out_shape=jax.ShapeDtypeStruct((Cout, NHW), jnp.float32),
        in_specs=[_VMEM] * 16,
        out_specs=_VMEM,
        scratch_shapes=[
            pltpu.VMEM((9 * max(CinP, Cout), NHW), jnp.float32),   # im2col slab
        ],
    )(x2d, masks,
      w1, col(p["b1"]), col(p["g1"]), col(p["be1"]),
      w2, col(p["b2"]), col(p["g2"]), col(p["be2"]),
      w3, col(p["b3"]), col(p["g3"]), col(p["be3"]),
      wid, col(p["b1x1"]))

    # channels-major -> NCHW: again only a leading-axis swap.
    return jnp.transpose(out2d.reshape(Cout, N, H, W), (1, 0, 2, 3))


# ----------------------------- pure-JAX reference ----------------------------

def _ref_forward(x_nchw, p):
    x = jnp.transpose(x_nchw, (0, 2, 3, 1))

    def conv(a, w, b, d):
        y = lax.conv_general_dilated(
            a, w, window_strides=(1, 1), padding=((d, d), (d, d)),
            rhs_dilation=(d, d), dimension_numbers=("NHWC", "HWIO", "NHWC"),
            precision=lax.Precision.HIGHEST)
        return y + b.reshape(1, 1, 1, -1)

    def bn(y, g, be):
        mean = jnp.mean(y, axis=(0, 1, 2), keepdims=True)
        var = jnp.var(y, axis=(0, 1, 2), keepdims=True)   # biased, training mode
        return (y - mean) / jnp.sqrt(var + EPS) * g.reshape(1, 1, 1, -1) \
            + be.reshape(1, 1, 1, -1)

    h = jax.nn.relu(bn(conv(x, p["w1"], p["b1"], 1), p["g1"], p["be1"]))
    h = jax.nn.relu(bn(conv(h, p["w2"], p["b2"], 2), p["g2"], p["be2"]))
    h = bn(conv(h, p["w3"], p["b3"], 5), p["g3"], p["be3"])
    idn = lax.conv_general_dilated(
        x, p["w1x1"][None, None], window_strides=(1, 1), padding="VALID",
        dimension_numbers=("NHWC", "HWIO", "NHWC"),
        precision=lax.Precision.HIGHEST) + p["b1x1"].reshape(1, 1, 1, -1)
    out = jax.nn.relu(h + idn)
    return jnp.transpose(out, (0, 3, 1, 2))


# --------------------------------- main --------------------------------------

if __name__ == "__main__":
    N, Cin, Cout, H, W = 2, 4, 8, 16, 16
    key = jax.random.PRNGKey(0)
    ks = jax.random.split(key, 16)

    x = jax.random.normal(ks[0], (N, Cin, H, W), jnp.float32)

    params = {
        # conv weights stored HWIO: (3, 3, cin, cout)
        "w1": 0.1 * jax.random.normal(ks[1], (3, 3, Cin, Cout), jnp.float32),
        "b1": 0.1 * jax.random.normal(ks[2], (Cout,), jnp.float32),
        "w2": 0.1 * jax.random.normal(ks[3], (3, 3, Cout, Cout), jnp.float32),
        "b2": 0.1 * jax.random.normal(ks[4], (Cout,), jnp.float32),
        "w3": 0.1 * jax.random.normal(ks[5], (3, 3, Cout, Cout), jnp.float32),
        "b3": 0.1 * jax.random.normal(ks[6], (Cout,), jnp.float32),
        "w1x1": 0.1 * jax.random.normal(ks[7], (Cin, Cout), jnp.float32),
        "b1x1": 0.1 * jax.random.normal(ks[8], (Cout,), jnp.float32),
        # BatchNorm affine params (deterministic, non-trivial)
        "g1": 1.0 + 0.1 * jax.random.normal(ks[9], (Cout,), jnp.float32),
        "be1": 0.1 * jax.random.normal(ks[10], (Cout,), jnp.float32),
        "g2": 1.0 + 0.1 * jax.random.normal(ks[11], (Cout,), jnp.float32),
        "be2": 0.1 * jax.random.normal(ks[12], (Cout,), jnp.float32),
        "g3": 1.0 + 0.1 * jax.random.normal(ks[13], (Cout,), jnp.float32),
        "be3": 0.1 * jax.random.normal(ks[14], (Cout,), jnp.float32),
    }

    out = jax.jit(residual_regular_block)(x, params)
    out = jax.block_until_ready(out)

    ref = jax.block_until_ready(_ref_forward(x, params))
    assert out.shape == (N, Cout, H, W), out.shape
    assert jnp.allclose(out, ref, atol=2e-3, rtol=2e-3), float(
        jnp.max(jnp.abs(out - ref)))

    print("KERNEL_OK")
</pallas_src>

<mosaic_0001>
module attributes {stable_mosaic.version = 11 : i64} {
  func.func @fused_block_kernel(%arg0: memref<8x512xf32, #tpu.memory_space<vmem>>, %arg1: memref<27x512xf32, #tpu.memory_space<vmem>>, %arg2: memref<8x72xf32, #tpu.memory_space<vmem>>, %arg3: memref<8x1xf32, #tpu.memory_space<vmem>>, %arg4: memref<8x1xf32, #tpu.memory_space<vmem>>, %arg5: memref<8x1xf32, #tpu.memory_space<vmem>>, %arg6: memref<8x72xf32, #tpu.memory_space<vmem>>, %arg7: memref<8x1xf32, #tpu.memory_space<vmem>>, %arg8: memref<8x1xf32, #tpu.memory_space<vmem>>, %arg9: memref<8x1xf32, #tpu.memory_space<vmem>>, %arg10: memref<8x72xf32, #tpu.memory_space<vmem>>, %arg11: memref<8x1xf32, #tpu.memory_space<vmem>>, %arg12: memref<8x1xf32, #tpu.memory_space<vmem>>, %arg13: memref<8x1xf32, #tpu.memory_space<vmem>>, %arg14: memref<8x8xf32, #tpu.memory_space<vmem>>, %arg15: memref<8x1xf32, #tpu.memory_space<vmem>>, %arg16: memref<8x512xf32, #tpu.memory_space<vmem>>, %arg17: memref<72x512xf32, #tpu.memory_space<vmem>>) attributes {dimension_semantics = [], scalar_prefetch = 0 : i64, scratch_operands = 1 : i64, tpu.core_type = #tpu.core_type<tc>} {
    %c0 = arith.constant 0 : index
    %c0_0 = arith.constant 0 : index
    %0 = vector.load %arg0[%c0, %c0_0] : memref<8x512xf32, #tpu.memory_space<vmem>>, vector<8x512xf32>
    %c17_i32 = arith.constant 17 : i32
    %1 = tpu.dynamic_rotate %0 by %c17_i32 dim 1 : vector<8x512xf32>, i32 -> vector<8x512xf32>
    %c0_1 = arith.constant 0 : index
    %c0_2 = arith.constant 0 : index
    %2 = vector.load %arg1[%c0_1, %c0_2] : memref<27x512xf32, #tpu.memory_space<vmem>>, vector<1x512xf32>
    %3 = vector.broadcast %2 : vector<1x512xf32> to vector<8x512xf32>
    %4 = arith.mulf %1, %3 : vector<8x512xf32>
    %c0_3 = arith.constant 0 : index
    %c0_4 = arith.constant 0 : index
    %5 = vector.load %arg17[%c0_3, %c0_4] : memref<72x512xf32, #tpu.memory_space<vmem>>, vector<8x512xf32>
    tpu.vector_store %arg17[%c0_3, %c0_4], %4 {strides = array<i32>} : memref<72x512xf32, #tpu.memory_space<vmem>>, vector<8x512xf32>,
    %c16_i32 = arith.constant 16 : i32
    %6 = tpu.dynamic_rotate %0 by %c16_i32 dim 1 : vector<8x512xf32>, i32 -> vector<8x512xf32>
    %c1 = arith.constant 1 : index
    %c0_5 = arith.constant 0 : index
    %7 = vector.load %arg1[%c1, %c0_5] : memref<27x512xf32, #tpu.memory_space<vmem>>, vector<1x512xf32>
    %8 = vector.broadcast %7 : vector<1x512xf32> to vector<8x512xf32>
    %9 = arith.mulf %6, %8 : vector<8x512xf32>
    %c8 = arith.constant 8 : index
    %c0_6 = arith.constant 0 : index
    %10 = vector.load %arg17[%c8, %c0_6] : memref<72x512xf32, #tpu.memory_space<vmem>>, vector<8x512xf32>
    tpu.vector_store %arg17[%c8, %c0_6], %9 {strides = array<i32>} : memref<72x512xf32, #tpu.memory_space<vmem>>, vector<8x512xf32>,
    %c15_i32 = arith.constant 15 : i32
    %11 = tpu.dynamic_rotate %0 by %c15_i32 dim 1 : vector<8x512xf32>, i32 -> vector<8x512xf32>
    %c2 = arith.constant 2 : index
    %c0_7 = arith.constant 0 : index
    %12 = vector.load %arg1[%c2, %c0_7] : memref<27x512xf32, #tpu.memory_space<vmem>>, vector<1x512xf32>
    %13 = vector.broadcast %12 : vector<1x512xf32> to vector<8x512xf32>
    %14 = arith.mulf %11, %13 : vector<8x512xf32>
    %c16 = arith.constant 16 : index
    %c0_8 = arith.constant 0 : index
    %15 = vector.load %arg17[%c16, %c0_8] : memref<72x512xf32, #tpu.memory_space<vmem>>, vector<8x512xf32>
    tpu.vector_store %arg17[%c16, %c0_8], %14 {strides = array<i32>} : memref<72x512xf32, #tpu.memory_space<vmem>>, vector<8x512xf32>,
    %c1_i32 = arith.constant 1 : i32
    %16 = tpu.dynamic_rotate %0 by %c1_i32 dim 1 : vector<8x512xf32>, i32 -> vector<8x512xf32>
    %c3 = arith.constant 3 : index
    %c0_9 = arith.constant 0 : index
    %17 = vector.load %arg1[%c3, %c0_9] : memref<27x512xf32, #tpu.memory_space<vmem>>, vector<1x512xf32>
    %18 = vector.broadcast %17 : vector<1x512xf32> to vector<8x512xf32>
    %19 = arith.mulf %16, %18 : vector<8x512xf32>
    %c24 = arith.constant 24 : index
    %c0_10 = arith.constant 0 : index
    %20 = vector.load %arg17[%c24, %c0_10] : memref<72x512xf32, #tpu.memory_space<vmem>>, vector<8x512xf32>
    tpu.vector_store %arg17[%c24, %c0_10], %19 {strides = array<i32>} : memref<72x512xf32, #tpu.memory_space<vmem>>, vector<8x512xf32>,
    %c32 = arith.constant 32 : index
    %c0_11 = arith.constant 0 : index
    %21 = vector.load %arg17[%c32, %c0_11] : memref<72x512xf32, #tpu.memory_space<vmem>>, vector<8x512xf32>
    tpu.vector_store %arg17[%c32, %c0_11], %0 {strides = array<i32>} : memref<72x512xf32, #tpu.memory_space<vmem>>, vector<8x512xf32>,
    %c511_i32 = arith.constant 511 : i32
    %22 = tpu.dynamic_rotate %0 by %c511_i32 dim 1 : vector<8x512xf32>, i32 -> vector<8x512xf32>
    %c5 = arith.constant 5 : index
    %c0_12 = arith.constant 0 : index
    %23 = vector.load %arg1[%c5, %c0_12] : memref<27x512xf32, #tpu.memory_space<vmem>>, vector<1x512xf32>
    %24 = vector.broadcast %23 : vector<1x512xf32> to vector<8x512xf32>
    %25 = arith.mulf %22, %24 : vector<8x512xf32>
    %c40 = arith.constant 40 : index
    %c0_13 = arith.constant 0 : index
    %26 = vector.load %arg17[%c40, %c0_13] : memref<72x512xf32, #tpu.memory_space<vmem>>, vector<8x512xf32>
    tpu.vector_store %arg17[%c40, %c0_13], %25 {strides = array<i32>} : memref<72x512xf32, #tpu.memory_space<vmem>>, vector<8x512xf32>,
    %c497_i32 = arith.constant 497 : i32
    %27 = tpu.dynamic_rotate %0 by %c497_i32 dim 1 : vector<8x512xf32>, i32 -> vector<8x512xf32>
    %c6 = arith.constant 6 : index
    %c0_14 = arith.constant 0 : index
    %28 = vector.load %arg1[%c6, %c0_14] : memref<27x512xf32, #tpu.memory_space<vmem>>, vector<1x512xf32>
    %29 = vector.broadcast %28 : vector<1x512xf32> to vector<8x512xf32>
    %30 = arith.mulf %27, %29 : vector<8x512xf32>
    %c48 = arith.constant 48 : index
    %c0_15 = arith.constant 0 : index
    %31 = vector.load %arg17[%c48, %c0_15] : memref<72x512xf32, #tpu.memory_space<vmem>>, vector<8x512xf32>
    tpu.vector_store %arg17[%c48, %c0_15], %30 {strides = array<i32>} : memref<72x512xf32, #tpu.memory_space<vmem>>, vector<8x512xf32>,
    %c496_i32 = arith.constant 496 : i32
    %32 = tpu.dynamic_rotate %0 by %c496_i32 dim 1 : vector<8x512xf32>, i32 -> vector<8x512xf32>
    %c7 = arith.constant 7 : index
    %c0_16 = arith.constant 0 : index
    %33 = vector.load %arg1[%c7, %c0_16] : memref<27x512xf32, #tpu.memory_space<vmem>>, vector<1x512xf32>
    %34 = vector.broadcast %33 : vector<1x512xf32> to vector<8x512xf32>
    %35 = arith.mulf %32, %34 : vector<8x512xf32>
    %c56 = arith.constant 56 : index
    %c0_17 = arith.constant 0 : index
    %36 = vector.load %arg17[%c56, %c0_17] : memref<72x512xf32, #tpu.memory_space<vmem>>, vector<8x512xf32>
    tpu.vector_store %arg17[%c56, %c0_17], %35 {strides = array<i32>} : memref<72x512xf32, #tpu.memory_space<vmem>>, vector<8x512xf32>,
    %c495_i32 = arith.constant 495 : i32
    %37 = tpu.dynamic_rotate %0 by %c495_i32 dim 1 : vector<8x512xf32>, i32 -> vector<8x512xf32>
    %c8_18 = arith.constant 8 : index
    %c0_19 = arith.constant 0 : index
    %38 = vector.load %arg1[%c8_18, %c0_19] : memref<27x512xf32, #tpu.memory_space<vmem>>, vector<1x512xf32>
    %39 = vector.broadcast %38 : vector<1x512xf32> to vector<8x512xf32>
    %40 = arith.mulf %37, %39 : vector<8x512xf32>
    %c64 = arith.constant 64 : index
    %c0_20 = arith.constant 0 : index
    %41 = vector.load %arg17[%c64, %c0_20] : memref<72x512xf32, #tpu.memory_space<vmem>>, vector<8x512xf32>
    tpu.vector_store %arg17[%c64, %c0_20], %40 {strides = array<i32>} : memref<72x512xf32, #tpu.memory_space<vmem>>, vector<8x512xf32>,
    %c0_21 = arith.constant 0 : index
    %c0_22 = arith.constant 0 : index
    %42 = vector.load %arg2[%c0_21, %c0_22] : memref<8x72xf32, #tpu.memory_space<vmem>>, vector<8x72xf32>
    %c0_23 = arith.constant 0 : index
    %c0_24 = arith.constant 0 : index
    %43 = vector.load %arg17[%c0_23, %c0_24] : memref<72x512xf32, #tpu.memory_space<vmem>>, vector<72x512xf32>
    %cst = arith.constant dense<0.000000e+00> : vector<8x512xf32>
    %44 = tpu.matmul %42, %43, %cst {dimension_numbers = #tpu.dot_dimension_numbers<[1], [0], [0], [1], [0, 0, 1, 1], [], []>, precision = #tpu.contract_precision<fp32>} : vector<8x72xf32>, vector<72x512xf32>, vector<8x512xf32> -> vector<8x512xf32>
    %c0_25 = arith.constant 0 : index
    %c0_26 = arith.constant 0 : index
    %45 = vector.load %arg3[%c0_25, %c0_26] : memref<8x1xf32, #tpu.memory_space<vmem>>, vector<8x1xf32>
    %46 = vector.broadcast %45 : vector<8x1xf32> to vector<8x512xf32>
    %47 = arith.addf %44, %46 : vector<8x512xf32>
    %c0_27 = arith.constant 0 : index
    %c0_28 = arith.constant 0 : index
    %48 = vector.load %arg4[%c0_27, %c0_28] : memref<8x1xf32, #tpu.memory_space<vmem>>, vector<8x1xf32>
    %c0_29 = arith.constant 0 : index
    %c0_30 = arith.constant 0 : index
    %49 = vector.load %arg5[%c0_29, %c0_30] : memref<8x1xf32, #tpu.memory_space<vmem>>, vector<8x1xf32>
    %cst_31 = arith.constant dense<0.000000e+00> : vector<8xf32>
    %50 = vector.multi_reduction <add>, %47, %cst_31 [1] : vector<8x512xf32> to vector<8xf32>
    %51 = vector.shape_cast %50 : vector<8xf32> to vector<8x1xf32>
    %cst_32 = arith.constant 0.001953125 : f32
    %52 = vector.broadcast %cst_32 : f32 to vector<8x1xf32>
    %53 = arith.mulf %51, %52 : vector<8x1xf32>
    %54 = vector.broadcast %53 : vector<8x1xf32> to vector<8x512xf32>
    %55 = arith.subf %47, %54 : vector<8x512xf32>
    %56 = arith.mulf %55, %55 : vector<8x512xf32>
    %cst_33 = arith.constant dense<0.000000e+00> : vector<8xf32>
    %57 = vector.multi_reduction <add>, %56, %cst_33 [1] : vector<8x512xf32> to vector<8xf32>
    %58 = vector.shape_cast %57 : vector<8xf32> to vector<8x1xf32>
    %cst_34 = arith.constant 0.001953125 : f32
    %59 = vector.broadcast %cst_34 : f32 to vector<8x1xf32>
    %60 = arith.mulf %58, %59 : vector<8x1xf32>
    %cst_35 = arith.constant 9.99999974E-6 : f32
    %61 = vector.broadcast %cst_35 : f32 to vector<8x1xf32>
    %62 = arith.addf %60, %61 : vector<8x1xf32>
    %63 = math.rsqrt %62 : vector<8x1xf32>
    %64 = arith.mulf %63, %48 : vector<8x1xf32>
    %65 = vector.broadcast %64 : vector<8x1xf32> to vector<8x512xf32>
    %66 = arith.mulf %55, %65 : vector<8x512xf32>
    %67 = vector.broadcast %49 : vector<8x1xf32> to vector<8x512xf32>
    %68 = arith.addf %66, %67 : vector<8x512xf32>
    %cst_36 = arith.constant 0.000000e+00 : f32
    %69 = vector.broadcast %cst_36 : f32 to vector<8x512xf32>
    %70 = arith.maximumf %68, %69 : vector<8x512xf32>
    %c34_i32 = arith.constant 34 : i32
    %71 = tpu.dynamic_rotate %70 by %c34_i32 dim 1 : vector<8x512xf32>, i32 -> vector<8x512xf32>
    %c9 = arith.constant 9 : index
    %c0_37 = arith.constant 0 : index
    %72 = vector.load %arg1[%c9, %c0_37] : memref<27x512xf32, #tpu.memory_space<vmem>>, vector<1x512xf32>
    %73 = vector.broadcast %72 : vector<1x512xf32> to vector<8x512xf32>
    %74 = arith.mulf %71, %73 : vector<8x512xf32>
    %c0_38 = arith.constant 0 : index
    %c0_39 = arith.constant 0 : index
    %75 = vector.load %arg17[%c0_38, %c0_39] : memref<72x512xf32, #tpu.memory_space<vmem>>, vector<8x512xf32>
    tpu.vector_store %arg17[%c0_38, %c0_39], %74 {strides = array<i32>} : memref<72x512xf32, #tpu.memory_space<vmem>>, vector<8x512xf32>,
    %c32_i32 = arith.constant 32 : i32
    %76 = tpu.dynamic_rotate %70 by %c32_i32 dim 1 : vector<8x512xf32>, i32 -> vector<8x512xf32>
    %c10 = arith.constant 10 : index
    %c0_40 = arith.constant 0 : index
    %77 = vector.load %arg1[%c10, %c0_40] : memref<27x512xf32, #tpu.memory_space<vmem>>, vector<1x512xf32>
    %78 = vector.broadcast %77 : vector<1x512xf32> to vector<8x512xf32>
    %79 = arith.mulf %76, %78 : vector<8x512xf32>
    %c8_41 = arith.constant 8 : index
    %c0_42 = arith.constant 0 : index
    %80 = vector.load %arg17[%c8_41, %c0_42] : memref<72x512xf32, #tpu.memory_space<vmem>>, vector<8x512xf32>
    tpu.vector_store %arg17[%c8_41, %c0_42], %79 {strides = array<i32>} : memref<72x512xf32, #tpu.memory_space<vmem>>, vector<8x512xf32>,
    %c30_i32 = arith.constant 30 : i32
    %81 = tpu.dynamic_rotate %70 by %c30_i32 dim 1 : vector<8x512xf32>, i32 -> vector<8x512xf32>
    %c11 = arith.constant 11 : index
    %c0_43 = arith.constant 0 : index
    %82 = vector.load %arg1[%c11, %c0_43] : memref<27x512xf32, #tpu.memory_space<vmem>>, vector<1x512xf32>
    %83 = vector.broadcast %82 : vector<1x512xf32> to vector<8x512xf32>
    %84 = arith.mulf %81, %83 : vector<8x512xf32>
    %c16_44 = arith.constant 16 : index
    %c0_45 = arith.constant 0 : index
    %85 = vector.load %arg17[%c16_44, %c0_45] : memref<72x512xf32, #tpu.memory_space<vmem>>, vector<8x512xf32>
    tpu.vector_store %arg17[%c16_44, %c0_45], %84 {strides = array<i32>} : memref<72x512xf32, #tpu.memory_space<vmem>>, vector<8x512xf32>,
    %c2_i32 = arith.constant 2 : i32
    %86 = tpu.dynamic_rotate %70 by %c2_i32 dim 1 : vector<8x512xf32>, i32 -> vector<8x512xf32>
    %c12 = arith.constant 12 : index
    %c0_46 = arith.constant 0 : index
    %87 = vector.load %arg1[%c12, %c0_46] : memref<27x512xf32, #tpu.memory_space<vmem>>, vector<1x512xf32>
    %88 = vector.broadcast %87 : vector<1x512xf32> to vector<8x512xf32>
    %89 = arith.mulf %86, %88 : vector<8x512xf32>
    %c24_47 = arith.constant 24 : index
    %c0_48 = arith.constant 0 : index
    %90 = vector.load %arg17[%c24_47, %c0_48] : memref<72x512xf32, #tpu.memory_space<vmem>>, vector<8x512xf32>
    tpu.vector_store %arg17[%c24_47, %c0_48], %89 {strides = array<i32>} : memref<72x512xf32, #tpu.memory_space<vmem>>, vector<8x512xf32>,
    %c32_49 = arith.constant 32 : index
    %c0_50 = arith.constant 0 : index
    %91 = vector.load %arg17[%c32_49, %c0_50] : memref<72x512xf32, #tpu.memory_space<vmem>>, vector<8x512xf32>
    tpu.vector_store %arg17[%c32_49, %c0_50], %70 {strides = array<i32>} : memref<72x512xf32, #tpu.memory_space<vmem>>, vector<8x512xf32>,
    %c510_i32 = arith.constant 510 : i32
    %92 = tpu.dynamic_rotate %70 by %c510_i32 dim 1 : vector<8x512xf32>, i32 -> vector<8x512xf32>
    %c14 = arith.constant 14 : index
    %c0_51 = arith.constant 0 : index
    %93 = vector.load %arg1[%c14, %c0_51] : memref<27x512xf32, #tpu.memory_space<vmem>>, vector<1x512xf32>
    %94 = vector.broadcast %93 : vector<1x512xf32> to vector<8x512xf32>
    %95 = arith.mulf %92, %94 : vector<8x512xf32>
    %c40_52 = arith.constant 40 : index
    %c0_53 = arith.constant 0 : index
    %96 = vector.load %arg17[%c40_52, %c0_53] : memref<72x512xf32, #tpu.memory_space<vmem>>, vector<8x512xf32>
    tpu.vector_store %arg17[%c40_52, %c0_53], %95 {strides = array<i32>} : memref<72x512xf32, #tpu.memory_space<vmem>>, vector<8x512xf32>,
    %c482_i32 = arith.constant 482 : i32
    %97 = tpu.dynamic_rotate %70 by %c482_i32 dim 1 : vector<8x512xf32>, i32 -> vector<8x512xf32>
    %c15 = arith.constant 15 : index
    %c0_54 = arith.constant 0 : index
    %98 = vector.load %arg1[%c15, %c0_54] : memref<27x512xf32, #tpu.memory_space<vmem>>, vector<1x512xf32>
    %99 = vector.broadcast %98 : vector<1x512xf32> to vector<8x512xf32>
    %100 = arith.mulf %97, %99 : vector<8x512xf32>
    %c48_55 = arith.constant 48 : index
    %c0_56 = arith.constant 0 : index
    %101 = vector.load %arg17[%c48_55, %c0_56] : memref<72x512xf32, #tpu.memory_space<vmem>>, vector<8x512xf32>
    tpu.vector_store %arg17[%c48_55, %c0_56], %100 {strides = array<i32>} : memref<72x512xf32, #tpu.memory_space<vmem>>, vector<8x512xf32>,
    %c480_i32 = arith.constant 480 : i32
    %102 = tpu.dynamic_rotate %70 by %c480_i32 dim 1 : vector<8x512xf32>, i32 -> vector<8x512xf32>
    %c16_57 = arith.constant 16 : index
    %c0_58 = arith.constant 0 : index
    %103 = vector.load %arg1[%c16_57, %c0_58] : memref<27x512xf32, #tpu.memory_space<vmem>>, vector<1x512xf32>
    %104 = vector.broadcast %103 : vector<1x512xf32> to vector<8x512xf32>
    %105 = arith.mulf %102, %104 : vector<8x512xf32>
    %c56_59 = arith.constant 56 : index
    %c0_60 = arith.constant 0 : index
    %106 = vector.load %arg17[%c56_59, %c0_60] : memref<72x512xf32, #tpu.memory_space<vmem>>, vector<8x512xf32>
    tpu.vector_store %arg17[%c56_59, %c0_60], %105 {strides = array<i32>} : memref<72x512xf32, #tpu.memory_space<vmem>>, vector<8x512xf32>,
    %c478_i32 = arith.constant 478 : i32
    %107 = tpu.dynamic_rotate %70 by %c478_i32 dim 1 : vector<8x512xf32>, i32 -> vector<8x512xf32>
    %c17 = arith.constant 17 : index
    %c0_61 = arith.constant 0 : index
    %108 = vector.load %arg1[%c17, %c0_61] : memref<27x512xf32, #tpu.memory_space<vmem>>, vector<1x512xf32>
    %109 = vector.broadcast %108 : vector<1x512xf32> to vector<8x512xf32>
    %110 = arith.mulf %107, %109 : vector<8x512xf32>
    %c64_62 = arith.constant 64 : index
    %c0_63 = arith.constant 0 : index
    %111 = vector.load %arg17[%c64_62, %c0_63] : memref<72x512xf32, #tpu.memory_space<vmem>>, vector<8x512xf32>
    tpu.vector_store %arg17[%c64_62, %c0_63], %110 {strides = array<i32>} : memref<72x512xf32, #tpu.memory_space<vmem>>, vector<8x512xf32>,
    %c0_64 = arith.constant 0 : index
    %c0_65 = arith.constant 0 : index
    %112 = vector.load %arg6[%c0_64, %c0_65] : memref<8x72xf32, #tpu.memory_space<vmem>>, vector<8x72xf32>
    %c0_66 = arith.constant 0 : index
    %c0_67 = arith.constant 0 : index
    %113 = vector.load %arg17[%c0_66, %c0_67] : memref<72x512xf32, #tpu.memory_space<vmem>>, vector<72x512xf32>
    %cst_68 = arith.constant dense<0.000000e+00> : vector<8x512xf32>
    %114 = tpu.matmul %112, %113, %cst_68 {dimension_numbers = #tpu.dot_dimension_numbers<[1], [0], [0], [1], [0, 0, 1, 1], [], []>, precision = #tpu.contract_precision<fp32>} : vector<8x72xf32>, vector<72x512xf32>, vector<8x512xf32> -> vector<8x512xf32>
    %c0_69 = arith.constant 0 : index
    %c0_70 = arith.constant 0 : index
    %115 = vector.load %arg7[%c0_69, %c0_70] : memref<8x1xf32, #tpu.memory_space<vmem>>, vector<8x1xf32>
    %116 = vector.broadcast %115 : vector<8x1xf32> to vector<8x512xf32>
    %117 = arith.addf %114, %116 : vector<8x512xf32>
    %c0_71 = arith.constant 0 : index
    %c0_72 = arith.constant 0 : index
    %118 = vector.load %arg8[%c0_71, %c0_72] : memref<8x1xf32, #tpu.memory_space<vmem>>, vector<8x1xf32>
    %c0_73 = arith.constant 0 : index
    %c0_74 = arith.constant 0 : index
    %119 = vector.load %arg9[%c0_73, %c0_74] : memref<8x1xf32, #tpu.memory_space<vmem>>, vector<8x1xf32>
    %cst_75 = arith.constant dense<0.000000e+00> : vector<8xf32>
    %120 = vector.multi_reduction <add>, %117, %cst_75 [1] : vector<8x512xf32> to vector<8xf32>
    %121 = vector.shape_cast %120 : vector<8xf32> to vector<8x1xf32>
    %cst_76 = arith.constant 0.001953125 : f32
    %122 = vector.broadcast %cst_76 : f32 to vector<8x1xf32>
    %123 = arith.mulf %121, %122 : vector<8x1xf32>
    %124 = vector.broadcast %123 : vector<8x1xf32> to vector<8x512xf32>
    %125 = arith.subf %117, %124 : vector<8x512xf32>
    %126 = arith.mulf %125, %125 : vector<8x512xf32>
    %cst_77 = arith.constant dense<0.000000e+00> : vector<8xf32>
    %127 = vector.multi_reduction <add>, %126, %cst_77 [1] : vector<8x512xf32> to vector<8xf32>
    %128 = vector.shape_cast %127 : vector<8xf32> to vector<8x1xf32>
    %cst_78 = arith.constant 0.001953125 : f32
    %129 = vector.broadcast %cst_78 : f32 to vector<8x1xf32>
    %130 = arith.mulf %128, %129 : vector<8x1xf32>
    %cst_79 = arith.constant 9.99999974E-6 : f32
    %131 = vector.broadcast %cst_79 : f32 to vector<8x1xf32>
    %132 = arith.addf %130, %131 : vector<8x1xf32>
    %133 = math.rsqrt %132 : vector<8x1xf32>
    %134 = arith.mulf %133, %118 : vector<8x1xf32>
    %135 = vector.broadcast %134 : vector<8x1xf32> to vector<8x512xf32>
    %136 = arith.mulf %125, %135 : vector<8x512xf32>
    %137 = vector.broadcast %119 : vector<8x1xf32> to vector<8x512xf32>
    %138 = arith.addf %136, %137 : vector<8x512xf32>
    %cst_80 = arith.constant 0.000000e+00 : f32
    %139 = vector.broadcast %cst_80 : f32 to vector<8x512xf32>
    %140 = arith.maximumf %138, %139 : vector<8x512xf32>
    %c85_i32 = arith.constant 85 : i32
    %141 = tpu.dynamic_rotate %140 by %c85_i32 dim 1 : vector<8x512xf32>, i32 -> vector<8x512xf32>
    %c18 = arith.constant 18 : index
    %c0_81 = arith.constant 0 : index
    %142 = vector.load %arg1[%c18, %c0_81] : memref<27x512xf32, #tpu.memory_space<vmem>>, vector<1x512xf32>
    %143 = vector.broadcast %142 : vector<1x512xf32> to vector<8x512xf32>
    %144 = arith.mulf %141, %143 : vector<8x512xf32>
    %c0_82 = arith.constant 0 : index
    %c0_83 = arith.constant 0 : index
    %145 = vector.load %arg17[%c0_82, %c0_83] : memref<72x512xf32, #tpu.memory_space<vmem>>, vector<8x512xf32>
    tpu.vector_store %arg17[%c0_82, %c0_83], %144 {strides = array<i32>} : memref<72x512xf32, #tpu.memory_space<vmem>>, vector<8x512xf32>,
    %c80_i32 = arith.constant 80 : i32
    %146 = tpu.dynamic_rotate %140 by %c80_i32 dim 1 : vector<8x512xf32>, i32 -> vector<8x512xf32>
    %c19 = arith.constant 19 : index
    %c0_84 = arith.constant 0 : index
    %147 = vector.load %arg1[%c19, %c0_84] : memref<27x512xf32, #tpu.memory_space<vmem>>, vector<1x512xf32>
    %148 = vector.broadcast %147 : vector<1x512xf32> to vector<8x512xf32>
    %149 = arith.mulf %146, %148 : vector<8x512xf32>
    %c8_85 = arith.constant 8 : index
    %c0_86 = arith.constant 0 : index
    %150 = vector.load %arg17[%c8_85, %c0_86] : memref<72x512xf32, #tpu.memory_space<vmem>>, vector<8x512xf32>
    tpu.vector_store %arg17[%c8_85, %c0_86], %149 {strides = array<i32>} : memref<72x512xf32, #tpu.memory_space<vmem>>, vector<8x512xf32>,
    %c75_i32 = arith.constant 75 : i32
    %151 = tpu.dynamic_rotate %140 by %c75_i32 dim 1 : vector<8x512xf32>, i32 -> vector<8x512xf32>
    %c20 = arith.constant 20 : index
    %c0_87 = arith.constant 0 : index
    %152 = vector.load %arg1[%c20, %c0_87] : memref<27x512xf32, #tpu.memory_space<vmem>>, vector<1x512xf32>
    %153 = vector.broadcast %152 : vector<1x512xf32> to vector<8x512xf32>
    %154 = arith.mulf %151, %153 : vector<8x512xf32>
    %c16_88 = arith.constant 16 : index
    %c0_89 = arith.constant 0 : index
    %155 = vector.load %arg17[%c16_88, %c0_89] : memref<72x512xf32, #tpu.memory_space<vmem>>, vector<8x512xf32>
    tpu.vector_store %arg17[%c16_88, %c0_89], %154 {strides = array<i32>} : memref<72x512xf32, #tpu.memory_space<vmem>>, vector<8x512xf32>,
    %c5_i32 = arith.constant 5 : i32
    %156 = tpu.dynamic_rotate %140 by %c5_i32 dim 1 : vector<8x512xf32>, i32 -> vector<8x512xf32>
    %c21 = arith.constant 21 : index
    %c0_90 = arith.constant 0 : index
    %157 = vector.load %arg1[%c21, %c0_90] : memref<27x512xf32, #tpu.memory_space<vmem>>, vector<1x512xf32>
    %158 = vector.broadcast %157 : vector<1x512xf32> to vector<8x512xf32>
    %159 = arith.mulf %156, %158 : vector<8x512xf32>
    %c24_91 = arith.constant 24 : index
    %c0_92 = arith.constant 0 : index
    %160 = vector.load %arg17[%c24_91, %c0_92] : memref<72x512xf32, #tpu.memory_space<vmem>>, vector<8x512xf32>
    tpu.vector_store %arg17[%c24_91, %c0_92], %159 {strides = array<i32>} : memref<72x512xf32, #tpu.memory_space<vmem>>, vector<8x512xf32>,
    %c32_93 = arith.constant 32 : index
    %c0_94 = arith.constant 0 : index
    %161 = vector.load %arg17[%c32_93, %c0_94] : memref<72x512xf32, #tpu.memory_space<vmem>>, vector<8x512xf32>
    tpu.vector_store %arg17[%c32_93, %c0_94], %140 {strides = array<i32>} : memref<72x512xf32, #tpu.memory_space<vmem>>, vector<8x512xf32>,
    %c507_i32 = arith.constant 507 : i32
    %162 = tpu.dynamic_rotate %140 by %c507_i32 dim 1 : vector<8x512xf32>, i32 -> vector<8x512xf32>
    %c23 = arith.constant 23 : index
    %c0_95 = arith.constant 0 : index
    %163 = vector.load %arg1[%c23, %c0_95] : memref<27x512xf32, #tpu.memory_space<vmem>>, vector<1x512xf32>
    %164 = vector.broadcast %163 : vector<1x512xf32> to vector<8x512xf32>
    %165 = arith.mulf %162, %164 : vector<8x512xf32>
    %c40_96 = arith.constant 40 : index
    %c0_97 = arith.constant 0 : index
    %166 = vector.load %arg17[%c40_96, %c0_97] : memref<72x512xf32, #tpu.memory_space<vmem>>, vector<8x512xf32>
    tpu.vector_store %arg17[%c40_96, %c0_97], %165 {strides = array<i32>} : memref<72x512xf32, #tpu.memory_space<vmem>>, vector<8x512xf32>,
    %c437_i32 = arith.constant 437 : i32
    %167 = tpu.dynamic_rotate %140 by %c437_i32 dim 1 : vector<8x512xf32>, i32 -> vector<8x512xf32>
    %c24_98 = arith.constant 24 : index
    %c0_99 = arith.constant 0 : index
    %168 = vector.load %arg1[%c24_98, %c0_99] : memref<27x512xf32, #tpu.memory_space<vmem>>, vector<1x512xf32>
    %169 = vector.broadcast %168 : vector<1x512xf32> to vector<8x512xf32>
    %170 = arith.mulf %167, %169 : vector<8x512xf32>
    %c48_100 = arith.constant 48 : index
    %c0_101 = arith.constant 0 : index
    %171 = vector.load %arg17[%c48_100, %c0_101] : memref<72x512xf32, #tpu.memory_space<vmem>>, vector<8x512xf32>
    tpu.vector_store %arg17[%c48_100, %c0_101], %170 {strides = array<i32>} : memref<72x512xf32, #tpu.memory_space<vmem>>, vector<8x512xf32>,
    %c432_i32 = arith.constant 432 : i32
    %172 = tpu.dynamic_rotate %140 by %c432_i32 dim 1 : vector<8x512xf32>, i32 -> vector<8x512xf32>
    %c25 = arith.constant 25 : index
    %c0_102 = arith.constant 0 : index
    %173 = vector.load %arg1[%c25, %c0_102] : memref<27x512xf32, #tpu.memory_space<vmem>>, vector<1x512xf32>
    %174 = vector.broadcast %173 : vector<1x512xf32> to vector<8x512xf32>
    %175 = arith.mulf %172, %174 : vector<8x512xf32>
    %c56_103 = arith.constant 56 : index
    %c0_104 = arith.constant 0 : index
    %176 = vector.load %arg17[%c56_103, %c0_104] : memref<72x512xf32, #tpu.memory_space<vmem>>, vector<8x512xf32>
    tpu.vector_store %arg17[%c56_103, %c0_104], %175 {strides = array<i32>} : memref<72x512xf32, #tpu.memory_space<vmem>>, vector<8x512xf32>,
    %c427_i32 = arith.constant 427 : i32
    %177 = tpu.dynamic_rotate %140 by %c427_i32 dim 1 : vector<8x512xf32>, i32 -> vector<8x512xf32>
    %c26 = arith.constant 26 : index
    %c0_105 = arith.constant 0 : index
    %178 = vector.load %arg1[%c26, %c0_105] : memref<27x512xf32, #tpu.memory_space<vmem>>, vector<1x512xf32>
    %179 = vector.broadcast %178 : vector<1x512xf32> to vector<8x512xf32>
    %180 = arith.mulf %177, %179 : vector<8x512xf32>
    %c64_106 = arith.constant 64 : index
    %c0_107 = arith.constant 0 : index
    %181 = vector.load %arg17[%c64_106, %c0_107] : memref<72x512xf32, #tpu.memory_space<vmem>>, vector<8x512xf32>
    tpu.vector_store %arg17[%c64_106, %c0_107], %180 {strides = array<i32>} : memref<72x512xf32, #tpu.memory_space<vmem>>, vector<8x512xf32>,
    %c0_108 = arith.constant 0 : index
    %c0_109 = arith.constant 0 : index
    %182 = vector.load %arg10[%c0_108, %c0_109] : memref<8x72xf32, #tpu.memory_space<vmem>>, vector<8x72xf32>
    %c0_110 = arith.constant 0 : index
    %c0_111 = arith.constant 0 : index
    %183 = vector.load %arg17[%c0_110, %c0_111] : memref<72x512xf32, #tpu.memory_space<vmem>>, vector<72x512xf32>
    %cst_112 = arith.constant dense<0.000000e+00> : vector<8x512xf32>
    %184 = tpu.matmul %182, %183, %cst_112 {dimension_numbers = #tpu.dot_dimension_numbers<[1], [0], [0], [1], [0, 0, 1, 1], [], []>, precision = #tpu.contract_precision<fp32>} : vector<8x72xf32>, vector<72x512xf32>, vector<8x512xf32> -> vector<8x512xf32>
    %c0_113 = arith.constant 0 : index
    %c0_114 = arith.constant 0 : index
    %185 = vector.load %arg11[%c0_113, %c0_114] : memref<8x1xf32, #tpu.memory_space<vmem>>, vector<8x1xf32>
    %186 = vector.broadcast %185 : vector<8x1xf32> to vector<8x512xf32>
    %187 = arith.addf %184, %186 : vector<8x512xf32>
    %c0_115 = arith.constant 0 : index
    %c0_116 = arith.constant 0 : index
    %188 = vector.load %arg12[%c0_115, %c0_116] : memref<8x1xf32, #tpu.memory_space<vmem>>, vector<8x1xf32>
    %c0_117 = arith.constant 0 : index
    %c0_118 = arith.constant 0 : index
    %189 = vector.load %arg13[%c0_117, %c0_118] : memref<8x1xf32, #tpu.memory_space<vmem>>, vector<8x1xf32>
    %cst_119 = arith.constant dense<0.000000e+00> : vector<8xf32>
    %190 = vector.multi_reduction <add>, %187, %cst_119 [1] : vector<8x512xf32> to vector<8xf32>
    %191 = vector.shape_cast %190 : vector<8xf32> to vector<8x1xf32>
    %cst_120 = arith.constant 0.001953125 : f32
    %192 = vector.broadcast %cst_120 : f32 to vector<8x1xf32>
    %193 = arith.mulf %191, %192 : vector<8x1xf32>
    %194 = vector.broadcast %193 : vector<8x1xf32> to vector<8x512xf32>
    %195 = arith.subf %187, %194 : vector<8x512xf32>
    %196 = arith.mulf %195, %195 : vector<8x512xf32>
    %cst_121 = arith.constant dense<0.000000e+00> : vector<8xf32>
    %197 = vector.multi_reduction <add>, %196, %cst_121 [1] : vector<8x512xf32> to vector<8xf32>
    %198 = vector.shape_cast %197 : vector<8xf32> to vector<8x1xf32>
    %cst_122 = arith.constant 0.001953125 : f32
    %199 = vector.broadcast %cst_122 : f32 to vector<8x1xf32>
    %200 = arith.mulf %198, %199 : vector<8x1xf32>
    %cst_123 = arith.constant 9.99999974E-6 : f32
    %201 = vector.broadcast %cst_123 : f32 to vector<8x1xf32>
    %202 = arith.addf %200, %201 : vector<8x1xf32>
    %203 = math.rsqrt %202 : vector<8x1xf32>
    %204 = arith.mulf %203, %188 : vector<8x1xf32>
    %205 = vector.broadcast %204 : vector<8x1xf32> to vector<8x512xf32>
    %206 = arith.mulf %195, %205 : vector<8x512xf32>
    %207 = vector.broadcast %189 : vector<8x1xf32> to vector<8x512xf32>
    %208 = arith.addf %206, %207 : vector<8x512xf32>
    %c0_124 = arith.constant 0 : index
    %c0_125 = arith.constant 0 : index
    %209 = vector.load %arg14[%c0_124, %c0_125] : memref<8x8xf32, #tpu.memory_space<vmem>>, vector<8x8xf32>
    %cst_126 = arith.constant dense<0.000000e+00> : vector<8x512xf32>
    %210 = tpu.matmul %209, %0, %cst_126 {dimension_numbers = #tpu.dot_dimension_numbers<[1], [0], [0], [1], [0, 0, 1, 1], [], []>, precision = #tpu.contract_precision<fp32>} : vector<8x8xf32>, vector<8x512xf32>, vector<8x512xf32> -> vector<8x512xf32>
    %c0_127 = arith.constant 0 : index
    %c0_128 = arith.constant 0 : index
    %211 = vector.load %arg15[%c0_127, %c0_128] : memref<8x1xf32, #tpu.memory_space<vmem>>, vector<8x1xf32>
    %212 = vector.broadcast %211 : vector<8x1xf32> to vector<8x512xf32>
    %213 = arith.addf %210, %212 : vector<8x512xf32>
    %214 = arith.addf %208, %213 : vector<8x512xf32>
    %cst_129 = arith.constant 0.000000e+00 : f32
    %215 = vector.broadcast %cst_129 : f32 to vector<8x512xf32>
    %216 = arith.maximumf %214, %215 : vector<8x512xf32>
    %c0_130 = arith.constant 0 : index
    %c0_131 = arith.constant 0 : index
    %217 = vector.load %arg16[%c0_130, %c0_131] : memref<8x512xf32, #tpu.memory_space<vmem>>, vector<8x512xf32>
    tpu.vector_store %arg16[%c0_130, %c0_131], %216 {strides = array<i32>} : memref<8x512xf32, #tpu.memory_space<vmem>>, vector<8x512xf32>,
    return
  }
}

</mosaic_0001>

<bundles_post_ra>
// kernel: residual_regular_block.1
= control target key start
LH: loop header
LB: loop body
LE: loop exit
PB: predicated region body
PF: predicated region fallthrough
CT: control target
= control target key end

     0   :  { %s4808_s24 = smov 113   ;;  %s4809_s25 = smov 112   ;;  %v65_v6 = vlaneseq  ;;  %vm361_vm6 = vcmask 588800   ;;  %s7849_s0 = inlined_call_operand.vmem [shape: f32[8,512], index: 0, kind: input, shape index: {}]   ;;  %s7850_s1 = inlined_call_operand.vmem [shape: f32[27,512], index: 1, kind: input, shape index: {}]   ;;  %s7851_s2 = inlined_call_operand.vmem [shape: f32[8,72], index: 2, kind: input, shape index: {}]   ;;  %s7852_s3 = inlined_call_operand.vmem [shape: f32[8,1], index: 3, kind: input, shape index: {}]   ;;  %s7853_s5 = inlined_call_operand.vmem [shape: f32[8,1], index: 5, kind: input, shape index: {}]   ;;  %s7854_s4 = inlined_call_operand.vmem [shape: f32[8,1], index: 4, kind: input, shape index: {}]   ;;  %s7855_s6 = inlined_call_operand.vmem [shape: f32[8,72], index: 6, kind: input, shape index: {}]   ;;  %s7856_s7 = inlined_call_operand.vmem [shape: f32[8,1], index: 7, kind: input, shape index: {}]   ;;  %s7857_s9 = inlined_call_operand.vmem [shape: f32[8,1], index: 9, kind: input, shape index: {}]   ;;  %s7858_s8 = inlined_call_operand.vmem [shape: f32[8,1], index: 8, kind: input, shape index: {}]   ;;  %s7859_s11 = inlined_call_operand.vmem [shape: f32[8,1], index: 11, kind: input, shape index: {}]   ;;  %s7860_s15 = inlined_call_operand.vmem [shape: f32[8,1], index: 15, kind: input, shape index: {}]   ;;  %s7861_s10 = inlined_call_operand.vmem [shape: f32[8,72], index: 10, kind: input, shape index: {}]   ;;  %s7862_s14 = inlined_call_operand.vmem [shape: f32[8,8], index: 14, kind: input, shape index: {}]   ;;  %s7863_s12 = inlined_call_operand.vmem [shape: f32[8,1], index: 12, kind: input, shape index: {}]   ;;  %s7864_s13 = inlined_call_operand.vmem [shape: f32[8,1], index: 13, kind: input, shape index: {}]   ;;  %s7865_s16 = inlined_call_operand.vmem [shape: f32[8,512], index: 16, kind: output, shape index: {}]  }
   0x1   :  { %7963 = sst [smem:[#allocation32_spill]] %s7849_s0  ;;  %s4810_s26 = smov 111   ;;  %v4993_v9 = vld [vmem:[%s7850_s1 + $0x6] ss:$8 sm:$0xf] }
   0x2   :  { %s7964_s23 = sld [smem:[#allocation32_spill]]  ;;  %s4811_s0 = smov 127   ;;  %v4988_v8 = vand.u32 127, %v65_v6  ;;  %v238_v12 = vperm.slane %v4993_v9, 0 }
   0x3   :  { %s4812_s19 = smov 1   ;;  %s4813_s20 = smov 15   ;;  %v5010_v15 = vld [vmem:[%s7850_s1 + $0x7] ss:$8 sm:$0xf] }
   0x4   :  { %s4814_s21 = smov 16   ;;  %s4815_s22 = smov 17   ;;  %vm230_vm0 = vcmp.lt.s32.totalorder %v4988_v8, 113  ;;  %v5015_v16 = vld [vmem:[%s7850_s1 + $0x20] ss:$8 sm:$0xf] }
   0x5   :  { %vm262_vm1 = vcmp.lt.s32.totalorder %v4988_v8, 112  ;;  %v270_v18 = vperm.slane %v5010_v15, 0  ;;  %vm294_vm2 = vcmp.lt.s32.totalorder %v4988_v8, 111  ;;  %v302_v19 = vperm.slane %v5015_v16, 0  ;;  %s4817_s29 = smov 98   ;;  %s4819_s30 = smov 2  }
   0x6   :  { %v5042_v29 = vld [vmem:[%s7850_s1 + $0x5] ss:$8 sm:$0xf]  ;;  %vm198_vm3 = vcmp.lt.s32.totalorder %v4988_v8, 127  ;;  %vm162_vm4 = vcmp.lt.s32.totalorder %v4988_v8, 1  ;;  %v303_v63 = vperm.slane %v5015_v16, 1 }
   0x7   :  { %v206_v35 = vperm.slane %v5042_v29, 0  ;;  %v5090_v46 = vld [vmem:[%s7850_s1 + $0x3] ss:$8 sm:$0xf]  ;;  %vm130_vm5 = vcmp.lt.s32.totalorder %v4988_v8, 15  ;;  %vm98_vm7 = vcmp.lt.s32.totalorder %v4988_v8, 16 }
   0x8   :  { %v4921_v0 = vld [vmem:[%s7964_s23] sm:$0xff]  ;;  %v4932_v1 = vld [vmem:[%s7964_s23 + $0x8] sm:$0xff]  ;;  %v4943_v2 = vld [vmem:[%s7964_s23 + $0x10] sm:$0xff]  ;;  %v170_v52 = vperm.slane %v5090_v46, 0  ;;  %vm67_vm8 = vcmp.lt.s32.totalorder %v4988_v8, 17  ;;  %s4821_s17 = smov 96  }
   0x9   :  { %222 = vrot.lane.b32.xlu2 %v4921_v0, %s4808_s24  ;;  %254 = vrot.lane.b32.xlu1 %v4921_v0, %s4809_s25  ;;  %7965 = vst [vmem:[#allocation3_spill] sm:$0xff] %v4943_v2  ;;  %v4952_v3 = vld [vmem:[%s7964_s23 + $0x18] sm:$0xff]  ;;  %v5050_v32 = vand.u32 4294901760, %v4921_v0  ;;  %s4822_s18 = smov 32   ;;  %vm1657_vm12 = vcmp.lt.s32.totalorder %v4988_v8, 94  ;;  %vm1593_vm13 = vcmp.lt.s32.totalorder %v4988_v8, 98 }
   0xa   :  { %286 = vrot.lane.b32.xlu0 %v4921_v0, %s4810_s26  ;;  %7966 = vst [vmem:[#allocation4_spill] sm:$0xff] %v4952_v3  ;;  %v5136_v6 = vld [vmem:[%s7850_s1 + $0x2] ss:$8 sm:$0xf]  ;;  %vm1625_vm14 = vcmp.lt.s32.totalorder %v4988_v8, 96  ;;  %vm1525_vm15 = vcmp.lt.s32.totalorder %v4988_v8, 2 }
   0xb   :  { %7967 = vst [vmem:[#allocation5_spill] sm:$0xff] %v5050_v32  ;;  %v5075_v42 = vsub.f32 %v4921_v0, %v5050_v32  ;;  %s4827_s23 = smov 123   ;;  %s4832_s27 = smov 80  }
   0xd   :  { %7969 = vst [vmem:[#allocation7_spill] sm:$0xff] %v5075_v42  ;;  %v5103_v51 = vand.u32 4294901760, %v5075_v42 }
   0xf   :  { %7970 = vst [vmem:[#allocation8_spill] sm:$0xff] %v5103_v51  ;;  %v433_v61 = vsub.f32 %v5075_v42, %v5103_v51 }
  0x11   :  { %224 = vrot.lane.b32.xlu2 %v4932_v1, %s4808_s24  ;;  %256 = vrot.lane.b32.xlu1 %v4932_v1, %s4809_s25 }
  0x12   :  { %288 = vrot.lane.b32.xlu0 %v4932_v1, %s4810_s26 }
  0x19   :  { %290 = vrot.lane.b32.xlu2 %v4943_v2, %s4810_s26  ;;  %192 = vrot.lane.b32.xlu1 %v4932_v1, %s4811_s0 }
  0x1a   :  { %190 = vrot.lane.b32.xlu0 %v4921_v0, %s4811_s0 }
  0x21   :  { %160 = vrot.lane.b32.xlu2 %v4952_v3, %s4812_s19  ;;  %154 = vrot.lane.b32.xlu1 %v4921_v0, %s4812_s19 }
  0x22   :  { %258 = vrot.lane.b32.xlu0 %v4943_v2, %s4809_s25 }
  0x29   :  { %128 = vrot.lane.b32.xlu2 %v4952_v3, %s4813_s20  ;;  %122 = vrot.lane.b32.xlu1 %v4921_v0, %s4813_s20 }
  0x2a   :  { %226 = vrot.lane.b32.xlu0 %v4943_v2, %s4808_s24 }
  0x31   :  { %96 = vrot.lane.b32.xlu2 %v4952_v3, %s4814_s21  ;;  %90 = vrot.lane.b32.xlu1 %v4921_v0, %s4814_s21 }
  0x32   :  { %194 = vrot.lane.b32.xlu0 %v4943_v2, %s4811_s0 }
  0x39   :  { %156 = vrot.lane.b32.xlu2 %v4932_v1, %s4812_s19  ;;  %63 = vrot.lane.b32.xlu1 %v4952_v3, %s4815_s22 }
  0x3a   :  { %57 = vrot.lane.b32.xlu0 %v4921_v0, %s4815_s22 }
  0x41   :  { %59 = vrot.lane.b32.xlu2 %v4932_v1, %s4815_s22  ;;  %92 = vrot.lane.b32.xlu1 %v4932_v1, %s4814_s21 }
  0x42   :  { %124 = vrot.lane.b32.xlu0 %v4932_v1, %s4813_s20 }
  0x49   :  { %228 = vrot.lane.b32.xlu2 %v4952_v3, %s4808_s24  ;;  %260 = vrot.lane.b32.xlu1 %v4952_v3, %s4809_s25  ;;  %s4828_s24 = smov 53   ;;  %s4829_s25 = smov 5  }
  0x4a   :  { %292 = vrot.lane.b32.xlu0 %v4952_v3, %s4810_s26  ;;  %s4830_s26 = smov 75  }
  0x51   :  { %126 = vrot.lane.b32.xlu2 %v4943_v2, %s4813_s20  ;;  %158 = vrot.lane.b32.xlu1 %v4943_v2, %s4812_s19  ;;  %s4823_s19 = smov 34   ;;  %s4824_s20 = smov 126  }
  0x52   :  { %196 = vrot.lane.b32.xlu0 %v4952_v3, %s4811_s0  ;;  %s4820_s0 = smov 30  }
  0x59   :  { %61 = vrot.lane.b32.xlu1 %v4943_v2, %s4815_s22  ;;  %s4825_s22 = smov 48  }
  0x5a   :  { %94 = vrot.lane.b32.xlu0 %v4943_v2, %s4814_s21 }
  0x63   :  { %v4982_v4 = vpop.permute.xlu2 %222 }
  0x6b   :  { %v4984_v5 = vpop.permute.xlu2 %224 }
  0x6c   :  { %v233_v14 = vsel %vm230_vm0, %v4982_v4, %v4984_v5 }
  0x6d   :  { %v246_v17 = vmul.f32 %v238_v12, %v233_v14 }
  0x6f   :  { %v5025_v22 = vand.u32 4294901760, %v246_v17 }
  0x71   :  { %v5047_v31 = vsub.f32 %v246_v17, %v5025_v22 }
  0x73   :  { %v4986_v7 = vpop.permute.xlu2 %290  ;;  %v7869_v41 = vand.u32 4294901760, %v5047_v31 }
  0x75   :  { %v421_v50 = vsub.f32 %v5047_v31, %v7869_v41 }
  0x77   :  { %v422_v59 = vand.u32 4294901760, %v421_v50 }
  0x7b   :  { %v4996_v10 = vpop.permute.xlu2 %160  ;;  %v4998_v11 = vpop.permute.xlu1 %254 }
  0x7c   :  { %v5001_v13 = vpop.permute.xlu0 %286 }
  0x83   :  { %v5021_v20 = vpop.permute.xlu2 %128  ;;  %v5023_v21 = vpop.permute.xlu1 %256 }
  0x84   :  { %v265_v23 = vsel %vm262_vm1, %v4998_v11, %v5023_v21  ;;  %v5031_v24 = vpop.permute.xlu0 %288 }
  0x85   :  { %v278_v25 = vmul.f32 %v270_v18, %v265_v23  ;;  %v297_v26 = vsel %vm294_vm2, %v5001_v13, %v5031_v24  ;;  %v296_v12 = vsel %vm294_vm2, %v5031_v24, %v4986_v7  ;;  %v5144_v18 = vand.u32 4294901760, %v433_v61  ;;  %v318_v24 = vld [vmem:[%s7851_s2] sm:$0xff] }
  0x86   :  { %v310_v27 = vmul.f32 %v302_v19, %v297_v26  ;;  %v138_v19 = vperm.slane %v5136_v6, 0  ;;  %v271_v26 = vperm.slane %v5010_v15, 1 }
  0x87   :  { %v5037_v28 = vand.u32 4294901760, %v278_v25  ;;  %7971 = vst [vmem:[#allocation9_spill] sm:$0xff] %v5144_v18 }
  0x88   :  { %v5044_v30 = vand.u32 4294901760, %v310_v27 }
  0x89   :  { %v5053_v33 = vsub.f32 %v278_v25, %v5037_v28  ;;  %v311_v25 = vmul.f32 %v303_v63, %v296_v12 }
  0x8a   :  { %373 = vmatpush.msra.mxu0 %v5044_v30  ;;  %513 = vmatpush.msra.mxu3 %v5044_v30  ;;  %v5058_v34 = vsub.f32 %v310_v27, %v5044_v30 }
  0x8b   :  { %v5062_v36 = vpop.permute.xlu2 %96  ;;  %v5064_v37 = vpop.permute.xlu1 %192  ;;  %v7870_v38 = vand.u32 4294901760, %v5053_v33 }
  0x8c   :  { %7968 = vst [vmem:[#allocation6_spill] sm:$0xff] %v5062_v36  ;;  %375 = vmatpush.msra.mxu0 %v5037_v28  ;;  %474 = vmatpush.msra.mxu2 %v5058_v34  ;;  %v5069_v39 = vpop.permute.xlu0 %190  ;;  %v7871_v40 = vand.u32 4294901760, %v5058_v34 }
  0x8d   :  { %515 = vmatpush.msra.mxu3 %v5037_v28  ;;  %v201_v43 = vsel %vm198_vm3, %v5069_v39, %v5064_v37  ;;  %v415_v47 = vsub.f32 %v5053_v33, %v7870_v38 }
  0x8e   :  { %v214_v44 = vmul.f32 %v206_v35, %v201_v43  ;;  %377 = vmatpush.msra.mxu0 %v5025_v22  ;;  %477 = vmatpush.msra.mxu2 %v5053_v33  ;;  %v409_v45 = vsub.f32 %v5058_v34, %v7871_v40 }
  0x8f   :  { %517 = vmatpush.msra.mxu3 %v5025_v22  ;;  %v416_v53 = vand.u32 4294901760, %v415_v47 }
  0x90   :  { %v5096_v48 = vand.u32 4294901760, %v214_v44  ;;  %480 = vmatpush.msra.mxu2 %v5047_v31  ;;  %v410_v49 = vand.u32 4294901760, %v409_v45 }
  0x92   :  { %379 = vmatpush.msra.mxu0 %v5096_v48  ;;  %411 = vmatpush.msra.mxu1 %v410_v49  ;;  %v5109_v54 = vsub.f32 %v214_v44, %v5096_v48 }
  0x93   :  { %519 = vmatpush.msra.mxu3 %v5096_v48  ;;  %v5112_v55 = vpop.permute.xlu2 %156  ;;  %v5114_v56 = vpop.permute.xlu1 %154 }
  0x94   :  { %v166_v57 = vsel %vm162_vm4, %v4996_v10, %v5114_v56  ;;  %417 = vmatpush.msra.mxu1 %v416_v53  ;;  %483 = vmatpush.msra.mxu2 %v5109_v54  ;;  %v5121_v58 = vpop.permute.xlu0 %258  ;;  %v7868_v60 = vand.u32 4294901760, %v5109_v54  ;;  %v5176_v53 = vand.u32 4294901760, %v311_v25 }
  0x95   :  { %v178_v62 = vmul.f32 %v170_v52, %v166_v57  ;;  %381 = vmatpush.msra.mxu0 %v5050_v32  ;;  %521 = vmatpush.msra.mxu3 %v5050_v32  ;;  %v264_v44 = vsel %vm262_vm1, %v5023_v21, %v5121_v58  ;;  %v363_v52 = vsel %vm361_vm6, %v318_v24, 0  ;;  %v239_v57 = vperm.slane %v4993_v9, 1  ;;  %v5182_v21 = vld [vmem:[%s7850_s1 + $0x1] ss:$8 sm:$0xf] }
  0x96   :  { %423 = vmatpush.msra.mxu1 %v422_v59  ;;  %v427_v0 = vsub.f32 %v5109_v54, %v7868_v60  ;;  %486 = vmatpush.msra.mxu2 %v5075_v42  ;;  %v279_v59 = vmul.f32 %v271_v26, %v264_v44  ;;  %v5190_v12 = vand.u32 4294901760, %v363_v52  ;;  %v171_v26 = vperm.slane %v5090_v46, 1 }
  0x97   :  { %v5142_v14 = vand.u32 4294901760, %v178_v62  ;;  %v207_v44 = vperm.slane %v5042_v29, 1 }
  0x98   :  { %v428_v17 = vand.u32 4294901760, %v427_v0  ;;  %v240_v0 = vperm.slane %v4993_v9, 2  ;;  %7974 = vst [vmem:[#allocation12_spill] sm:$0xff] %v5190_v12  ;;  %v5227_v60 = vsub.f32 %v363_v52, %v5190_v12 }
  0x99   :  { %383 = vmatpush.msra.mxu0 %v5142_v14  ;;  %523 = vmatpush.msra.mxu3 %v5142_v14  ;;  %v5151_v23 = vsub.f32 %v178_v62, %v5142_v14 }
  0x9a   :  { %429 = vmatpush.msra.mxu1 %v428_v17  ;;  %v241_v17 = vperm.slane %v4993_v9, 3  ;;  %v165_v9 = vsel %vm162_vm4, %v5114_v56, %v5112_v55 }
  0x9b   :  { %v5157_v27 = vpop.permute.xlu2 %59  ;;  %v5159_v35 = vpop.permute.xlu1 %122  ;;  %489 = vmatpush.msra.mxu2 %v5151_v23  ;;  %v7867_v43 = vand.u32 4294901760, %v5151_v23  ;;  %v179_v42 = vmul.f32 %v171_v26, %v165_v9  ;;  %v5259_v26 = vand.u32 4294901760, %v5227_v60 }
  0x9c   :  { %7972 = vst [vmem:[#allocation10_spill] sm:$0xff] %v5157_v27  ;;  %v134_v45 = vsel %vm130_vm5, %v5021_v20, %v5159_v35  ;;  %v227_v47 = vpop.permute.xlu0 %226  ;;  %435 = vmatpush.msra.mxu1 %v5144_v18 }
  0x9d   :  { %v146_v49 = vmul.f32 %v138_v19, %v134_v45  ;;  %v439_v50 = vsub.f32 %v5151_v23, %v7867_v43  ;;  %v232_v62 = vsel %vm230_vm0, %v4984_v5, %v227_v47  ;;  %v106_v19 = vperm.slane %v5182_v21, 0 }
  0x9e   :  { %v247_v5 = vmul.f32 %v239_v57, %v232_v62  ;;  %v5203_v45 = vsub.f32 %v311_v25, %v5176_v53 }
  0x9f   :  { %v5184_v61 = vand.u32 4294901760, %v146_v49  ;;  %v440_v63 = vand.u32 4294901760, %v439_v50  ;;  %v5209_v50 = vand.u32 4294901760, %v279_v59 }
  0xa1   :  { %7973 = vst [vmem:[#allocation11_spill] sm:$0xff] %v5184_v61  ;;  %385 = vmatpush.msra.mxu0 %v5184_v61  ;;  %441 = vmatpush.msra.mxu1 %v440_v63  ;;  %v5197_v24 = vsub.f32 %v146_v49, %v5184_v61  ;;  %v5243_v52 = vsub.f32 %v279_v59, %v5209_v50  ;;  %v141_v59 = vperm.slane %v5136_v6, 3 }
  0xa2   :  { %525 = vmatpush.msra.mxu3 %v5184_v61 }
  0xa3   :  { %v229_v63 = vpop.permute.xlu2 %228  ;;  %v5211_v49 = vpop.permute.xlu1 %90  ;;  %492 = vmatpush.msra.mxu2 %v5197_v24  ;;  %v7874_v57 = vand.u32 4294901760, %v5197_v24 }
  0xa4   :  { %v231_v62 = vsel %vm230_vm0, %v227_v47, %v229_v63  ;;  %v234_v25 = vsel %vm230_vm0, %v229_v63, %v4982_v4  ;;  %v102_v56 = vsel %vm98_vm7, %v5062_v36, %v5211_v49  ;;  %v5224_v43 = vpop.permute.xlu0 %194  ;;  %v5237_v47 = vand.u32 4294901760, %v247_v5 }
  0xa5   :  { %v5229_v41 = vmul.f32 %v240_v0, %v231_v62  ;;  %v5231_v38 = vmul.f32 %v241_v17, %v234_v25  ;;  %v114_v40 = vmul.f32 %v106_v19, %v102_v56  ;;  %v200_v4 = vsel %vm198_vm3, %v5064_v37, %v5224_v43  ;;  %v5250_v17 = vld [vmem:[%s7850_s1] ss:$8 sm:$0xf] }
  0xa6   :  { %v215_v63 = vmul.f32 %v207_v44, %v200_v4  ;;  %v445_v18 = vsub.f32 %v5197_v24, %v7874_v57  ;;  %7978 = vst [vmem:[#allocation16_spill] sm:$0xff] %v5250_v17  ;;  %v5253_v37 = vand.u32 4294901760, %v4932_v1  ;;  %v5268_v25 = vsub.f32 %v247_v5, %v5237_v47 }
  0xa7   :  { %7975 = vst [vmem:[#allocation13_spill] sm:$0xff] %v5229_v41  ;;  %v5245_v0 = vand.u32 4294901760, %v114_v40  ;;  %v75_v56 = vperm.slane %v5250_v17, 1  ;;  %v5273_v4 = vand.u32 4294901760, %v179_v42  ;;  %v7982_v41 = vand.u32 4294901760, %v5203_v45 }
  0xa8   :  { %7976 = vst [vmem:[#allocation14_spill] sm:$0xff] %v5231_v38  ;;  %v5255_v19 = vand.u32 4294901760, %v215_v63  ;;  %v446_v44 = vand.u32 4294901760, %v445_v18  ;;  %v74_v18 = vperm.slane %v5250_v17, 0  ;;  %v5282_v5 = vsub.f32 %v4932_v1, %v5253_v37 }
  0xa9   :  { %7977 = vst [vmem:[#allocation15_spill] sm:$0xff] %v5245_v0  ;;  %387 = vmatpush.msra.mxu0 %v5245_v0  ;;  %527 = vmatpush.msra.mxu3 %v5245_v0  ;;  %v5265_v9 = vsub.f32 %v114_v40, %v5245_v0  ;;  %v659_v12 = vsub.f32 %v5203_v45, %v7982_v41  ;;  %v7891_v41 = vand.u32 4294901760, %v5268_v25  ;;  %vm1561_vm0 = vcmp.lt.s32.totalorder %v4988_v8, 126 }
  0xaa   :  { %7979 = vst [vmem:[#allocation17_spill] sm:$0xff] %v5253_v37  ;;  %447 = vmatpush.msra.mxu1 %v446_v44  ;;  %v5285_v44 = vsub.f32 %v215_v63, %v5255_v19  ;;  %v393_v40 = vsub.f32 %v5227_v60, %v5259_v26  ;;  %v5308_v17 = vsub.f32 %v179_v42, %v5273_v4  ;;  %v107_v42 = vperm.slane %v5182_v21, 1 }
  0xab   :  { %v127_v57 = vpop.permute.xlu2 %126  ;;  %v5275_v62 = vpop.permute.xlu1 %63  ;;  %495 = vmatpush.msra.mxu2 %v5265_v9  ;;  %7981 = vst [vmem:[#allocation19_spill] sm:$0xff] %v5282_v5 }
  0xac   :  { %7980 = vst [vmem:[#allocation18_spill] sm:$0xff] %v5275_v62  ;;  %v131_v38 = vsel %vm130_vm5, %v127_v57, %v5021_v20  ;;  %v58_v2 = vpop.permute.xlu0 %57  ;;  %v7984_v20 = vand.u32 4294901760, %v5265_v9 }
  0xad   :  { %v5295_v3 = vmul.f32 %v141_v59, %v131_v38  ;;  %v70_v1 = vsel %vm67_vm8, %v58_v2, %v5157_v27  ;;  %v71_v63 = vsel %vm67_vm8, %v5275_v62, %v58_v2  ;;  %v7985_v59 = vand.u32 4294901760, %v5243_v52 }
  0xae   :  { %v451_v36 = vsub.f32 %v5265_v9, %v7984_v20  ;;  %v82_v0 = vmul.f32 %v74_v18, %v71_v63  ;;  %v5314_v27 = vand.u32 4294901760, %v5282_v5  ;;  %v83_v61 = vmul.f32 %v75_v56, %v70_v1 }
  0xaf   :  { %7983 = vst [vmem:[#allocation20_spill] sm:$0xff] %v5295_v3  ;;  %v665_v3 = vsub.f32 %v5243_v52, %v7985_v59  ;;  %v5319_v20 = vand.u32 4294901760, %v393_v40  ;;  %v660_v18 = vand.u32 4294901760, %v659_v12  ;;  %v140_v63 = vperm.slane %v5136_v6, 2 }
  0xb0   :  { %v452_v38 = vand.u32 4294901760, %v451_v36  ;;  %7986 = vst [vmem:[#allocation21_spill] sm:$0xff] %v5314_v27  ;;  %v5316_v2 = vand.u32 4294901760, %v82_v0  ;;  %v139_v36 = vperm.slane %v5136_v6, 1  ;;  %v671_v40 = vsub.f32 %v5268_v25, %v7891_v41 }
  0xb1   :  { %v7987_v1 = vand.u32 4294901760, %v5058_v34  ;;  %v683_v59 = vsub.f32 %v5282_v5, %v5314_v27  ;;  %v5339_v6 = vand.u32 4294901760, %v83_v61  ;;  %v7989_v34 = vand.u32 4294901760, %v5285_v44 }
  0xb2   :  { %453 = vmatpush.msra.mxu1 %v452_v38  ;;  %389 = vmatpush.msra.mxu0 %v5316_v2  ;;  %v5327_v56 = vsub.f32 %v82_v0, %v5316_v2  ;;  %v666_v38 = vand.u32 4294901760, %v665_v3 }
  0xb3   :  { %529 = vmatpush.msra.mxu3 %v5316_v2  ;;  %v5334_v12 = vpop.permute.xlu1 %92  ;;  %395 = vmatmul.f32.vlgmr.msra.gmra.mxu0 %v5319_v20 }
  0xb4   :  { %547 = vmatpush.msrb.mxu0 %v7987_v1  ;;  %7988 = vst [vmem:[#allocation22_spill] sm:$0xff] %v5334_v12  ;;  %v101_v0 = vsel %vm98_vm7, %v5211_v49, %v5334_v12  ;;  %v125_v41 = vpop.permute.xlu0 %124  ;;  %498 = vmatpush.msra.mxu2 %v5327_v56  ;;  %v456_v3 = vand.u32 4294901760, %v5327_v56  ;;  %v7990_v49 = vand.u32 4294901760, %v5053_v33  ;;  %v5370_v33 = vand.u32 4294901760, %v683_v59 }
  0xb5   :  { %661 = vmatpush.msrb.mxu3 %v660_v18  ;;  %v677_v18 = vsub.f32 %v5285_v44, %v7989_v34  ;;  %v115_v1 = vmul.f32 %v107_v42, %v101_v0  ;;  %v132_v62 = vsel %vm130_vm5, %v125_v41, %v127_v57  ;;  %v133_v27 = vsel %vm130_vm5, %v5159_v35, %v125_v41 }
  0xb6   :  { %551 = vmatpush.msrb.mxu0 %v7990_v49  ;;  %623 = vmatpush.msrb.mxu2 %v5176_v53  ;;  %v147_v5 = vmul.f32 %v139_v36, %v133_v27  ;;  %v5359_v12 = vmul.f32 %v140_v63, %v132_v62  ;;  %v672_v34 = vand.u32 4294901760, %v671_v40  ;;  %v457_v42 = vsub.f32 %v5327_v56, %v456_v3 }
  0xb7   :  { %667 = vmatpush.msrb.mxu3 %v666_v38  ;;  %501 = vmatmul.f32.vlgmr.msra.gmra.mxu2 %v5227_v60  ;;  %v5365_v57 = vand.u32 4294901760, %v115_v1  ;;  %v7991_v35 = vand.u32 4294901760, %v5047_v31  ;;  %7992 = vst [vmem:[#allocation23_spill] sm:$0xff] %v5370_v33  ;;  %v7993_v27 = vand.u32 4294901760, %v5308_v17  ;;  %v5376_v41 = vsub.f32 %v83_v61, %v5339_v6 }
  0xb8   :  { %625 = vmatpush.msrb.mxu2 %v5209_v50  ;;  %v5378_v36 = vand.u32 4294901760, %v147_v5  ;;  %v678_v63 = vand.u32 4294901760, %v677_v18  ;;  %v458_v40 = vand.u32 4294901760, %v457_v42  ;;  %v7994_v31 = vand.u32 4294901760, %v5109_v54  ;;  %533 = vmatmul.f32.vlgmr.msra.gmra.mxu3 %v5259_v26 }
  0xb9   :  { %555 = vmatpush.msrb.mxu0 %v7991_v35  ;;  %v689_v62 = vsub.f32 %v5308_v17, %v7993_v27  ;;  %673 = vmatpush.msrb.mxu3 %v672_v34  ;;  %v5381_v38 = vsub.f32 %v115_v1, %v5365_v57  ;;  %v272_v59 = vperm.slane %v5010_v15, 2  ;;  %v273_v0 = vperm.slane %v5010_v15, 3 }
  0xba   :  { %627 = vmatpush.msrb.mxu2 %v5237_v47  ;;  %v5389_v61 = vsub.f32 %v147_v5, %v5378_v36  ;;  %459 = vmatpush.msra.mxu1 %v458_v40  ;;  %v304_v18 = vperm.slane %v5015_v16, 2  ;;  %v305_v49 = vperm.slane %v5015_v16, 3 }
  0xbb   :  { %559 = vmatpush.msrb.mxu0 %v7994_v31  ;;  %679 = vmatpush.msrb.mxu3 %v678_v63  ;;  %v261_v54 = vpop.permute.xlu1 %260  ;;  %v690_v1 = vand.u32 4294901760, %v689_v62  ;;  %v700_v34 = vand.u32 4294901760, %v5381_v38  ;;  %v7995_v63 = vand.u32 4294901760, %v5151_v23 }
  0xbc   :  { %593 = vmatpush.msrb.mxu1 %v5044_v30  ;;  %629 = vmatpush.msrb.mxu2 %v5255_v19  ;;  %v263_v15 = vsel %vm262_vm1, %v5121_v58, %v261_v54  ;;  %v266_v16 = vsel %vm262_vm1, %v261_v54, %v4998_v11  ;;  %v293_v5 = vpop.permute.xlu0 %292  ;;  %v694_v42 = vand.u32 4294901760, %v5389_v61  ;;  %v706_v30 = vand.u32 4294901760, %v5376_v41 }
  0xbd   :  { %563 = vmatpush.msrb.mxu0 %v5103_v51  ;;  %685 = vmatpush.msrb.mxu3 %v5370_v33  ;;  %v5406_v35 = vmul.f32 %v272_v59, %v263_v15  ;;  %v5408_v27 = vmul.f32 %v273_v0, %v266_v16  ;;  %v295_v62 = vsel %vm294_vm2, %v4986_v7, %v293_v5  ;;  %v7996_v7 = vand.u32 4294901760, %v5197_v24 }
  0xbe   :  { %v298_v58 = vsel %vm294_vm2, %v293_v5, %v5001_v13  ;;  %v5418_v11 = vmul.f32 %v304_v18, %v295_v62  ;;  %595 = vmatpush.msrb.mxu1 %v5037_v28  ;;  %631 = vmatpush.msrb.mxu2 %v5253_v37  ;;  %v695_v31 = vsub.f32 %v5389_v61, %v694_v42  ;;  %v7997_v59 = vand.u32 4294901760, %v5265_v9 }
  0xbf   :  { %567 = vmatpush.msrb.mxu0 %v7995_v63  ;;  %v5420_v40 = vmul.f32 %v305_v49, %v298_v58  ;;  %691 = vmatpush.msrb.mxu3 %v690_v1  ;;  %v701_v13 = vsub.f32 %v5381_v38, %v700_v34  ;;  %v707_v28 = vsub.f32 %v5376_v41, %v706_v30  ;;  %v172_v0 = vperm.slane %v5090_v46, 2  ;;  %v8002_v58 = vld [vmem:[#allocation15_spill] sm:$0xff] }
  0xc0   :  { %597 = vmatpush.msrb.mxu1 %v5025_v22  ;;  %633 = vmatpush.msrb.mxu2 %v5273_v4  ;;  %v696_v23 = vand.u32 4294901760, %v695_v31  ;;  %v173_v24 = vperm.slane %v5090_v46, 3  ;;  %v208_v22 = vperm.slane %v5042_v29, 2  ;;  %v209_v18 = vperm.slane %v5042_v29, 3 }
  0xc1   :  { %571 = vmatpush.msrb.mxu0 %v7996_v7  ;;  %v702_v49 = vand.u32 4294901760, %v701_v13  ;;  %v708_v29 = vand.u32 4294901760, %v707_v28  ;;  %v8001_v62 = vand.u32 4294901760, %v5243_v52  ;;  %v8003_v31 = vand.u32 4294901760, %v5268_v25  ;;  %v8004_v7 = vld [vmem:[#allocation18_spill] sm:$0xff] }
  0xc2   :  { %599 = vmatpush.msrb.mxu1 %v5096_v48  ;;  %635 = vmatpush.msrb.mxu2 %v5378_v36  ;;  %v8005_v28 = vld [vmem:[#allocation6_spill] sm:$0xff]  ;;  %vm1493_vm1 = vcmp.lt.s32.totalorder %v4988_v8, 30  ;;  %vm1461_vm2 = vcmp.lt.s32.totalorder %v4988_v8, 32 }
  0xc3   :  { %575 = vmatpush.msrb.mxu0 %v7997_v59  ;;  %697 = vmatpush.msrb.mxu3 %v696_v23  ;;  %v159_v9 = vpop.permute.xlu1 %158  ;;  %v8006_v59 = vld [vmem:[#allocation22_spill] sm:$0xff] }
  0xc4   :  { %601 = vmatpush.msrb.mxu1 %v5050_v32  ;;  %637 = vmatpush.msrb.mxu2 %v5365_v57  ;;  %v163_v46 = vsel %vm162_vm4, %v159_v9, %v4996_v10  ;;  %v164_v48 = vsel %vm162_vm4, %v5112_v55, %v159_v9  ;;  %v197_v54 = vpop.permute.xlu0 %196  ;;  %v7998_v55 = vand.u32 4294901760, %v5203_v45  ;;  %v8010_v9 = vld [vmem:[#allocation21_spill] sm:$0xff] }
  0xc5   :  { %579 = vmatpush.msrb.mxu0 %v456_v3  ;;  %v5456_v1 = vmul.f32 %v172_v0, %v164_v48  ;;  %v5458_v56 = vmul.f32 %v173_v24, %v163_v46  ;;  %v199_v3 = vsel %vm198_vm3, %v5224_v43, %v197_v54  ;;  %v202_v15 = vsel %vm198_vm3, %v197_v54, %v5069_v39  ;;  %v7999_v43 = vld [vmem:[#allocation11_spill] sm:$0xff]  ;;  %v8000_v39 = vld [vmem:[#allocation16_spill] sm:$0xff]  ;;  %v8015_v54 = vld [vmem:[#allocation10_spill] sm:$0xff] }
  0xc6   :  { %703 = vmatpush.msrb.mxu3 %v702_v49  ;;  %v5466_v10 = vmul.f32 %v208_v22, %v199_v3  ;;  %v5468_v16 = vmul.f32 %v209_v18, %v202_v15  ;;  %603 = vmatpush.msrb.mxu1 %v5142_v14  ;;  %v77_v5 = vperm.slane %v8000_v39, 3  ;;  %v109_v14 = vperm.slane %v5182_v21, 3  ;;  %v8007_v24 = vld [vmem:[#allocation12_spill] sm:$0xff]  ;;  %v8008_v22 = vld [vmem:[#allocation19_spill] sm:$0xff] }
  0xc7   :  { %724 = vmatpush.msra.mxu0 %v5203_v45  ;;  %639 = vmatpush.msrb.mxu2 %v5339_v6  ;;  %v108_v45 = vperm.slane %v5182_v21, 2  ;;  %v5518_v49 = vand.u32 4294901760, %v5418_v11  ;;  %v5572_v48 = vand.u32 4294901760, %v5456_v1  ;;  %v5599_v15 = vand.u32 4294901760, %v5420_v40 }
  0xc8   :  { %709 = vmatpush.msrb.mxu3 %v708_v29  ;;  %605 = vmatpush.msrb.mxu1 %v7999_v43  ;;  %v5590_v29 = vand.u32 4294901760, %v5359_v12  ;;  %vm1429_vm3 = vcmp.lt.s32.totalorder %v4988_v8, 34 }
  0xc9   :  { %727 = vmatpush.msra.mxu0 %v5243_v52  ;;  %797 = vmatpush.msra.mxu2 %v7998_v55 }
  0xca   :  { %843 = vmatpush.msra.mxu3 %v5176_v53  ;;  %607 = vmatpush.msrb.mxu1 %v8002_v58  ;;  %v5631_v58 = vsub.f32 %v5359_v12, %v5590_v29 }
  0xcb   :  { %730 = vmatpush.msra.mxu0 %v5268_v25  ;;  %801 = vmatpush.msra.mxu2 %v8001_v62  ;;  %v62_v63 = vpop.permute.xlu1 %61  ;;  %v5620_v62 = vand.u32 4294901760, %v5408_v27 }
  0xcc   :  { %845 = vmatpush.msra.mxu3 %v5209_v50  ;;  %v68_v13 = vsel %vm67_vm8, %v62_v63, %v8004_v7  ;;  %v95_v52 = vpop.permute.xlu0 %94  ;;  %609 = vmatpush.msrb.mxu1 %v5316_v2  ;;  %v8009_v2 = vand.u32 4294901760, %v5285_v44 }
  0xcd   :  { %733 = vmatpush.msra.mxu0 %v5285_v44  ;;  %805 = vmatpush.msra.mxu2 %v8003_v31  ;;  %v5494_v23 = vmul.f32 %v77_v5, %v68_v13  ;;  %v99_v21 = vsel %vm98_vm7, %v95_v52, %v8005_v28  ;;  %v100_v25 = vsel %vm98_vm7, %v8006_v59, %v95_v52  ;;  %v5524_v44 = vand.u32 4294901760, %v5406_v35 }
  0xce   :  { %847 = vmatpush.msra.mxu3 %v5237_v47  ;;  %v5502_v0 = vmul.f32 %v109_v14, %v99_v21  ;;  %461 = vmatmul.f32.vlgmr.msra.gmra.mxu1 %v8007_v24  ;;  %v5506_v18 = vmul.f32 %v108_v45, %v100_v25  ;;  %v5638_v31 = vsub.f32 %v5420_v40, %v5599_v15  ;;  %v5662_v21 = vand.u32 4294901760, %v5468_v16 }
  0xcf   :  { %736 = vmatpush.msra.mxu0 %v8008_v22  ;;  %763 = vmatpush.msra.mxu1 %v5176_v53  ;;  %v8011_v53 = vand.u32 4294901760, %v5308_v17  ;;  %v5657_v28 = vsub.f32 %v5408_v27, %v5620_v62  ;;  %v7899_v25 = vand.u32 4294901760, %v5631_v58 }
  0xd0   :  { %809 = vmatpush.msra.mxu2 %v8009_v2  ;;  %849 = vmatpush.msra.mxu3 %v5255_v19  ;;  %v5607_v43 = vand.u32 4294901760, %v5506_v18 }
  0xd1   :  { %739 = vmatpush.msra.mxu0 %v5308_v17  ;;  %765 = vmatpush.msra.mxu1 %v5209_v50  ;;  %v8012_v50 = vld [vmem:[#allocation13_spill] sm:$0xff]  ;;  %v5538_v17 = vsub.f32 %v5418_v11, %v5518_v49 }
  0xd2   :  { %813 = vmatpush.msra.mxu2 %v8010_v9  ;;  %851 = vmatpush.msra.mxu3 %v5253_v37  ;;  %v5652_v40 = vsub.f32 %v5506_v18, %v5607_v43  ;;  %v8019_v18 = vld [vmem:[#allocation4_spill] sm:$0xff] }
  0xd3   :  { %742 = vmatpush.msra.mxu0 %v5389_v61  ;;  %767 = vmatpush.msra.mxu1 %v5237_v47  ;;  %v5534_v47 = vand.u32 4294901760, %v8012_v50  ;;  %v5549_v61 = vand.u32 4294901760, %v5466_v10  ;;  %v908_v46 = vand.u32 4294901760, %v5538_v17  ;;  %v5667_v2 = vand.u32 4294901760, %v8019_v18 }
  0xd4   :  { %817 = vmatpush.msra.mxu2 %v8011_v53  ;;  %853 = vmatpush.msra.mxu3 %v5273_v4  ;;  %v7897_v53 = vand.u32 4294901760, %v5638_v31 }
  0xd5   :  { %645 = vmatmul.f32.vlgmr.msrb.gmra.mxu2 %v5319_v20  ;;  %581 = vmatmul.f32.vlgmr.msrb.gmra.mxu0 %v8007_v24  ;;  %8020 = vst [vmem:[#allocation18_spill] sm:$0xff] %v5667_v2 }
  0xd6   :  { %769 = vmatpush.msra.mxu1 %v5255_v19  ;;  %745 = vmatpush.msra.mxu0 %v5381_v38  ;;  %v5546_v19 = vsub.f32 %v5406_v35, %v5524_v44  ;;  %v5565_v35 = vsub.f32 %v8012_v50, %v5534_v47  ;;  %v76_v38 = vperm.slane %v8000_v39, 2  ;;  %v5613_v39 = vsub.f32 %v5456_v1, %v5572_v48 }
  0xd7   :  { %821 = vmatpush.msra.mxu2 %v694_v42  ;;  %711 = vmatmul.f32.vlgmr.msrb.gmra.mxu3 %v8007_v24  ;;  %v8013_v42 = vld [vmem:[#allocation3_spill] sm:$0xff] }
  0xd8   :  { %611 = vmatmul.f32.vlgmr.msrb.gmra.mxu1 %v8007_v24  ;;  %855 = vmatpush.msra.mxu3 %v5378_v36  ;;  %v5555_v11 = vand.u32 4294901760, %v8013_v42  ;;  %v920_v3 = vand.u32 4294901760, %v5565_v35  ;;  %v938_v52 = vand.u32 4294901760, %v5613_v39 }
  0xd9   :  { %748 = vmatpush.msra.mxu0 %v5376_v41  ;;  %771 = vmatpush.msra.mxu1 %v5253_v37  ;;  %v5581_v41 = vsub.f32 %v5466_v10, %v5549_v61 }
  0xda   :  { %825 = vmatpush.msra.mxu2 %v700_v34  ;;  %8014 = vst [vmem:[#allocation11_spill] sm:$0xff] %v5555_v11  ;;  %857 = vmatpush.msra.mxu3 %v5365_v57  ;;  %v914_v34 = vand.u32 4294901760, %v5546_v19  ;;  %v921_v1 = vsub.f32 %v5565_v35, %v920_v3 }
  0xdb   :  { %873 = vmatpush.msrb.mxu0 %v5518_v49  ;;  %773 = vmatpush.msra.mxu1 %v5273_v4  ;;  %v69_v4 = vsel %vm67_vm8, %v8015_v54, %v62_v63  ;;  %v926_v5 = vand.u32 4294901760, %v5581_v41  ;;  %v8018_v63 = vld [vmem:[#allocation14_spill] sm:$0xff]  ;;  %v939_v54 = vsub.f32 %v5613_v39, %v938_v52  ;;  %vm2987_vm8 = vcmp.lt.s32.totalorder %v4988_v8, 48 }
  0xdc   :  { %829 = vmatpush.msra.mxu2 %v706_v30  ;;  %859 = vmatpush.msra.mxu3 %v5339_v6  ;;  %v5585_v30 = vsub.f32 %v8013_v42, %v5555_v11  ;;  %v84_v10 = vmul.f32 %v76_v38, %v69_v4  ;;  %v915_v55 = vsub.f32 %v5546_v19, %v914_v34  ;;  %v5634_v45 = vand.u32 4294901760, %v8018_v63 }
  0xdd   :  { %875 = vmatpush.msrb.mxu0 %v5524_v44  ;;  %775 = vmatpush.msra.mxu1 %v5378_v36  ;;  %v909_v36 = vsub.f32 %v5538_v17, %v908_v46  ;;  %v927_v12 = vsub.f32 %v5581_v41, %v926_v5  ;;  %v922_v59 = vand.u32 4294901760, %v921_v1  ;;  %v7898_v4 = vand.u32 4294901760, %v5652_v40 }
  0xde   :  { %974 = vmatpush.msrb.mxu2 %v5538_v17  ;;  %8016 = vst [vmem:[#allocation16_spill] sm:$0xff] %v5585_v30  ;;  %1013 = vmatpush.msrb.mxu3 %v5518_v49  ;;  %v5640_v7 = vand.u32 4294901760, %v84_v10  ;;  %v5671_v27 = vsub.f32 %v8018_v63, %v5634_v45  ;;  %v5702_v1 = vsub.f32 %v8019_v18, %v5667_v2 }
  0xdf   :  { %831 = vmatmul.f32.vlgmr.msra.gmra.mxu2 %v8007_v24  ;;  %877 = vmatpush.msrb.mxu0 %v5534_v47  ;;  %v910_v14 = vand.u32 4294901760, %v909_v36  ;;  %v928_v42 = vand.u32 4294901760, %v927_v12  ;;  %v1164_v36 = vand.u32 4294901760, %v5657_v28  ;;  %v951_v12 = vsub.f32 %v5652_v40, %v7898_v4 }
  0xe0   :  { %977 = vmatpush.msrb.mxu2 %v5546_v19  ;;  %777 = vmatpush.msra.mxu1 %v5365_v57  ;;  %v5617_v57 = vand.u32 4294901760, %v5585_v30  ;;  %v5677_v50 = vsub.f32 %v84_v10, %v5640_v7  ;;  %v5690_v10 = vand.u32 4294901760, %v5458_v56  ;;  %8022 = vst [vmem:[#allocation22_spill] sm:$0xff] %v5702_v1 }
  0xe1   :  { %1015 = vmatpush.msrb.mxu3 %v5524_v44  ;;  %751 = vmatmul.f32.vlgmr.msra.gmra.mxu0 %v5227_v60 }
  0xe2   :  { %861 = vmatmul.f32.vlgmr.msra.gmra.mxu3 %v8007_v24  ;;  %8017 = vst [vmem:[#allocation15_spill] sm:$0xff] %v5617_v57  ;;  %879 = vmatpush.msrb.mxu0 %v5549_v61  ;;  %v933_v13 = vsub.f32 %v5585_v30, %v5617_v57  ;;  %v956_v63 = vand.u32 4294901760, %v5677_v50 }
  0xe3   :  { %980 = vmatpush.msrb.mxu2 %v5565_v35  ;;  %779 = vmatpush.msra.mxu1 %v5339_v6  ;;  %v916_v6 = vand.u32 4294901760, %v915_v55  ;;  %v5694_v55 = vsub.f32 %v5468_v16, %v5662_v21  ;;  %v1159_v16 = vsub.f32 %v5638_v31, %v7897_v53 }
  0xe4   :  { %1017 = vmatpush.msrb.mxu3 %v5534_v47  ;;  %783 = vmatmul.f32.vlgmr.msra.gmra.mxu1 %v5259_v26  ;;  %v5680_v38 = vand.u32 4294901760, %v933_v13  ;;  %v1170_v13 = vand.u32 4294901760, %v5671_v27 }
  0xe5   :  { %881 = vmatpush.msrb.mxu0 %v5555_v11  ;;  %911 = vmatpush.msrb.mxu1 %v910_v14  ;;  %v945_v14 = vsub.f32 %v5631_v58, %v7899_v25  ;;  %v7900_v4 = vand.u32 4294901760, %v5694_v55  ;;  %v5732_v25 = vand.u32 4294901760, %v5702_v1  ;;  %v1160_v17 = vand.u32 4294901760, %v1159_v16 }
  0xe6   :  { %983 = vmatpush.msrb.mxu2 %v5581_v41  ;;  %1019 = vmatpush.msrb.mxu3 %v5549_v61  ;;  %8021 = vst [vmem:[#allocation6_spill] sm:$0xff] %v5680_v38  ;;  %v5754_v16 = vand.u32 4294901760, %v5494_v23 }
  0xe7   :  { %883 = vmatpush.msrb.mxu0 %v5572_v48  ;;  %917 = vmatpush.msrb.mxu1 %v916_v6  ;;  %v940_v6 = vand.u32 4294901760, %v939_v54  ;;  %v5727_v54 = vsub.f32 %v5458_v56, %v5690_v10  ;;  %v946_v53 = vand.u32 4294901760, %v945_v14  ;;  %8024 = vst [vmem:[#allocation12_spill] sm:$0xff] %v5732_v25  ;;  %v957_v56 = vsub.f32 %v5677_v50, %v956_v63 }
  0xe8   :  { %986 = vmatpush.msrb.mxu2 %v5585_v30  ;;  %1021 = vmatpush.msrb.mxu3 %v5555_v11  ;;  %v952_v14 = vand.u32 4294901760, %v951_v12  ;;  %v1177_v12 = vsub.f32 %v5694_v55, %v7900_v4 }
  0xe9   :  { %885 = vmatpush.msrb.mxu0 %v5590_v29  ;;  %923 = vmatpush.msrb.mxu1 %v922_v59  ;;  %v8023_v59 = vld [vmem:[#allocation20_spill] sm:$0xff]  ;;  %v1188_v35 = vand.u32 4294901760, %v5727_v54 }
  0xea   :  { %989 = vmatpush.msrb.mxu2 %v5613_v39  ;;  %1023 = vmatpush.msrb.mxu3 %v5572_v48  ;;  %v5717_v18 = vand.u32 4294901760, %v8023_v59  ;;  %v8027_v39 = vand.u32 4294901760, %v5652_v40 }
  0xeb   :  { %887 = vmatpush.msrb.mxu0 %v5607_v43  ;;  %929 = vmatpush.msrb.mxu1 %v928_v42  ;;  %v1165_v42 = vsub.f32 %v5657_v28, %v1164_v36  ;;  %v1189_v41 = vsub.f32 %v5727_v54, %v1188_v35 }
  0xec   :  { %992 = vmatpush.msrb.mxu2 %v5631_v58  ;;  %1025 = vmatpush.msrb.mxu3 %v5590_v29  ;;  %v5749_v19 = vsub.f32 %v8023_v59, %v5717_v18  ;;  %v1183_v59 = vsub.f32 %v5702_v1, %v5732_v25 }
  0xed   :  { %889 = vmatpush.msrb.mxu0 %v5640_v7  ;;  %935 = vmatpush.msrb.mxu1 %v5680_v38 }
  0xee   :  { %995 = vmatpush.msrb.mxu2 %v5652_v40  ;;  %1027 = vmatpush.msrb.mxu3 %v5607_v43  ;;  %v1194_v4 = vand.u32 4294901760, %v5749_v19 }
  0xef   :  { %1047 = vmatpush.msra.mxu0 %v908_v46  ;;  %941 = vmatpush.msrb.mxu1 %v940_v6  ;;  %v5741_v46 = vand.u32 4294901760, %v5502_v0  ;;  %v1171_v6 = vsub.f32 %v5671_v27, %v1170_v13 }
  0xf0   :  { %998 = vmatpush.msrb.mxu2 %v5677_v50  ;;  %1029 = vmatpush.msrb.mxu3 %v5640_v7 }
  0xf1   :  { %1051 = vmatpush.msra.mxu0 %v914_v34  ;;  %947 = vmatpush.msrb.mxu1 %v946_v53  ;;  %v1166_v34 = vand.u32 4294901760, %v1165_v42  ;;  %v355_v53 = vld [vmem:[%s7852_s3] sm:$0xff]  ;;  %v958_v42 = vand.u32 4294901760, %v957_v56  ;;  %v1178_v56 = vand.u32 4294901760, %v1177_v12  ;;  %s4831_s3 = smov 85  }
  0xf2   :  { %1123 = vmatpush.msra.mxu2 %v5599_v15  ;;  %1161 = vmatpush.msra.mxu3 %v1160_v17  ;;  %v5769_v17 = vsub.f32 %v5502_v0, %v5741_v46  ;;  %v5780_v0 = vand.u32 4294901760, %v1183_v59 }
  0xf3   :  { %1055 = vmatpush.msra.mxu0 %v920_v3  ;;  %953 = vmatpush.msrb.mxu1 %v952_v14  ;;  %v4816_v3 = vmov 0   ;;  %v1172_v14 = vand.u32 4294901760, %v1171_v6  ;;  %v1190_v6 = vand.u32 4294901760, %v1189_v41 }
  0xf4   :  { %1125 = vmatpush.msra.mxu2 %v5620_v62  ;;  %1167 = vmatpush.msra.mxu3 %v1166_v34  ;;  %v5777_v34 = vsub.f32 %v5494_v23, %v5754_v16  ;;  %8025 = vst [vmem:[#allocation13_spill] sm:$0xff] %v5780_v0  ;;  %v1200_v23 = vand.u32 4294901760, %v5769_v17 }
  0xf5   :  { %4800 = vset.pattern.permute.xlu2 %v4816_v3  ;;  %1059 = vmatpush.msra.mxu0 %v926_v5  ;;  %v8026_v5 = vand.u32 4294901760, %v5631_v58 }
  0xf6   :  { %1127 = vmatpush.msra.mxu2 %v5634_v45  ;;  %358 = vperm.xlu2 %4800, %v355_v53   ;;  %v1206_v53 = vand.u32 4294901760, %v5777_v34 }
  0xf7   :  { %959 = vmatpush.msrb.mxu1 %v958_v42  ;;  %1173 = vmatpush.msra.mxu3 %v1172_v14 }
  0xf8   :  { %1063 = vmatpush.msra.mxu0 %v5617_v57  ;;  %1129 = vmatpush.msra.mxu2 %v5662_v21 }
  0xf9   :  { %1093 = vmatpush.msra.mxu1 %v5518_v49  ;;  %1179 = vmatpush.msra.mxu3 %v1178_v56  ;;  %v1195_v49 = vsub.f32 %v5749_v19, %v1194_v4 }
  0xfa   :  { %1067 = vmatpush.msra.mxu0 %v938_v52  ;;  %1131 = vmatpush.msra.mxu2 %v5667_v2  ;;  %v8028_v52 = vand.u32 4294901760, %v5638_v31 }
  0xfb   :  { %1095 = vmatpush.msra.mxu1 %v5524_v44  ;;  %1185 = vmatpush.msra.mxu3 %v5780_v0  ;;  %v1201_v44 = vsub.f32 %v5769_v17, %v1200_v23  ;;  %v1196_v58 = vand.u32 4294901760, %v1195_v49 }
  0xfc   :  { %1071 = vmatpush.msra.mxu0 %v8026_v5  ;;  %1133 = vmatpush.msra.mxu2 %v5690_v10 }
  0xfd   :  { %1097 = vmatpush.msra.mxu1 %v5534_v47  ;;  %1001 = vmatmul.f32.vlgmr.msrb.gmra.mxu2 %v5227_v60  ;;  %v1207_v47 = vsub.f32 %v5777_v34, %v1206_v53  ;;  %v1202_v40 = vand.u32 4294901760, %v1201_v44 }
  0xfe   :  { %1191 = vmatpush.msra.mxu3 %v1190_v6  ;;  %1075 = vmatpush.msra.mxu0 %v8027_v39 }
  0xff   :  { %1099 = vmatpush.msra.mxu1 %v5549_v61  ;;  %1135 = vmatpush.msra.mxu2 %v5717_v18  ;;  %v1208_v61 = vand.u32 4294901760, %v1207_v47 }
 0x100   :  { %895 = vmatmul.f32.vlgmr.msrb.gmra.mxu0 %v5319_v20  ;;  %1033 = vmatmul.f32.vlgmr.msrb.gmra.mxu3 %v5259_v26 }
 0x101   :  { %1079 = vmatpush.msra.mxu0 %v956_v63  ;;  %1197 = vmatpush.msra.mxu3 %v1196_v58 }
 0x102   :  { %1101 = vmatpush.msra.mxu1 %v5555_v11  ;;  %1137 = vmatpush.msra.mxu2 %v5741_v46 }
 0x103   :  { %961 = vmatmul.f32.vlgmr.msrb.gmra.mxu1 %v8007_v24  ;;  %1203 = vmatpush.msra.mxu3 %v1202_v40 }
 0x104   :  { %1224 = vmatpush.msrb.mxu0 %v5638_v31  ;;  %1103 = vmatpush.msra.mxu1 %v5572_v48  ;;  %v8029_v48 = vand.u32 4294901760, %v5694_v55 }
 0x105   :  { %1139 = vmatpush.msra.mxu2 %v5754_v16  ;;  %1209 = vmatpush.msra.mxu3 %v1208_v61 }
 0x106   :  { %1227 = vmatpush.msrb.mxu0 %v5657_v28  ;;  %1105 = vmatpush.msra.mxu1 %v5590_v29 }
 0x107   :  { %1297 = vmatpush.msrb.mxu2 %v8028_v52  ;;  %1343 = vmatpush.msrb.mxu3 %v5599_v15 }
 0x108   :  { %1230 = vmatpush.msrb.mxu0 %v5671_v27  ;;  %1107 = vmatpush.msra.mxu1 %v5607_v43 }
 0x109   :  { %1301 = vmatpush.msrb.mxu2 %v1164_v36  ;;  %1345 = vmatpush.msrb.mxu3 %v5620_v62 }
 0x10a   :  { %1081 = vmatmul.f32.vlgmr.msra.gmra.mxu0 %v8007_v24  ;;  %1109 = vmatpush.msra.mxu1 %v5640_v7 }
 0x10b   :  { %1233 = vmatpush.msrb.mxu0 %v5694_v55  ;;  %1305 = vmatpush.msrb.mxu2 %v1170_v13 }
 0x10c   :  { %1347 = vmatpush.msrb.mxu3 %v5634_v45  ;;  %1111 = vmatmul.f32.vlgmr.msra.gmra.mxu1 %v8007_v24 }
 0x10d   :  { %1236 = vmatpush.msrb.mxu0 %v5702_v1  ;;  %1263 = vmatpush.msrb.mxu1 %v5599_v15 }
 0x10e   :  { %1309 = vmatpush.msrb.mxu2 %v8029_v48  ;;  %1349 = vmatpush.msrb.mxu3 %v5662_v21 }
 0x10f   :  { %1145 = vmatmul.f32.vlgmr.msra.gmra.mxu2 %v5319_v20  ;;  %1239 = vmatpush.msrb.mxu0 %v5727_v54  ;;  %v1366_v20 = vld [vmem:[%s7853_s5] sm:$0xff] }
 0x110   :  { %1265 = vmatpush.msrb.mxu1 %v5620_v62  ;;  %1313 = vmatpush.msrb.mxu2 %v5732_v25 }
 0x111   :  { %1211 = vmatmul.f32.vlgmr.msra.gmra.mxu3 %v8007_v24  ;;  %1242 = vmatpush.msrb.mxu0 %v5749_v19 }
 0x112   :  { %1351 = vmatpush.msrb.mxu3 %v5667_v2  ;;  %1267 = vmatpush.msrb.mxu1 %v5634_v45 }
 0x113   :  { %1317 = vmatpush.msrb.mxu2 %v1188_v35  ;;  %1245 = vmatpush.msrb.mxu0 %v5769_v17 }
 0x114   :  { %1353 = vmatpush.msrb.mxu3 %v5690_v10  ;;  %1269 = vmatpush.msrb.mxu1 %v5662_v21 }
 0x115   :  { %1321 = vmatpush.msrb.mxu2 %v1194_v4  ;;  %1248 = vmatpush.msrb.mxu0 %v5777_v34 }
 0x116   :  { %1355 = vmatpush.msrb.mxu3 %v5717_v18  ;;  %1271 = vmatpush.msrb.mxu1 %v5667_v2 }
 0x117   :  { %1325 = vmatpush.msrb.mxu2 %v1200_v23  ;;  %1251 = vmatmul.f32.vlgmr.msrb.gmra.mxu0 %v5227_v60 }
 0x118   :  { %1357 = vmatpush.msrb.mxu3 %v5741_v46  ;;  %1273 = vmatpush.msrb.mxu1 %v5690_v10 }
 0x119   :  { %1329 = vmatpush.msrb.mxu2 %v1206_v53  ;;  %1410 = vperm.xlu2 %4800, %v1366_v20  }
 0x11a   :  { %1359 = vmatpush.msrb.mxu3 %v5754_v16  ;;  %1331 = vmatmul.f32.vlgmr.msrb.gmra.mxu2 %v8007_v24 }
 0x11b   :  { %1275 = vmatpush.msrb.mxu1 %v5717_v18  ;;  %1361 = vmatmul.f32.vlgmr.msrb.gmra.mxu3 %v8007_v24 }
 0x11c   :  { %4801 = vset.pattern.permute.xlu0 %v4816_v3 }
 0x11d   :  { %1277 = vmatpush.msrb.mxu1 %v5741_v46 }
 0x11f   :  { %1279 = vmatpush.msrb.mxu1 %v5754_v16 }
 0x120   :  { %1283 = vmatmul.f32.vlgmr.msrb.gmra.mxu1 %v5259_v26 }
 0x130   :  { %v396_v60 = vpop.f32.mrf.mxu0 }
 0x13a   :  { %v502_v29 = vpop.f32.mrf.mxu2 }
 0x13b   :  { %v534_v43 = vpop.f32.mrf.mxu3 }
 0x14b   :  { %v462_v15 = vpop.f32.mrf.mxu1 }
 0x150   :  { %v359_v50 = vpop.permute.xlu2 %358 }
 0x151   :  { %v397_v10 = vadd.f32 %v396_v60, %v359_v50 }
 0x152   :  { %v582_v62 = vpop.f32.mrf.mxu0 }
 0x153   :  { %v463_v54 = vadd.f32 %v462_v15, %v397_v10 }
 0x155   :  { %v612_v31 = vpop.f32.mrf.mxu1  ;;  %v503_v12 = vadd.f32 %v502_v29, %v463_v54 }
 0x157   :  { %v535_v34 = vadd.f32 %v534_v43, %v503_v12 }
 0x158   :  { %v646_v45 = vpop.f32.mrf.mxu2 }
 0x159   :  { %v647_v36 = vadd.f32 %v646_v45, %v359_v50  ;;  %v583_v6 = vadd.f32 %v582_v62, %v535_v34 }
 0x15a   :  { %v712_v7 = vpop.f32.mrf.mxu3 }
 0x15b   :  { %v713_v26 = vadd.f32 %v712_v7, %v647_v36  ;;  %v613_v47 = vadd.f32 %v612_v31, %v583_v6 }
 0x15e   :  { %v752_v28 = vpop.f32.mrf.mxu0 }
 0x15f   :  { %v753_v19 = vadd.f32 %v752_v28, %v713_v26 }
 0x161   :  { %v784_v24 = vpop.f32.mrf.mxu1 }
 0x162   :  { %v832_v21 = vpop.f32.mrf.mxu2  ;;  %v785_v3 = vadd.f32 %v784_v24, %v753_v19 }
 0x164   :  { %v833_v41 = vadd.f32 %v832_v21, %v785_v3 }
 0x165   :  { %v862_v27 = vpop.f32.mrf.mxu3 }
 0x166   :  { %v863_v53 = vadd.f32 %v862_v27, %v833_v41 }
 0x168   :  { %v1367_v48 = vadd.f32 %v863_v53, %v613_v47 }
 0x173   :  { %v1411_v3 = vpop.permute.xlu2 %1410 }
 0x17d   :  { %v896_v4 = vpop.f32.mrf.mxu0 }
 0x17e   :  { %v897_v55 = vadd.f32 %v896_v4, %v359_v50 }
 0x180   :  { %v1002_v63 = vpop.f32.mrf.mxu2  ;;  %v962_v13 = vpop.f32.mrf.mxu1 }
 0x181   :  { %v963_v46 = vadd.f32 %v962_v13, %v897_v55 }
 0x183   :  { %v1034_v18 = vpop.f32.mrf.mxu3  ;;  %v1003_v59 = vadd.f32 %v1002_v63, %v963_v46 }
 0x185   :  { %v1035_v56 = vadd.f32 %v1034_v18, %v1003_v59 }
 0x187   :  { %v1082_v16 = vpop.f32.mrf.mxu0 }
 0x188   :  { %v1083_v49 = vadd.f32 %v1082_v16, %v1035_v56  ;;  %v1365_v16 = vld [vmem:[%s7854_s4] sm:$0xff]  ;;  %s4818_s4 = smov 94  }
 0x189   :  { %v1112_v17 = vpop.f32.mrf.mxu1 }
 0x18a   :  { %v1113_v40 = vadd.f32 %v1112_v17, %v1083_v49 }
 0x18c   :  { %v1368_v60 = vadd.f32 %v1367_v48, %v1113_v40 }
 0x192   :  { %v1146_v35 = vpop.f32.mrf.mxu2 }
 0x193   :  { %v1147_v42 = vadd.f32 %v1146_v35, %v359_v50 }
 0x194   :  { %v1212_v14 = vpop.f32.mrf.mxu3  ;;  %v1252_v5 = vpop.f32.mrf.mxu0 }
 0x195   :  { %v1213_v23 = vadd.f32 %v1212_v14, %v1147_v42 }
 0x197   :  { %v1253_v44 = vadd.f32 %v1252_v5, %v1213_v23 }
 0x19d   :  { %v1284_v39 = vpop.f32.mrf.mxu1  ;;  %v1332_v58 = vpop.f32.mrf.mxu2 }
 0x19e   :  { %v1285_v61 = vadd.f32 %v1284_v39, %v1253_v44  ;;  %v1362_v52 = vpop.f32.mrf.mxu3 }
 0x1a0   :  { %v1333_v20 = vadd.f32 %v1332_v58, %v1285_v61 }
 0x1a2   :  { %v1363_v29 = vadd.f32 %v1362_v52, %v1333_v20 }
 0x1a4   :  { %v1369_v15 = vadd.f32 %v1368_v60, %v1363_v29 }
 0x1a6   :  { %1370 = vadd.xlane.f32.xlu0 %v1369_v15 }
 0x219   :  { %v1371_v43 = vpop.xlane.xlu0 %1370 }
 0x21a   :  { %v1372_v45 = vmul.f32 0.001953125, %v1371_v43 }
 0x21c   :  { %v1373_v7 = vsub.f32 %v613_v47, %v1372_v45  ;;  %v1374_v28 = vsub.f32 %v863_v53, %v1372_v45  ;;  %v1375_v62 = vsub.f32 %v1113_v40, %v1372_v45  ;;  %v1376_v21 = vsub.f32 %v1363_v29, %v1372_v45  ;;  %v5937_v47 = vld [vmem:[%s7850_s1 + $0x41] ss:$8 sm:$0xf]  ;;  %v5967_v45 = vld [vmem:[%s7850_s1 + $0x27] ss:$8 sm:$0xf] }
 0x21d   :  { %8033 = vst [vmem:[#allocation4_spill] sm:$0xff] %v5937_v47  ;;  %v1665_v40 = vperm.slane %v5937_v47, 0  ;;  %v1602_v2 = vperm.slane %v5967_v45, 1 }
 0x21e   :  { %v1377_v24 = vmul.f32 %v1373_v7, %v1373_v7  ;;  %v1378_v27 = vmul.f32 %v1374_v28, %v1374_v28  ;;  %v1379_v50 = vmul.f32 %v1375_v62, %v1375_v62  ;;  %v1380_v31 = vmul.f32 %v1376_v21, %v1376_v21 }
 0x220   :  { %v1381_v4 = vadd.f32 %v1378_v27, %v1377_v24 }
 0x222   :  { %v1382_v36 = vadd.f32 %v1381_v4, %v1379_v50 }
 0x224   :  { %v1383_v10 = vadd.f32 %v1382_v36, %v1380_v31 }
 0x226   :  { %1384 = vadd.xlane.f32.xlu1 %v1383_v10 }
 0x299   :  { %v1385_v55 = vpop.xlane.xlu1 %1384 }
 0x29a   :  { %v1386_v63 = vmul.f32 0.001953125, %v1385_v55 }
 0x29c   :  { %v1387_v13 = vadd.f32 1e-05, %v1386_v63 }
 0x29e   :  { %4802 = vrsqrt.f32 %v1387_v13  ;;  %vm1394_vm10 = vweird.f32 %v1387_v13 }
 0x2a4   :  { %v4803_v26 = vpop.eup %4802 }
 0x2a5   :  { %v1389_v18 = vmul.f32 %v4803_v26, %v1387_v13  ;;  %vm1395_vm9 = vweird.f32 %v4803_v26 }
 0x2a6   :  { %vm1396_vm11 = vmor %vm1394_vm10, %vm1395_vm9  ;;  %vm3019_vm9 = vcmp.lt.s32.totalorder %v4988_v8, 43  ;;  %vm2955_vm10 = vcmp.lt.s32.totalorder %v4988_v8, 53 }
 0x2a7   :  { %v1390_v54 = vmul.f32 %v4803_v26, %v1389_v18 }
 0x2a9   :  { %v1391_v46 = vmul.f32 0.5, %v1390_v54 }
 0x2ab   :  { %v1392_v19 = vsub.f32 1.5, %v1391_v46 }
 0x2ad   :  { %v1393_v12 = vmul.f32 %v4803_v26, %v1392_v19 }
 0x2af   :  { %v1397_v59 = vsel %vm1396_vm11, %v4803_v26, %v1393_v12  ;;  %vm2923_vm11 = vcmp.lt.s32.totalorder %v4988_v8, 123 }
 0x2b0   :  { %v1398_v35 = vmul.f32 %v1397_v59, %v1365_v16  ;;  %v6022_v59 = vld [vmem:[%s7850_s1 + $0x24] ss:$8 sm:$0xf] }
 0x2b1   :  { %v1534_v11 = vperm.slane %v6022_v59, 1 }
 0x2b2   :  { %1401 = vperm.xlu2 %4800, %v1398_v35  }
 0x30c   :  { %v1402_v42 = vpop.permute.xlu2 %1401 }
 0x30d   :  { %v1404_v17 = vmul.f32 %v1402_v42, %v1373_v7  ;;  %v1405_v14 = vmul.f32 %v1402_v42, %v1374_v28  ;;  %v1406_v41 = vmul.f32 %v1402_v42, %v1375_v62  ;;  %v1407_v49 = vmul.f32 %v1402_v42, %v1376_v21  ;;  %v5972_v7 = vld [vmem:[%s7850_s1 + $0x40] ss:$8 sm:$0xf] }
 0x30e   :  { %v1601_v62 = vperm.slane %v5967_v45, 0  ;;  %v1633_v21 = vperm.slane %v5972_v7, 0  ;;  %v1635_v37 = vperm.slane %v5972_v7, 2 }
 0x30f   :  { %v1413_v34 = vadd.f32 %v1411_v3, %v1404_v17  ;;  %v1414_v56 = vadd.f32 %v1411_v3, %v1405_v14  ;;  %v1415_v6 = vadd.f32 %v1411_v3, %v1406_v41  ;;  %v1416_v44 = vadd.f32 %v1411_v3, %v1407_v49  ;;  %v6030_v3 = vld [vmem:[%s7850_s1 + $0x26] ss:$8 sm:$0xf] }
 0x310   :  { %v1533_v17 = vperm.slane %v6022_v59, 0 }
 0x311   :  { %v5883_v23 = vmax.f32 %v1413_v34, 0.0  ;;  %v5885_v5 = vmax.f32 %v1414_v56, 0.0  ;;  %v5893_v53 = vmax.f32 %v1415_v6, 0.0  ;;  %v5900_v39 = vmax.f32 %v1416_v44, 0.0 }
 0x312   :  { %v1569_v34 = vperm.slane %v6030_v3, 0 }
 0x313   :  { %1587 = vrot.lane.b32.xlu1 %v5885_v5, %s4817_s29  ;;  %1585 = vrot.lane.b32.xlu0 %v5883_v23, %s4817_s29  ;;  %8030 = vst [vmem:[#allocation3_spill] sm:$0xff] %v5893_v53  ;;  %v6037_v56 = vand.u32 4294901760, %v5883_v23 }
 0x314   :  { %1649 = vrot.lane.b32.xlu2 %v5883_v23, %s4818_s4  ;;  %8031 = vst [vmem:[#allocation10_spill] sm:$0xff] %v5900_v39 }
 0x31b   :  { %1517 = vrot.lane.b32.xlu1 %v5883_v23, %s4819_s30  ;;  %1653 = vrot.lane.b32.xlu0 %v5893_v53, %s4818_s4 }
 0x31c   :  { %1651 = vrot.lane.b32.xlu2 %v5885_v5, %s4818_s4 }
 0x323   :  { %1485 = vrot.lane.b32.xlu1 %v5883_v23, %s4820_s0  ;;  %1523 = vrot.lane.b32.xlu0 %v5900_v39, %s4819_s30 }
 0x324   :  { %1617 = vrot.lane.b32.xlu2 %v5883_v23, %s4821_s17 }
 0x32b   :  { %1453 = vrot.lane.b32.xlu1 %v5883_v23, %s4822_s18  ;;  %1491 = vrot.lane.b32.xlu0 %v5900_v39, %s4820_s0 }
 0x32c   :  { %1619 = vrot.lane.b32.xlu2 %v5885_v5, %s4821_s17 }
 0x333   :  { %1427 = vrot.lane.b32.xlu1 %v5900_v39, %s4823_s19  ;;  %1459 = vrot.lane.b32.xlu0 %v5900_v39, %s4822_s18 }
 0x334   :  { %1553 = vrot.lane.b32.xlu2 %v5883_v23, %s4824_s20 }
 0x33b   :  { %1455 = vrot.lane.b32.xlu1 %v5885_v5, %s4822_s18  ;;  %1519 = vrot.lane.b32.xlu0 %v5885_v5, %s4819_s30 }
 0x33c   :  { %1555 = vrot.lane.b32.xlu2 %v5885_v5, %s4824_s20 }
 0x343   :  { %1623 = vrot.lane.b32.xlu1 %v5900_v39, %s4821_s17  ;;  %1423 = vrot.lane.b32.xlu0 %v5885_v5, %s4823_s19 }
 0x344   :  { %1621 = vrot.lane.b32.xlu2 %v5893_v53, %s4821_s17 }
 0x34b   :  { %1521 = vrot.lane.b32.xlu1 %v5893_v53, %s4819_s30  ;;  %1591 = vrot.lane.b32.xlu0 %v5900_v39, %s4817_s29 }
 0x34c   :  { %1589 = vrot.lane.b32.xlu2 %v5893_v53, %s4817_s29 }
 0x353   :  { %1425 = vrot.lane.b32.xlu1 %v5893_v53, %s4823_s19  ;;  %1489 = vrot.lane.b32.xlu0 %v5893_v53, %s4820_s0 }
 0x354   :  { %1557 = vrot.lane.b32.xlu2 %v5893_v53, %s4824_s20 }
 0x35c   :  { %1421 = vrot.lane.b32.xlu2 %v5883_v23, %s4823_s19 }
 0x364   :  { %1487 = vrot.lane.b32.xlu2 %v5885_v5, %s4820_s0 }
 0x36c   :  { %1655 = vrot.lane.b32.xlu2 %v5900_v39, %s4818_s4 }
 0x36e   :  { %v5932_v58 = vpop.permute.xlu2 %1649 }
 0x36f   :  { %8032 = vst [vmem:[#allocation14_spill] sm:$0xff] %v5932_v58 }
 0x374   :  { %1559 = vrot.lane.b32.xlu2 %v5900_v39, %s4824_s20 }
 0x376   :  { %v5942_v61 = vpop.permute.xlu2 %1651 }
 0x377   :  { %v1660_v52 = vsel %vm1657_vm12, %v5932_v58, %v5942_v61 }
 0x378   :  { %v1673_v48 = vmul.f32 %v1665_v40, %v1660_v52 }
 0x37a   :  { %v5948_v20 = vand.u32 4294901760, %v1673_v48 }
 0x37c   :  { %v5951_v60 = vsub.f32 %v1673_v48, %v5948_v20  ;;  %1457 = vrot.lane.b32.xlu2 %v5893_v53, %s4822_s18  ;;  %1735 = vmatpush.msra.mxu0 %v5948_v20 }
 0x37d   :  { %1875 = vmatpush.msra.mxu3 %v5948_v20 }
 0x37e   :  { %v7905_v29 = vand.u32 4294901760, %v5951_v60  ;;  %1836 = vmatpush.msra.mxu2 %v5951_v60  ;;  %v5959_v15 = vpop.permute.xlu2 %1617 }
 0x380   :  { %v1771_v43 = vsub.f32 %v5951_v60, %v7905_v29 }
 0x382   :  { %v1772_v28 = vand.u32 4294901760, %v1771_v43  ;;  %v6056_v43 = vld [vmem:[%s7850_s1 + $0x23] ss:$8 sm:$0xf] }
 0x384   :  { %1773 = vmatpush.msra.mxu1 %v1772_v28  ;;  %v6060_v28 = vsub.f32 %v5883_v23, %v6037_v56 }
 0x385   :  { %v5978_v24 = vpop.permute.xlu1 %1587  ;;  %v5980_v27 = vpop.permute.xlu0 %1585 }
 0x386   :  { %v1596_v50 = vsel %vm1593_vm13, %v5980_v27, %v5978_v24  ;;  %v5986_v4 = vpop.permute.xlu2 %1619  ;;  %v7903_v23 = vand.u32 4294901760, %v6060_v28 }
 0x387   :  { %v1609_v31 = vmul.f32 %v1601_v62, %v1596_v50  ;;  %v1628_v36 = vsel %vm1625_vm14, %v5959_v15, %v5986_v4  ;;  %v1501_v50 = vperm.slane %v6056_v43, 0 }
 0x388   :  { %v1641_v10 = vmul.f32 %v1633_v21, %v1628_v36 }
 0x389   :  { %v5992_v55 = vand.u32 4294901760, %v1609_v31 }
 0x38a   :  { %v5994_v63 = vand.u32 4294901760, %v1641_v10 }
 0x38b   :  { %v5997_v13 = vsub.f32 %v1609_v31, %v5992_v55 }
 0x38c   :  { %1737 = vmatpush.msra.mxu0 %v5994_v63  ;;  %1877 = vmatpush.msra.mxu3 %v5994_v63  ;;  %v6002_v26 = vsub.f32 %v1641_v10, %v5994_v63 }
 0x38d   :  { %v6004_v18 = vpop.permute.xlu1 %1517  ;;  %v6006_v54 = vpop.permute.xlu0 %1653  ;;  %v7902_v46 = vand.u32 4294901760, %v5997_v13 }
 0x38e   :  { %8034 = vst [vmem:[#allocation20_spill] sm:$0xff] %v6006_v54  ;;  %1739 = vmatpush.msra.mxu0 %v5992_v55  ;;  %1839 = vmatpush.msra.mxu2 %v6002_v26  ;;  %v6011_v19 = vpop.permute.xlu2 %1553  ;;  %v7904_v16 = vand.u32 4294901760, %v6002_v26 }
 0x38f   :  { %1879 = vmatpush.msra.mxu3 %v5992_v55  ;;  %v1783_v35 = vsub.f32 %v5997_v13, %v7902_v46 }
 0x390   :  { %1842 = vmatpush.msra.mxu2 %v5997_v13  ;;  %v1777_v12 = vsub.f32 %v6002_v26, %v7904_v16 }
 0x391   :  { %v1784_v14 = vand.u32 4294901760, %v1783_v35 }
 0x392   :  { %v1778_v42 = vand.u32 4294901760, %v1777_v12 }
 0x394   :  { %1779 = vmatpush.msra.mxu1 %v1778_v42 }
 0x395   :  { %v6039_v41 = vpop.permute.xlu1 %1485  ;;  %v6041_v6 = vpop.permute.xlu0 %1523 }
 0x396   :  { %v1529_v49 = vsel %vm1525_vm15, %v6041_v6, %v6004_v18  ;;  %1785 = vmatpush.msra.mxu1 %v1784_v14  ;;  %v6047_v44 = vpop.permute.xlu2 %1555 }
 0x397   :  { %v1541_v40 = vmul.f32 %v1533_v17, %v1529_v49  ;;  %v1564_v52 = vsel %vm1561_vm0, %v6011_v19, %v6047_v44 }
 0x398   :  { %v1577_v48 = vmul.f32 %v1569_v34, %v1564_v52  ;;  %v1795_v52 = vsub.f32 %v6060_v28, %v7903_v23 }
 0x399   :  { %v6062_v62 = vand.u32 4294901760, %v1541_v40 }
 0x39a   :  { %v6064_v21 = vand.u32 4294901760, %v1577_v48  ;;  %v1796_v29 = vand.u32 4294901760, %v1795_v52 }
 0x39b   :  { %v6069_v31 = vsub.f32 %v1541_v40, %v6062_v62  ;;  %v6100_v40 = vld [vmem:[%s7850_s1 + $0x22] ss:$8 sm:$0xf] }
 0x39c   :  { %1741 = vmatpush.msra.mxu0 %v6064_v21  ;;  %1881 = vmatpush.msra.mxu3 %v6064_v21  ;;  %v6074_v36 = vsub.f32 %v1577_v48, %v6064_v21  ;;  %8035 = vst [vmem:[#allocation24_spill] sm:$0xff] %v6100_v40  ;;  %v1666_v48 = vperm.slane %v5937_v47, 1  ;;  %v1469_v23 = vperm.slane %v6100_v40, 0 }
 0x39d   :  { %v6077_v10 = vpop.permute.xlu1 %1453  ;;  %v6079_v12 = vpop.permute.xlu0 %1491  ;;  %v7906_v14 = vand.u32 4294901760, %v6069_v31 }
 0x39e   :  { %v1497_v35 = vsel %vm1493_vm1, %v6079_v12, %v6039_v41  ;;  %1845 = vmatpush.msra.mxu2 %v6074_v36  ;;  %v6086_v42 = vpop.permute.xlu2 %1621  ;;  %1743 = vmatpush.msra.mxu0 %v6037_v56  ;;  %v7901_v17 = vand.u32 4294901760, %v6074_v36 }
 0x39f   :  { %v1509_v34 = vmul.f32 %v1501_v50, %v1497_v35  ;;  %1883 = vmatpush.msra.mxu3 %v6037_v56  ;;  %v1659_v35 = vsel %vm1657_vm12, %v5942_v61, %v6006_v54  ;;  %v1801_v46 = vsub.f32 %v6069_v31, %v7906_v14  ;;  %v1634_v61 = vperm.slane %v5972_v7, 1 }
 0x3a0   :  { %1745 = vmatpush.msra.mxu0 %v6062_v62  ;;  %1848 = vmatpush.msra.mxu2 %v6060_v28  ;;  %v1789_v49 = vsub.f32 %v6074_v36, %v7901_v17  ;;  %v1627_v14 = vsel %vm1625_vm14, %v5986_v4, %v6086_v42 }
 0x3a1   :  { %v6106_v50 = vand.u32 4294901760, %v1509_v34  ;;  %1885 = vmatpush.msra.mxu3 %v6062_v62  ;;  %v1802_v52 = vand.u32 4294901760, %v1801_v46 }
 0x3a2   :  { %1851 = vmatpush.msra.mxu2 %v6069_v31  ;;  %v1790_v17 = vand.u32 4294901760, %v1789_v49  ;;  %v1674_v49 = vmul.f32 %v1666_v48, %v1659_v35  ;;  %v1642_v35 = vmul.f32 %v1634_v61, %v1627_v14  ;;  %v1570_v61 = vperm.slane %v6030_v3, 1 }
 0x3a3   :  { %8036 = vst [vmem:[#allocation25_spill] sm:$0xff] %v6106_v50  ;;  %1747 = vmatpush.msra.mxu0 %v6106_v50  ;;  %1887 = vmatpush.msra.mxu3 %v6106_v50  ;;  %v6122_v16 = vsub.f32 %v1509_v34, %v6106_v50 }
 0x3a4   :  { %1791 = vmatpush.msra.mxu1 %v1790_v17  ;;  %v6145_v38 = vand.u32 4294901760, %v1674_v49 }
 0x3a5   :  { %v6129_v25 = vpop.permute.xlu1 %1427  ;;  %v6131_v1 = vpop.permute.xlu0 %1459  ;;  %1854 = vmatpush.msra.mxu2 %v6122_v16  ;;  %v7915_v0 = vand.u32 4294901760, %v6122_v16 }
 0x3a6   :  { %8037 = vst [vmem:[#allocation26_spill] sm:$0xff] %v6131_v1  ;;  %v1465_v17 = vsel %vm1461_vm2, %v6131_v1, %v6077_v10  ;;  %v6139_v34 = vpop.permute.xlu2 %1589  ;;  %1797 = vmatpush.msra.mxu1 %v1796_v29 }
 0x3a7   :  { %v1477_v48 = vmul.f32 %v1469_v23, %v1465_v17  ;;  %v1807_v4 = vsub.f32 %v6122_v16, %v7915_v0  ;;  %v1595_v30 = vsel %vm1593_vm13, %v5978_v24, %v6139_v34  ;;  %v6157_v23 = vand.u32 4294901760, %v1642_v35 }
 0x3a8   :  { %1803 = vmatpush.msra.mxu1 %v1802_v52  ;;  %v1610_v14 = vmul.f32 %v1602_v2, %v1595_v30  ;;  %v6162_v17 = vsub.f32 %v1674_v49, %v6145_v38  ;;  %v6180_v49 = vand.u32 4294901760, %v5885_v5 }
 0x3a9   :  { %v6147_v57 = vand.u32 4294901760, %v1477_v48  ;;  %v1808_v29 = vand.u32 4294901760, %v1807_v4 }
 0x3aa   :  { %v6185_v0 = vand.u32 4294901760, %v1610_v14  ;;  %v8041_v53 = vand.u32 4294901760, %v6162_v17 }
 0x3ab   :  { %8038 = vst [vmem:[#allocation27_spill] sm:$0xff] %v6147_v57  ;;  %1749 = vmatpush.msra.mxu0 %v6147_v57  ;;  %1809 = vmatpush.msra.mxu1 %v1808_v29  ;;  %v6155_v46 = vsub.f32 %v1477_v48, %v6147_v57  ;;  %v6183_v29 = vsub.f32 %v1642_v35, %v6157_v23 }
 0x3ac   :  { %1889 = vmatpush.msra.mxu3 %v6147_v57  ;;  %v2021_v58 = vsub.f32 %v6162_v17, %v8041_v53 }
 0x3ad   :  { %v6164_v52 = vpop.permute.xlu1 %1455  ;;  %v6166_v24 = vpop.permute.xlu0 %1519  ;;  %1857 = vmatpush.msra.mxu2 %v6155_v46  ;;  %v7919_v4 = vand.u32 4294901760, %v6155_v46  ;;  %v8044_v57 = vand.u32 4294901760, %v6183_v29 }
 0x3ae   :  { %8039 = vst [vmem:[#allocation28_spill] sm:$0xff] %v6164_v52  ;;  %v6170_v48 = vpop.permute.xlu2 %1557 }
 0x3af   :  { %v1563_v30 = vsel %vm1561_vm0, %v6047_v44, %v6170_v48  ;;  %v1813_v2 = vsub.f32 %v6155_v46, %v7919_v4  ;;  %v1528_v44 = vsel %vm1525_vm15, %v6004_v18, %v6166_v24  ;;  %v6196_v4 = vld [vmem:[%s7850_s1 + $0x21] ss:$8 sm:$0xf] }
 0x3b0   :  { %v1578_v9 = vmul.f32 %v1570_v61, %v1563_v30  ;;  %v1636_v61 = vperm.slane %v5972_v7, 3  ;;  %v6205_v30 = vsub.f32 %v5885_v5, %v6180_v49  ;;  %v1681_v18 = vld [vmem:[%s7855_s6] sm:$0xff]  ;;  %v1542_v22 = vmul.f32 %v1534_v11, %v1528_v44 }
 0x3b1   :  { %v1814_v33 = vand.u32 4294901760, %v1813_v2  ;;  %v6211_v2 = vsub.f32 %v1610_v14, %v6185_v0  ;;  %v1470_v7 = vperm.slane %v6100_v40, 1  ;;  %v1464_v11 = vsel %vm1461_vm2, %v6077_v10, %v6164_v52 }
 0x3b2   :  { %v6198_v35 = vand.u32 4294901760, %v1578_v9  ;;  %v1725_v51 = vsel %vm361_vm6, %v1681_v18, 0  ;;  %v6243_v52 = vand.u32 4294901760, %v1542_v22 }
 0x3b3   :  { %1815 = vmatpush.msra.mxu1 %v1814_v33  ;;  %v1437_v33 = vperm.slane %v6196_v4, 0  ;;  %v1478_v18 = vmul.f32 %v1470_v7, %v1464_v11  ;;  %v1604_v7 = vperm.slane %v5967_v45, 3  ;;  %v1502_v11 = vperm.slane %v6056_v43, 1 }
 0x3b4   :  { %v6217_v32 = vsub.f32 %v1578_v9, %v6198_v35 }
 0x3b5   :  { %v1624_v39 = vpop.permute.xlu1 %1623  ;;  %v6219_v5 = vpop.permute.xlu0 %1423 }
 0x3b6   :  { %8040 = vst [vmem:[#allocation29_spill] sm:$0xff] %v6219_v5  ;;  %v1626_v14 = vsel %vm1625_vm14, %v6086_v42, %v1624_v39  ;;  %v1629_v9 = vsel %vm1625_vm14, %v1624_v39, %v5959_v15  ;;  %v1422_v44 = vpop.permute.xlu2 %1421  ;;  %v2027_v39 = vsub.f32 %v6183_v29, %v8044_v57  ;;  %v1536_v57 = vperm.slane %v6022_v59, 3 }
 0x3b7   :  { %v6235_v1 = vmul.f32 %v1635_v37, %v1626_v14  ;;  %v6237_v54 = vmul.f32 %v1636_v61, %v1629_v9  ;;  %v1433_v53 = vsel %vm1429_vm3, %v6129_v25, %v1422_v44  ;;  %v1438_v37 = vperm.slane %v6196_v4, 1 }
 0x3b8   :  { %v1445_v42 = vmul.f32 %v1437_v33, %v1433_v53  ;;  %v6251_v14 = vand.u32 4294901760, %v1725_v51  ;;  %v1432_v9 = vsel %vm1429_vm3, %v1422_v44, %v6219_v5  ;;  %v2022_v33 = vand.u32 4294901760, %v2021_v58 }
 0x3b9   :  { %8042 = vst [vmem:[#allocation30_spill] sm:$0xff] %v6235_v1  ;;  %v1535_v53 = vperm.slane %v6022_v59, 2  ;;  %v1603_v15 = vperm.slane %v5967_v45, 2  ;;  %v6264_v61 = vsub.f32 %v1542_v22, %v6243_v52  ;;  %v2028_v58 = vand.u32 4294901760, %v2027_v39 }
 0x3ba   :  { %8043 = vst [vmem:[#allocation31_spill] sm:$0xff] %v6237_v54  ;;  %v6256_v10 = vand.u32 4294901760, %v1445_v42  ;;  %v8045_v54 = vand.u32 4294901760, %v6211_v2  ;;  %v6274_v5 = vand.u32 4294901760, %v1478_v18  ;;  %v1446_v45 = vmul.f32 %v1438_v37, %v1432_v9 }
 0x3bb   :  { %v8046_v1 = vand.u32 4294901760, %v5951_v60  ;;  %v8047_v40 = vand.u32 4294901760, %v6217_v32  ;;  %vm2823_vm14 = vcmp.lt.s32.totalorder %v4988_v8, 80 }
 0x3bc   :  { %1751 = vmatpush.msra.mxu0 %v6256_v10  ;;  %1891 = vmatpush.msra.mxu3 %v6256_v10  ;;  %v6269_v44 = vsub.f32 %v1445_v42, %v6256_v10  ;;  %v2033_v59 = vsub.f32 %v6211_v2, %v8045_v54  ;;  %v6282_v42 = vsub.f32 %v1725_v51, %v6251_v14 }
 0x3bd   :  { %v1522_v22 = vpop.permute.xlu1 %1521  ;;  %v1592_v47 = vpop.permute.xlu0 %1591  ;;  %v2039_v50 = vsub.f32 %v6217_v32, %v8047_v40 }
 0x3be   :  { %1909 = vmatpush.msrb.mxu0 %v8046_v1  ;;  %2023 = vmatpush.msrb.mxu3 %v2022_v33  ;;  %v1526_v54 = vsel %vm1525_vm15, %v1522_v22, %v6041_v6  ;;  %v1527_v39 = vsel %vm1525_vm15, %v6166_v24, %v1522_v22  ;;  %v1594_v1 = vsel %vm1593_vm13, %v6139_v34, %v1592_v47  ;;  %v1488_v40 = vpop.permute.xlu2 %1487  ;;  %v8048_v24 = vand.u32 4294901760, %v6002_v26 }
 0x3bf   :  { %v1597_v60 = vsel %vm1593_vm13, %v1592_v47, %v5980_v27  ;;  %1860 = vmatpush.msra.mxu2 %v6269_v44  ;;  %v6297_v51 = vmul.f32 %v1535_v53, %v1527_v39  ;;  %v6299_v37 = vmul.f32 %v1536_v57, %v1526_v54  ;;  %v6301_v6 = vmul.f32 %v1603_v15, %v1594_v1  ;;  %v1718_v1 = vld [vmem:[%s7856_s7] sm:$0xff] }
 0x3c0   :  { %v6303_v9 = vmul.f32 %v1604_v7, %v1597_v60  ;;  %1913 = vmatpush.msrb.mxu0 %v8048_v24  ;;  %v1496_v34 = vsel %vm1493_vm1, %v6039_v41, %v1488_v40  ;;  %2029 = vmatpush.msrb.mxu3 %v2028_v58  ;;  %v2034_v47 = vand.u32 4294901760, %v2033_v59  ;;  %v1818_v27 = vand.u32 4294901760, %v6269_v44 }
 0x3c1   :  { %1985 = vmatpush.msrb.mxu2 %v6145_v38  ;;  %v2050_v33 = vand.u32 4294901760, %v6264_v61  ;;  %v8049_v15 = vand.u32 4294901760, %v5997_v13  ;;  %v8050_v53 = vand.u32 4294901760, %v6205_v30  ;;  %v6319_v57 = vand.u32 4294901760, %v6282_v42  ;;  %1721 = vperm.xlu0 %4801, %v1718_v1  }
 0x3c2   :  { %1863 = vmatmul.f32.vlgmr.msra.gmra.mxu2 %v6282_v42  ;;  %v6322_v41 = vand.u32 4294901760, %v1446_v45  ;;  %v1510_v7 = vmul.f32 %v1502_v11, %v1496_v34  ;;  %2035 = vmatpush.msrb.mxu3 %v2034_v47  ;;  %v2040_v58 = vand.u32 4294901760, %v2039_v50  ;;  %v1819_v13 = vsub.f32 %v6269_v44, %v1818_v27 }
 0x3c3   :  { %1917 = vmatpush.msrb.mxu0 %v8049_v15  ;;  %v2045_v26 = vsub.f32 %v6205_v30, %v8050_v53  ;;  %1987 = vmatpush.msrb.mxu2 %v6157_v23  ;;  %v8051_v59 = vand.u32 4294901760, %v6074_v36  ;;  %v1440_v22 = vperm.slane %v6196_v4, 3  ;;  %v1504_v54 = vperm.slane %v6056_v43, 3 }
 0x3c4   :  { %1895 = vmatmul.f32.vlgmr.msra.gmra.mxu3 %v6319_v57  ;;  %v6334_v39 = vsub.f32 %v1478_v18, %v6274_v5  ;;  %v6336_v11 = vand.u32 4294901760, %v1510_v7  ;;  %v1820_v50 = vand.u32 4294901760, %v1819_v13  ;;  %v2051_v36 = vsub.f32 %v6264_v61, %v2050_v33 }
 0x3c5   :  { %1921 = vmatpush.msrb.mxu0 %v8051_v59  ;;  %1989 = vmatpush.msrb.mxu2 %v6185_v0  ;;  %v8052_v60 = vand.u32 4294901760, %v6060_v28  ;;  %v2046_v24 = vand.u32 4294901760, %v2045_v26  ;;  %v6347_v18 = vpop.permute.xlu1 %1425  ;;  %v1503_v34 = vperm.slane %v6056_v43, 2  ;;  %v1490_v47 = vpop.permute.xlu0 %1489  ;;  %v6351_v15 = vsub.f32 %v1446_v45, %v6322_v41 }
 0x3c6   :  { %2041 = vmatpush.msrb.mxu3 %v2040_v58  ;;  %v6354_v53 = vsub.f32 %v1510_v7, %v6336_v11  ;;  %1821 = vmatpush.msra.mxu1 %v1820_v50  ;;  %v1430_v28 = vsel %vm1429_vm3, %v6347_v18, %v6129_v25  ;;  %v6361_v26 = vpop.permute.xlu2 %1655  ;;  %v1494_v45 = vsel %vm1493_vm1, %v1490_v47, %v6079_v12  ;;  %v8053_v25 = vand.u32 4294901760, %v6069_v31 }
 0x3c7   :  { %1925 = vmatpush.msrb.mxu0 %v8052_v60  ;;  %1991 = vmatpush.msrb.mxu2 %v6198_v35  ;;  %v6364_v43 = vmul.f32 %v1440_v22, %v1430_v28  ;;  %v1755_v7 = vsub.f32 %v6282_v42, %v6319_v57  ;;  %v1495_v58 = vsel %vm1493_vm1, %v1488_v40, %v1490_v47  ;;  %v2052_v59 = vand.u32 4294901760, %v2051_v36 }
 0x3c8   :  { %1955 = vmatpush.msrb.mxu1 %v5948_v20  ;;  %2047 = vmatpush.msrb.mxu3 %v2046_v24  ;;  %v6373_v13 = vmul.f32 %v1504_v54, %v1494_v45  ;;  %v2062_v20 = vand.u32 4294901760, %v6334_v39  ;;  %v6378_v22 = vmul.f32 %v1503_v34, %v1495_v58  ;;  %v8054_v12 = vand.u32 4294901760, %v6122_v16  ;;  %v8058_v34 = vld [vmem:[#allocation24_spill] sm:$0xff]  ;;  %v8061_v58 = vld [vmem:[#allocation27_spill] sm:$0xff] }
 0x3c9   :  { %1929 = vmatpush.msrb.mxu0 %v8053_v25  ;;  %1993 = vmatpush.msrb.mxu2 %v6180_v49  ;;  %v2056_v40 = vand.u32 4294901760, %v6354_v53  ;;  %v2068_v54 = vand.u32 4294901760, %v6351_v15  ;;  %v1571_v31 = vperm.slane %v6030_v3, 2  ;;  %v8055_v50 = vand.u32 4294901760, %v6155_v46  ;;  %v8062_v25 = vld [vmem:[#allocation20_spill] sm:$0xff] }
 0x3ca   :  { %1957 = vmatpush.msrb.mxu1 %v5994_v63  ;;  %2053 = vmatpush.msrb.mxu3 %v2052_v59  ;;  %v1572_v16 = vperm.slane %v6030_v3, 3  ;;  %v6395_v36 = vand.u32 4294901760, %v1755_v7  ;;  %v2063_v1 = vsub.f32 %v6334_v39, %v2062_v20  ;;  %v1471_v47 = vperm.slane %v8058_v34, 2 }
 0x3cb   :  { %1933 = vmatpush.msrb.mxu0 %v8054_v12  ;;  %1995 = vmatpush.msrb.mxu2 %v6243_v52  ;;  %v2057_v63 = vsub.f32 %v6354_v53, %v2056_v40  ;;  %v2069_v3 = vsub.f32 %v6351_v15, %v2068_v54  ;;  %v1472_v28 = vperm.slane %v8058_v34, 3  ;;  %v8060_v7 = vand.u32 4294901760, %v6183_v29  ;;  %v8063_v12 = vld [vmem:[#allocation26_spill] sm:$0xff] }
 0x3cc   :  { %1959 = vmatpush.msrb.mxu1 %v5992_v55  ;;  %1757 = vmatmul.f32.vlgmr.msra.gmra.mxu0 %v6395_v36  ;;  %v2064_v24 = vand.u32 4294901760, %v2063_v1  ;;  %v1658_v59 = vsel %vm1657_vm12, %v8062_v25, %v6361_v26  ;;  %vm2791_vm13 = vcmp.lt.s32.totalorder %v4988_v8, 85  ;;  %vm4148_vm15 = vcmask 64512  }
 0x3cd   :  { %1937 = vmatpush.msrb.mxu0 %v8055_v50  ;;  %1823 = vmatmul.f32.vlgmr.msra.gmra.mxu1 %v6251_v14  ;;  %v2058_v55 = vand.u32 4294901760, %v2057_v63  ;;  %v8064_v50 = vld [vmem:[#allocation28_spill] sm:$0xff]  ;;  %v8065_v63 = vand.u32 4294901760, %v6211_v2 }
 0x3ce   :  { %1961 = vmatpush.msrb.mxu1 %v6064_v21  ;;  %1997 = vmatpush.msrb.mxu2 %v6336_v11  ;;  %v1560_v46 = vpop.permute.xlu2 %1559 }
 0x3cf   :  { %1941 = vmatpush.msrb.mxu0 %v1818_v27  ;;  %v1562_v60 = vsel %vm1561_vm0, %v6170_v48, %v1560_v46  ;;  %v1565_v21 = vsel %vm1561_vm0, %v1560_v46, %v6011_v19  ;;  %2059 = vmatpush.msrb.mxu3 %v2058_v55  ;;  %v8056_v19 = vand.u32 4294901760, %v6162_v17  ;;  %v8057_v48 = vld [vmem:[#allocation25_spill] sm:$0xff]  ;;  %v8066_v46 = vand.u32 4294901760, %v6217_v32 }
 0x3d0   :  { %1963 = vmatpush.msrb.mxu1 %v6037_v56  ;;  %1999 = vmatpush.msrb.mxu2 %v6274_v5  ;;  %v6416_v44 = vmul.f32 %v1571_v31, %v1562_v60  ;;  %v6418_v27 = vmul.f32 %v1572_v16, %v1565_v21  ;;  %v2070_v56 = vand.u32 4294901760, %v2069_v3 }
 0x3d1   :  { %2086 = vmatpush.msra.mxu0 %v6162_v17  ;;  %2065 = vmatpush.msrb.mxu3 %v2064_v24 }
 0x3d2   :  { %1965 = vmatpush.msrb.mxu1 %v6062_v62  ;;  %2001 = vmatpush.msrb.mxu2 %v6322_v41  ;;  %v8059_v62 = vld [vmem:[#allocation4_spill] sm:$0xff] }
 0x3d3   :  { %2089 = vmatpush.msra.mxu0 %v6183_v29  ;;  %2071 = vmatpush.msrb.mxu3 %v2070_v56  ;;  %v1667_v45 = vperm.slane %v8059_v62, 2 }
 0x3d4   :  { %2159 = vmatpush.msra.mxu2 %v8056_v19  ;;  %1967 = vmatpush.msrb.mxu1 %v8057_v48 }
 0x3d5   :  { %2205 = vmatpush.msra.mxu3 %v6145_v38  ;;  %2092 = vmatpush.msra.mxu0 %v6211_v2  ;;  %v1675_v55 = vmul.f32 %v1667_v45, %v1658_v59  ;;  %v8067_v2 = vand.u32 4294901760, %v6205_v30 }
 0x3d6   :  { %2163 = vmatpush.msra.mxu2 %v8060_v7  ;;  %1969 = vmatpush.msrb.mxu1 %v8061_v58  ;;  %v1458_v17 = vpop.permute.xlu2 %1457  ;;  %v6587_v58 = vand.u32 4294901760, %v6303_v9 }
 0x3d7   :  { %2207 = vmatpush.msra.mxu3 %v6157_v23  ;;  %2095 = vmatpush.msra.mxu0 %v6217_v32  ;;  %v1462_v31 = vsel %vm1461_vm2, %v1458_v17, %v8063_v12  ;;  %v1463_v29 = vsel %vm1461_vm2, %v8064_v50, %v1458_v17  ;;  %v8068_v32 = vld [vmem:[#allocation30_spill] sm:$0xff] }
 0x3d8   :  { %2167 = vmatpush.msra.mxu2 %v8065_v63  ;;  %1971 = vmatpush.msrb.mxu1 %v6256_v10  ;;  %v6451_v16 = vmul.f32 %v1471_v47, %v1463_v29  ;;  %v6453_v1 = vmul.f32 %v1472_v28, %v1462_v31  ;;  %v6467_v10 = vand.u32 4294901760, %v1675_v55  ;;  %v6608_v31 = vand.u32 4294901760, %v6418_v27 }
 0x3d9   :  { %2209 = vmatpush.msra.mxu3 %v6185_v0  ;;  %2098 = vmatpush.msra.mxu0 %v6205_v30  ;;  %v1668_v30 = vperm.slane %v8059_v62, 3 }
 0x3da   :  { %2125 = vmatpush.msra.mxu1 %v6145_v38  ;;  %2171 = vmatpush.msra.mxu2 %v8066_v46  ;;  %v6475_v38 = vand.u32 4294901760, %v8068_v32  ;;  %v6557_v56 = vand.u32 4294901760, %v6451_v16 }
 0x3db   :  { %2211 = vmatpush.msra.mxu3 %v6198_v35  ;;  %2101 = vmatpush.msra.mxu0 %v6264_v61 }
 0x3dc   :  { %2127 = vmatpush.msra.mxu1 %v6157_v23  ;;  %2175 = vmatpush.msra.mxu2 %v8067_v2  ;;  %v6486_v23 = vsub.f32 %v1675_v55, %v6467_v10  ;;  %v6622_v55 = vsub.f32 %v6303_v9, %v6587_v58  ;;  %v8073_v2 = vld [vmem:[#allocation10_spill] sm:$0xff] }
 0x3dd   :  { %2213 = vmatpush.msra.mxu3 %v6180_v49  ;;  %2104 = vmatpush.msra.mxu0 %v6354_v53  ;;  %v6505_v53 = vsub.f32 %v8068_v32, %v6475_v38  ;;  %v6628_v32 = vand.u32 4294901760, %v8073_v2 }
 0x3de   :  { %2129 = vmatpush.msra.mxu1 %v6185_v0  ;;  %2179 = vmatpush.msra.mxu2 %v2050_v33  ;;  %v6483_v0 = vand.u32 4294901760, %v6301_v6  ;;  %v6498_v33 = vand.u32 4294901760, %v6416_v44  ;;  %v2270_v60 = vand.u32 4294901760, %v6486_v23 }
 0x3df   :  { %2007 = vmatmul.f32.vlgmr.msrb.gmra.mxu2 %v6395_v36  ;;  %2215 = vmatpush.msra.mxu3 %v6243_v52 }
 0x3e0   :  { %1943 = vmatmul.f32.vlgmr.msrb.gmra.mxu0 %v6251_v14  ;;  %2131 = vmatpush.msra.mxu1 %v6198_v35  ;;  %v8069_v35 = vld [vmem:[#allocation14_spill] sm:$0xff] }
 0x3e1   :  { %2107 = vmatpush.msra.mxu0 %v6334_v39  ;;  %2183 = vmatpush.msra.mxu2 %v2056_v40  ;;  %v1661_v61 = vsel %vm1657_vm12, %v6361_v26, %v8069_v35  ;;  %v8070_v40 = vld [vmem:[#allocation3_spill] sm:$0xff]  ;;  %v1439_v26 = vperm.slane %v6196_v4, 2  ;;  %v8071_v39 = vld [vmem:[#allocation29_spill] sm:$0xff]  ;;  %v6528_v4 = vand.u32 4294901760, %v6297_v51  ;;  %vm2887_vm12 = vcmp.lt.s32.totalorder %v4988_v8, 5 }
 0x3e2   :  { %2073 = vmatmul.f32.vlgmr.msrb.gmra.mxu3 %v6251_v14  ;;  %1973 = vmatmul.f32.vlgmr.msrb.gmra.mxu1 %v6251_v14  ;;  %v6510_v3 = vand.u32 4294901760, %v8070_v40  ;;  %v1676_v21 = vmul.f32 %v1668_v30, %v1661_v61  ;;  %v6631_v30 = vand.u32 4294901760, %v6299_v37 }
 0x3e3   :  { %2217 = vmatpush.msra.mxu3 %v6336_v11  ;;  %2110 = vmatpush.msra.mxu0 %v6351_v15  ;;  %v6566_v48 = vsub.f32 %v6297_v51, %v6528_v4 }
 0x3e4   :  { %2133 = vmatpush.msra.mxu1 %v6180_v49  ;;  %2187 = vmatpush.msra.mxu2 %v2062_v20  ;;  %v6519_v49 = vsub.f32 %v6301_v6, %v6483_v0  ;;  %v1431_v20 = vsel %vm1429_vm3, %v8071_v39, %v6347_v18  ;;  %v2276_v6 = vand.u32 4294901760, %v6505_v53  ;;  %v6541_v18 = vsub.f32 %v8070_v40, %v6510_v3 }
 0x3e5   :  { %2219 = vmatpush.msra.mxu3 %v6274_v5  ;;  %2235 = vmatpush.msrb.mxu0 %v6467_v10  ;;  %v1447_v15 = vmul.f32 %v1439_v26, %v1431_v20  ;;  %v6552_v24 = vand.u32 4294901760, %v1676_v21  ;;  %v2300_v59 = vand.u32 4294901760, %v6566_v48  ;;  %v6640_v40 = vsub.f32 %v6418_v27, %v6608_v31 }
 0x3e6   :  { %2135 = vmatpush.msra.mxu1 %v6243_v52  ;;  %2191 = vmatpush.msra.mxu2 %v2068_v54  ;;  %v6534_v52 = vsub.f32 %v6416_v44, %v6498_v33  ;;  %v6544_v54 = vand.u32 4294901760, %v6378_v22  ;;  %v2282_v44 = vand.u32 4294901760, %v6519_v49  ;;  %v2277_v19 = vsub.f32 %v6505_v53, %v2276_v6 }
 0x3e7   :  { %2221 = vmatpush.msra.mxu3 %v6322_v41  ;;  %2237 = vmatpush.msrb.mxu0 %v6475_v38  ;;  %v2294_v28 = vand.u32 4294901760, %v6541_v18  ;;  %v6575_v62 = vand.u32 4294901760, %v1447_v15  ;;  %v6590_v17 = vsub.f32 %v1676_v21, %v6552_v24  ;;  %v2301_v9 = vsub.f32 %v6566_v48, %v2300_v59 }
 0x3e8   :  { %2336 = vmatpush.msrb.mxu2 %v6486_v23  ;;  %2137 = vmatpush.msra.mxu1 %v6336_v11  ;;  %v2271_v11 = vsub.f32 %v6486_v23, %v2270_v60  ;;  %v2288_v34 = vand.u32 4294901760, %v6534_v52  ;;  %v2283_v51 = vsub.f32 %v6519_v49, %v2282_v44  ;;  %v6584_v7 = vsub.f32 %v6378_v22, %v6544_v54 }
 0x3e9   :  { %2375 = vmatpush.msrb.mxu3 %v6467_v10  ;;  %2193 = vmatmul.f32.vlgmr.msra.gmra.mxu2 %v6251_v14  ;;  %v6600_v22 = vsub.f32 %v6451_v16, %v6557_v56  ;;  %v2295_v29 = vsub.f32 %v6541_v18, %v2294_v28  ;;  %v6617_v63 = vsub.f32 %v1447_v15, %v6575_v62  ;;  %v2520_v46 = vand.u32 4294901760, %v6590_v17 }
 0x3ea   :  { %2239 = vmatpush.msrb.mxu0 %v6483_v0  ;;  %2339 = vmatpush.msrb.mxu2 %v6505_v53  ;;  %v2272_v45 = vand.u32 4294901760, %v2271_v11  ;;  %v2289_v25 = vsub.f32 %v6534_v52, %v2288_v34  ;;  %v2284_v50 = vand.u32 4294901760, %v2283_v51  ;;  %v2306_v16 = vand.u32 4294901760, %v6584_v7 }
 0x3eb   :  { %2139 = vmatpush.msra.mxu1 %v6274_v5  ;;  %2377 = vmatpush.msrb.mxu3 %v6475_v38  ;;  %v8072_v5 = vld [vmem:[#allocation31_spill] sm:$0xff]  ;;  %v2312_v61 = vand.u32 4294901760, %v6600_v22  ;;  %v2296_v39 = vand.u32 4294901760, %v2295_v29  ;;  %v2318_v21 = vand.u32 4294901760, %v6617_v63  ;;  %v2521_v27 = vsub.f32 %v6590_v17, %v2520_v46 }
 0x3ec   :  { %2113 = vmatmul.f32.vlgmr.msra.gmra.mxu0 %v6282_v42  ;;  %2223 = vmatmul.f32.vlgmr.msra.gmra.mxu3 %v6251_v14  ;;  %v6570_v47 = vand.u32 4294901760, %v8072_v5  ;;  %v2290_v35 = vand.u32 4294901760, %v2289_v25  ;;  %v2307_v20 = vsub.f32 %v6584_v7, %v2306_v16  ;;  %v2532_v15 = vand.u32 4294901760, %v6622_v55 }
 0x3ed   :  { %2241 = vmatpush.msrb.mxu0 %v6498_v33  ;;  %2342 = vmatpush.msrb.mxu2 %v6519_v49  ;;  %v6658_v11 = vsub.f32 %v8073_v2, %v6628_v32  ;;  %v6669_v51 = vand.u32 4294901760, %v6373_v13  ;;  %v6683_v29 = vand.u32 4294901760, %v6453_v1  ;;  %v2522_v23 = vand.u32 4294901760, %v2521_v27 }
 0x3ee   :  { %2141 = vmatpush.msra.mxu1 %v6322_v41  ;;  %2379 = vmatpush.msrb.mxu3 %v6483_v0  ;;  %v2278_v41 = vand.u32 4294901760, %v2277_v19  ;;  %v6605_v12 = vsub.f32 %v8072_v5, %v6570_v47  ;;  %v6662_v19 = vsub.f32 %v6299_v37, %v6631_v30  ;;  %v2302_v5 = vand.u32 4294901760, %v2301_v9 }
 0x3ef   :  { %2145 = vmatmul.f32.vlgmr.msra.gmra.mxu1 %v6319_v57  ;;  %2243 = vmatpush.msrb.mxu0 %v6510_v3  ;;  %v2308_v25 = vand.u32 4294901760, %v2307_v20  ;;  %v2544_v2 = vand.u32 4294901760, %v6658_v11  ;;  %v6699_v53 = vsub.f32 %v6373_v13, %v6669_v51 }
 0x3f0   :  { %2273 = vmatpush.msrb.mxu1 %v2272_v45  ;;  %2345 = vmatpush.msrb.mxu2 %v6534_v52  ;;  %v2526_v26 = vand.u32 4294901760, %v6605_v12  ;;  %v2313_v45 = vsub.f32 %v6600_v22, %v2312_v61  ;;  %v2550_v9 = vand.u32 4294901760, %v6662_v19 }
 0x3f1   :  { %2381 = vmatpush.msrb.mxu3 %v6498_v33  ;;  %2245 = vmatpush.msrb.mxu0 %v6528_v4  ;;  %v2545_v49 = vsub.f32 %v6658_v11, %v2544_v2 }
 0x3f2   :  { %2279 = vmatpush.msrb.mxu1 %v2278_v41  ;;  %2348 = vmatpush.msrb.mxu2 %v6541_v18  ;;  %v2527_v37 = vsub.f32 %v6605_v12, %v2526_v26  ;;  %v2538_v41 = vand.u32 4294901760, %v6640_v40  ;;  %v2551_v52 = vsub.f32 %v6662_v19, %v2550_v9 }
 0x3f3   :  { %2383 = vmatpush.msrb.mxu3 %v6510_v3  ;;  %2247 = vmatpush.msrb.mxu0 %v6544_v54 }
 0x3f4   :  { %2285 = vmatpush.msrb.mxu1 %v2284_v50  ;;  %2351 = vmatpush.msrb.mxu2 %v6566_v48  ;;  %v2319_v50 = vsub.f32 %v6617_v63, %v2318_v21  ;;  %v2539_v20 = vsub.f32 %v6640_v40, %v2538_v41  ;;  %v2552_v18 = vand.u32 4294901760, %v2551_v52 }
 0x3f5   :  { %2385 = vmatpush.msrb.mxu3 %v6528_v4  ;;  %2249 = vmatpush.msrb.mxu0 %v6557_v56 }
 0x3f6   :  { %2291 = vmatpush.msrb.mxu1 %v2290_v35  ;;  %2354 = vmatpush.msrb.mxu2 %v6584_v7  ;;  %v2314_v35 = vand.u32 4294901760, %v2313_v45  ;;  %v2320_v27 = vand.u32 4294901760, %v2319_v50 }
 0x3f7   :  { %2387 = vmatpush.msrb.mxu3 %v6544_v54  ;;  %2251 = vmatpush.msrb.mxu0 %v6575_v62 }
 0x3f8   :  { %2297 = vmatpush.msrb.mxu1 %v2296_v39  ;;  %2357 = vmatpush.msrb.mxu2 %v6600_v22  ;;  %v6695_v39 = vand.u32 4294901760, %v6364_v43 }
 0x3f9   :  { %2389 = vmatpush.msrb.mxu3 %v6557_v56  ;;  %2409 = vmatpush.msra.mxu0 %v2270_v60  ;;  %v2533_v60 = vsub.f32 %v6622_v55, %v2532_v15 }
 0x3fa   :  { %2303 = vmatpush.msrb.mxu1 %v2302_v5  ;;  %2360 = vmatpush.msrb.mxu2 %v6617_v63  ;;  %v6709_v5 = vsub.f32 %v6453_v1, %v6683_v29  ;;  %v2540_v1 = vand.u32 4294901760, %v2539_v20 }
 0x3fb   :  { %2391 = vmatpush.msrb.mxu3 %v6575_v62  ;;  %2413 = vmatpush.msra.mxu0 %v2276_v6  ;;  %v2528_v6 = vand.u32 4294901760, %v2527_v37  ;;  %v2534_v13 = vand.u32 4294901760, %v2533_v60 }
 0x3fc   :  { %2485 = vmatpush.msra.mxu2 %v6552_v24  ;;  %2309 = vmatpush.msrb.mxu1 %v2308_v25  ;;  %v2562_v45 = vand.u32 4294901760, %v6709_v5 }
 0x3fd   :  { %2523 = vmatpush.msra.mxu3 %v2522_v23  ;;  %2417 = vmatpush.msra.mxu0 %v2282_v44  ;;  %v6719_v44 = vsub.f32 %v6364_v43, %v6695_v39  ;;  %v2546_v43 = vand.u32 4294901760, %v2545_v49 }
 0x3fe   :  { %2487 = vmatpush.msra.mxu2 %v6570_v47  ;;  %2315 = vmatpush.msrb.mxu1 %v2314_v35 }
 0x3ff   :  { %2529 = vmatpush.msra.mxu3 %v2528_v6  ;;  %2421 = vmatpush.msra.mxu0 %v2288_v34  ;;  %v2556_v34 = vand.u32 4294901760, %v6699_v53 }
 0x400   :  { %2489 = vmatpush.msra.mxu2 %v6587_v58  ;;  %2321 = vmatpush.msrb.mxu1 %v2320_v27 }
 0x401   :  { %2535 = vmatpush.msra.mxu3 %v2534_v13  ;;  %2425 = vmatpush.msra.mxu0 %v2294_v28  ;;  %v2568_v28 = vand.u32 4294901760, %v6719_v44 }
 0x402   :  { %2455 = vmatpush.msra.mxu1 %v6467_v10  ;;  %2491 = vmatpush.msra.mxu2 %v6608_v31  ;;  %v2557_v10 = vsub.f32 %v6699_v53, %v2556_v34 }
 0x403   :  { %2541 = vmatpush.msra.mxu3 %v2540_v1  ;;  %2429 = vmatpush.msra.mxu0 %v2300_v59 }
 0x404   :  { %2457 = vmatpush.msra.mxu1 %v6475_v38  ;;  %2493 = vmatpush.msra.mxu2 %v6628_v32  ;;  %v2563_v38 = vsub.f32 %v6709_v5, %v2562_v45  ;;  %v2558_v48 = vand.u32 4294901760, %v2557_v10 }
 0x405   :  { %2547 = vmatpush.msra.mxu3 %v2546_v43  ;;  %2433 = vmatpush.msra.mxu0 %v2306_v16 }
 0x406   :  { %2459 = vmatpush.msra.mxu1 %v6483_v0  ;;  %2495 = vmatpush.msra.mxu2 %v6631_v30  ;;  %v2569_v0 = vsub.f32 %v6719_v44, %v2568_v28  ;;  %v2564_v7 = vand.u32 4294901760, %v2563_v38 }
 0x407   :  { %2363 = vmatmul.f32.vlgmr.msrb.gmra.mxu2 %v6282_v42  ;;  %2553 = vmatpush.msra.mxu3 %v2552_v18 }
 0x408   :  { %2437 = vmatpush.msra.mxu0 %v2312_v61  ;;  %2461 = vmatpush.msra.mxu1 %v6498_v33  ;;  %v2570_v33 = vand.u32 4294901760, %v2569_v0 }
 0x409   :  { %2497 = vmatpush.msra.mxu2 %v6669_v51  ;;  %2257 = vmatmul.f32.vlgmr.msrb.gmra.mxu0 %v6395_v36 }
 0x40a   :  { %2395 = vmatmul.f32.vlgmr.msrb.gmra.mxu3 %v6319_v57  ;;  %2441 = vmatpush.msra.mxu0 %v2318_v21 }
 0x40b   :  { %2559 = vmatpush.msra.mxu3 %v2558_v48  ;;  %2463 = vmatpush.msra.mxu1 %v6510_v3 }
 0x40c   :  { %2499 = vmatpush.msra.mxu2 %v6683_v29  ;;  %2323 = vmatmul.f32.vlgmr.msrb.gmra.mxu1 %v6251_v14 }
 0x40d   :  { %2565 = vmatpush.msra.mxu3 %v2564_v7  ;;  %2586 = vmatpush.msrb.mxu0 %v6590_v17 }
 0x40e   :  { %2465 = vmatpush.msra.mxu1 %v6528_v4  ;;  %2501 = vmatpush.msra.mxu2 %v6695_v39 }
 0x40f   :  { %2571 = vmatpush.msra.mxu3 %v2570_v33  ;;  %2589 = vmatpush.msrb.mxu0 %v6605_v12 }
 0x410   :  { %2659 = vmatpush.msrb.mxu2 %v2520_v46  ;;  %2467 = vmatpush.msra.mxu1 %v6544_v54 }
 0x411   :  { %2705 = vmatpush.msrb.mxu3 %v6552_v24  ;;  %2592 = vmatpush.msrb.mxu0 %v6622_v55 }
 0x412   :  { %2663 = vmatpush.msrb.mxu2 %v2526_v26  ;;  %2469 = vmatpush.msra.mxu1 %v6557_v56 }
 0x413   :  { %2707 = vmatpush.msrb.mxu3 %v6570_v47  ;;  %2443 = vmatmul.f32.vlgmr.msra.gmra.mxu0 %v6251_v14 }
 0x414   :  { %2595 = vmatpush.msrb.mxu0 %v6640_v40  ;;  %2667 = vmatpush.msrb.mxu2 %v2532_v15 }
 0x415   :  { %2471 = vmatpush.msra.mxu1 %v6575_v62  ;;  %2709 = vmatpush.msrb.mxu3 %v6587_v58 }
 0x416   :  { %2473 = vmatmul.f32.vlgmr.msra.gmra.mxu1 %v6251_v14  ;;  %2598 = vmatpush.msrb.mxu0 %v6658_v11 }
 0x417   :  { %2625 = vmatpush.msrb.mxu1 %v6552_v24  ;;  %2671 = vmatpush.msrb.mxu2 %v2538_v41 }
 0x418   :  { %2507 = vmatmul.f32.vlgmr.msra.gmra.mxu2 %v6395_v36  ;;  %2711 = vmatpush.msrb.mxu3 %v6608_v31  ;;  %v2728_v36 = vld [vmem:[%s7857_s9] sm:$0xff] }
 0x419   :  { %2601 = vmatpush.msrb.mxu0 %v6662_v19  ;;  %2627 = vmatpush.msrb.mxu1 %v6570_v47 }
 0x41a   :  { %2675 = vmatpush.msrb.mxu2 %v2544_v2  ;;  %2573 = vmatmul.f32.vlgmr.msra.gmra.mxu3 %v6251_v14 }
 0x41b   :  { %2713 = vmatpush.msrb.mxu3 %v6628_v32  ;;  %2604 = vmatpush.msrb.mxu0 %v6699_v53 }
 0x41c   :  { %2629 = vmatpush.msrb.mxu1 %v6587_v58  ;;  %2679 = vmatpush.msrb.mxu2 %v2550_v9 }
 0x41d   :  { %2715 = vmatpush.msrb.mxu3 %v6631_v30  ;;  %2607 = vmatpush.msrb.mxu0 %v6709_v5 }
 0x41e   :  { %2631 = vmatpush.msrb.mxu1 %v6608_v31  ;;  %2683 = vmatpush.msrb.mxu2 %v2556_v34 }
 0x41f   :  { %2717 = vmatpush.msrb.mxu3 %v6669_v51  ;;  %2610 = vmatpush.msrb.mxu0 %v6719_v44 }
 0x420   :  { %2633 = vmatpush.msrb.mxu1 %v6628_v32  ;;  %2687 = vmatpush.msrb.mxu2 %v2562_v45 }
 0x421   :  { %2719 = vmatpush.msrb.mxu3 %v6683_v29  ;;  %2613 = vmatmul.f32.vlgmr.msrb.gmra.mxu0 %v6282_v42 }
 0x422   :  { %2635 = vmatpush.msrb.mxu1 %v6631_v30  ;;  %2691 = vmatpush.msrb.mxu2 %v2568_v28 }
 0x423   :  { %2721 = vmatpush.msrb.mxu3 %v6695_v39  ;;  %2693 = vmatmul.f32.vlgmr.msrb.gmra.mxu2 %v6251_v14 }
 0x424   :  { %2637 = vmatpush.msrb.mxu1 %v6669_v51  ;;  %2723 = vmatmul.f32.vlgmr.msrb.gmra.mxu3 %v6251_v14 }
 0x425   :  { %2772 = vperm.xlu0 %4801, %v2728_v36  }
 0x426   :  { %2639 = vmatpush.msrb.mxu1 %v6683_v29 }
 0x428   :  { %2641 = vmatpush.msrb.mxu1 %v6695_v39 }
 0x429   :  { %2645 = vmatmul.f32.vlgmr.msrb.gmra.mxu1 %v6319_v57 }
 0x433   :  { %v1722_v14 = vpop.permute.xlu0 %1721 }
 0x445   :  { %v1864_v3 = vpop.f32.mrf.mxu2 }
 0x447   :  { %v1896_v54 = vpop.f32.mrf.mxu3 }
 0x449   :  { %v1758_v42 = vpop.f32.mrf.mxu0 }
 0x44a   :  { %v1824_v4 = vpop.f32.mrf.mxu1  ;;  %v1759_v63 = vadd.f32 %v1758_v42, %v1722_v14 }
 0x44c   :  { %v1825_v30 = vadd.f32 %v1824_v4, %v1759_v63 }
 0x44e   :  { %v1865_v21 = vadd.f32 %v1864_v3, %v1825_v30 }
 0x450   :  { %v1897_v25 = vadd.f32 %v1896_v54, %v1865_v21 }
 0x45d   :  { %v1944_v24 = vpop.f32.mrf.mxu0 }
 0x45e   :  { %v1945_v2 = vadd.f32 %v1944_v24, %v1897_v25  ;;  %v4142_v25 = vld [vmem:[%s7860_s15] sm:$0xff] }
 0x45f   :  { %v1974_v47 = vpop.f32.mrf.mxu1 }
 0x460   :  { %v1975_v20 = vadd.f32 %v1974_v47, %v1945_v2 }
 0x462   :  { %v2008_v56 = vpop.f32.mrf.mxu2 }
 0x463   :  { %v2009_v31 = vadd.f32 %v2008_v56, %v1722_v14 }
 0x465   :  { %v2074_v62 = vpop.f32.mrf.mxu3 }
 0x466   :  { %v2075_v57 = vadd.f32 %v2074_v62, %v2009_v31 }
 0x469   :  { %v2114_v58 = vpop.f32.mrf.mxu0 }
 0x46a   :  { %v2115_v40 = vadd.f32 %v2114_v58, %v2075_v57 }
 0x46c   :  { %v2194_v17 = vpop.f32.mrf.mxu2  ;;  %v2146_v22 = vpop.f32.mrf.mxu1 }
 0x46d   :  { %v2147_v19 = vadd.f32 %v2146_v22, %v2115_v40  ;;  %v2727_v22 = vld [vmem:[%s7858_s8] sm:$0xff]  ;;  %s4826_s8 = smov 43  }
 0x46f   :  { %v2224_v59 = vpop.f32.mrf.mxu3  ;;  %v2195_v29 = vadd.f32 %v2194_v17, %v2147_v19 }
 0x471   :  { %v2225_v9 = vadd.f32 %v2224_v59, %v2195_v29 }
 0x473   :  { %v2729_v49 = vadd.f32 %v2225_v9, %v1975_v20 }
 0x486   :  { %v2258_v12 = vpop.f32.mrf.mxu0 }
 0x487   :  { %v2259_v16 = vadd.f32 %v2258_v12, %v1722_v14 }
 0x489   :  { %v2324_v46 = vpop.f32.mrf.mxu1 }
 0x48a   :  { %v2364_v55 = vpop.f32.mrf.mxu2  ;;  %v2325_v61 = vadd.f32 %v2324_v46, %v2259_v16 }
 0x48c   :  { %v2365_v15 = vadd.f32 %v2364_v55, %v2325_v61 }
 0x48d   :  { %v2396_v32 = vpop.f32.mrf.mxu3 }
 0x48e   :  { %v2397_v50 = vadd.f32 %v2396_v32, %v2365_v15 }
 0x490   :  { %v2444_v26 = vpop.f32.mrf.mxu0 }
 0x491   :  { %v2445_v35 = vadd.f32 %v2444_v26, %v2397_v50  ;;  %v6887_v50 = vld [vmem:[%s7850_s1 + $0x61] ss:$8 sm:$0xf] }
 0x492   :  { %v2995_v29 = vperm.slane %v6887_v50, 0 }
 0x493   :  { %v2474_v37 = vpop.f32.mrf.mxu1 }
 0x494   :  { %v2475_v27 = vadd.f32 %v2474_v37, %v2445_v35  ;;  %v3080_v37 = vld [vmem:[%s7859_s11] sm:$0xff] }
 0x496   :  { %v2730_v1 = vadd.f32 %v2729_v49, %v2475_v27 }
 0x497   :  { %v2773_v31 = vpop.permute.xlu0 %2772 }
 0x49b   :  { %v2508_v11 = vpop.f32.mrf.mxu2 }
 0x49c   :  { %v2509_v51 = vadd.f32 %v2508_v11, %v1722_v14 }
 0x49d   :  { %v2574_v41 = vpop.f32.mrf.mxu3 }
 0x49e   :  { %v2575_v23 = vadd.f32 %v2574_v41, %v2509_v51  ;;  %v2614_v60 = vpop.f32.mrf.mxu0 }
 0x4a0   :  { %v2615_v39 = vadd.f32 %v2614_v60, %v2575_v23 }
 0x4a6   :  { %v2646_v53 = vpop.f32.mrf.mxu1  ;;  %v2694_v6 = vpop.f32.mrf.mxu2 }
 0x4a7   :  { %v2647_v5 = vadd.f32 %v2646_v53, %v2615_v39  ;;  %v2724_v13 = vpop.f32.mrf.mxu3  ;;  %v6904_v39 = vld [vmem:[%s7850_s1 + $0x62] ss:$8 sm:$0xf] }
 0x4a9   :  { %v2695_v44 = vadd.f32 %v2694_v6, %v2647_v5  ;;  %v3027_v6 = vperm.slane %v6904_v39, 0 }
 0x4ab   :  { %v2725_v52 = vadd.f32 %v2724_v13, %v2695_v44 }
 0x4ad   :  { %v2731_v34 = vadd.f32 %v2730_v1, %v2725_v52 }
 0x4af   :  { %2732 = vadd.xlane.f32.xlu2 %v2731_v34 }
 0x522   :  { %v2733_v43 = vpop.xlane.xlu2 %2732 }
 0x523   :  { %v2734_v45 = vmul.f32 0.001953125, %v2733_v43 }
 0x525   :  { %v2735_v18 = vsub.f32 %v1975_v20, %v2734_v45  ;;  %v2736_v10 = vsub.f32 %v2225_v9, %v2734_v45  ;;  %v2737_v28 = vsub.f32 %v2475_v27, %v2734_v45  ;;  %v2738_v38 = vsub.f32 %v2725_v52, %v2734_v45 }
 0x527   :  { %v2739_v48 = vmul.f32 %v2735_v18, %v2735_v18  ;;  %v2740_v0 = vmul.f32 %v2736_v10, %v2736_v10  ;;  %v2741_v7 = vmul.f32 %v2737_v28, %v2737_v28  ;;  %v2742_v36 = vmul.f32 %v2738_v38, %v2738_v38 }
 0x529   :  { %v2743_v33 = vadd.f32 %v2740_v0, %v2739_v48  ;;  %v6951_v48 = vld [vmem:[%s7850_s1 + $0x60] ss:$8 sm:$0xf] }
 0x52b   :  { %v2744_v42 = vadd.f32 %v2743_v33, %v2741_v7  ;;  %v2963_v33 = vperm.slane %v6951_v48, 0 }
 0x52d   :  { %v2745_v3 = vadd.f32 %v2744_v42, %v2742_v36 }
 0x52f   :  { %2746 = vadd.xlane.f32.xlu1 %v2745_v3 }
 0x5a2   :  { %v2747_v4 = vpop.xlane.xlu1 %2746 }
 0x5a3   :  { %v2748_v54 = vmul.f32 0.001953125, %v2747_v4 }
 0x5a5   :  { %v2749_v24 = vadd.f32 1e-05, %v2748_v54 }
 0x5a7   :  { %4804 = vrsqrt.f32 %v2749_v24  ;;  %vm2756_vm5 = vweird.f32 %v2749_v24 }
 0x5ad   :  { %v4805_v56 = vpop.eup %4804 }
 0x5ae   :  { %v2751_v47 = vmul.f32 %v4805_v56, %v2749_v24  ;;  %vm2757_vm4 = vweird.f32 %v4805_v56 }
 0x5af   :  { %vm2758_vm7 = vmor %vm2756_vm5, %vm2757_vm4 }
 0x5b0   :  { %v2752_v62 = vmul.f32 %v4805_v56, %v2751_v47  ;;  %v2997_v47 = vperm.slane %v6887_v50, 2 }
 0x5b2   :  { %v2753_v58 = vmul.f32 0.5, %v2752_v62  ;;  %v2998_v62 = vperm.slane %v6887_v50, 3 }
 0x5b4   :  { %v2754_v17 = vsub.f32 1.5, %v2753_v58 }
 0x5b6   :  { %v2755_v59 = vmul.f32 %v4805_v56, %v2754_v17 }
 0x5b8   :  { %v2759_v14 = vsel %vm2758_vm7, %v4805_v56, %v2755_v59  ;;  %v6970_v56 = vld [vmem:[%s7850_s1 + $0x47] ss:$8 sm:$0xf] }
 0x5b9   :  { %v2760_v12 = vmul.f32 %v2759_v14, %v2727_v22  ;;  %v2931_v17 = vperm.slane %v6970_v56, 0 }
 0x5bb   :  { %2763 = vperm.xlu0 %4801, %v2760_v12  }
 0x62d   :  { %v2764_v63 = vpop.permute.xlu0 %2763 }
 0x62e   :  { %v2766_v16 = vmul.f32 %v2764_v63, %v2735_v18  ;;  %v2767_v55 = vmul.f32 %v2764_v63, %v2736_v10  ;;  %v2768_v32 = vmul.f32 %v2764_v63, %v2737_v28  ;;  %v2769_v21 = vmul.f32 %v2764_v63, %v2738_v38 }
 0x630   :  { %v2775_v46 = vadd.f32 %v2773_v31, %v2766_v16  ;;  %v2776_v57 = vadd.f32 %v2773_v31, %v2767_v55  ;;  %v2777_v40 = vadd.f32 %v2773_v31, %v2768_v32  ;;  %v2778_v15 = vadd.f32 %v2773_v31, %v2769_v21 }
 0x632   :  { %v6824_v30 = vmax.f32 %v2775_v46, 0.0  ;;  %v6826_v61 = vmax.f32 %v2776_v57, 0.0  ;;  %v6833_v26 = vmax.f32 %v2777_v40, 0.0  ;;  %v6851_v11 = vmax.f32 %v2778_v15, 0.0 }
 0x634   :  { %2981 = vrot.lane.b32.xlu1 %v6826_v61, %s4825_s22  ;;  %2979 = vrot.lane.b32.xlu2 %v6824_v30, %s4825_s22  ;;  %8074 = vst [vmem:[#allocation25_spill] sm:$0xff] %v6851_v11  ;;  %v6981_v22 = vand.u32 4294901760, %v6824_v30 }
 0x635   :  { %3011 = vrot.lane.b32.xlu0 %v6824_v30, %s4826_s8 }
 0x636   :  { %v7009_v21 = vsub.f32 %v6824_v30, %v6981_v22 }
 0x63c   :  { %2983 = vrot.lane.b32.xlu1 %v6833_v26, %s4825_s22  ;;  %2917 = vrot.lane.b32.xlu2 %v6826_v61, %s4827_s23 }
 0x63d   :  { %3013 = vrot.lane.b32.xlu0 %v6826_v61, %s4826_s8 }
 0x644   :  { %2951 = vrot.lane.b32.xlu1 %v6833_v26, %s4828_s24  ;;  %2879 = vrot.lane.b32.xlu2 %v6824_v30, %s4829_s25 }
 0x645   :  { %2947 = vrot.lane.b32.xlu0 %v6824_v30, %s4828_s24 }
 0x64c   :  { %2919 = vrot.lane.b32.xlu1 %v6833_v26, %s4827_s23  ;;  %2847 = vrot.lane.b32.xlu2 %v6824_v30, %s4830_s26 }
 0x64d   :  { %2949 = vrot.lane.b32.xlu0 %v6826_v61, %s4828_s24 }
 0x654   :  { %2783 = vrot.lane.b32.xlu1 %v6824_v30, %s4831_s3  ;;  %2815 = vrot.lane.b32.xlu2 %v6824_v30, %s4832_s27 }
 0x655   :  { %2915 = vrot.lane.b32.xlu0 %v6824_v30, %s4827_s23 }
 0x65c   :  { %2849 = vrot.lane.b32.xlu1 %v6826_v61, %s4830_s26  ;;  %2789 = vrot.lane.b32.xlu2 %v6851_v11, %s4831_s3 }
 0x65d   :  { %3015 = vrot.lane.b32.xlu0 %v6833_v26, %s4826_s8 }
 0x664   :  { %3017 = vrot.lane.b32.xlu1 %v6851_v11, %s4826_s8  ;;  %2817 = vrot.lane.b32.xlu2 %v6826_v61, %s4832_s27 }
 0x665   :  { %2885 = vrot.lane.b32.xlu0 %v6851_v11, %s4829_s25 }
 0x66c   :  { %2921 = vrot.lane.b32.xlu1 %v6851_v11, %s4827_s23  ;;  %2985 = vrot.lane.b32.xlu2 %v6851_v11, %s4825_s22 }
 0x66d   :  { %2853 = vrot.lane.b32.xlu0 %v6851_v11, %s4830_s26 }
 0x674   :  { %2819 = vrot.lane.b32.xlu1 %v6833_v26, %s4832_s27  ;;  %2883 = vrot.lane.b32.xlu2 %v6833_v26, %s4829_s25 }
 0x675   :  { %2821 = vrot.lane.b32.xlu0 %v6851_v11, %s4832_s27 }
 0x67c   :  { %2787 = vrot.lane.b32.xlu2 %v6833_v26, %s4831_s3 }
 0x67d   :  { %2881 = vrot.lane.b32.xlu0 %v6826_v61, %s4829_s25 }
 0x685   :  { %2785 = vrot.lane.b32.xlu0 %v6826_v61, %s4831_s3 }
 0x68d   :  { %2953 = vrot.lane.b32.xlu0 %v6851_v11, %s4828_s24 }
 0x68e   :  { %v6871_v19 = vpop.permute.xlu2 %2979 }
 0x695   :  { %2851 = vrot.lane.b32.xlu0 %v6833_v26, %s4830_s26 }
 0x696   :  { %v6874_v51 = vpop.permute.xlu2 %2917 }
 0x69d   :  { %3083 = vperm.xlu0 %4801, %v3080_v37  }
 0x69e   :  { %v6879_v41 = vpop.permute.xlu2 %2879 }
 0x6a5   :  { %4145 = vperm.xlu0 %4801, %v4142_v25   ;;  %v7942_v25 = vand.u32 4294901760, %v7009_v21 }
 0x6a6   :  { %v6891_v23 = vpop.permute.xlu1 %2981  ;;  %v6893_v60 = vpop.permute.xlu2 %2847 }
 0x6a7   :  { %v2990_v2 = vsel %vm2987_vm8, %v6871_v19, %v6891_v23  ;;  %v6899_v35 = vpop.permute.xlu0 %3011 }
 0x6a8   :  { %v3003_v9 = vmul.f32 %v2995_v29, %v2990_v2 }
 0x6aa   :  { %v6906_v53 = vand.u32 4294901760, %v3003_v9 }
 0x6ac   :  { %v6921_v44 = vsub.f32 %v3003_v9, %v6906_v53 }
 0x6ae   :  { %v6910_v20 = vpop.permute.xlu1 %2983  ;;  %v6912_v27 = vpop.permute.xlu2 %2815  ;;  %v7946_v34 = vand.u32 4294901760, %v6921_v44 }
 0x6af   :  { %v6914_v5 = vpop.permute.xlu0 %3013 }
 0x6b0   :  { %v3022_v13 = vsel %vm3019_vm9, %v6899_v35, %v6914_v5  ;;  %v3139_v38 = vsub.f32 %v6921_v44, %v7946_v34 }
 0x6b1   :  { %v3035_v49 = vmul.f32 %v3027_v6, %v3022_v13  ;;  %v3157_v13 = vsub.f32 %v7009_v21, %v7942_v25 }
 0x6b2   :  { %v3140_v7 = vand.u32 4294901760, %v3139_v38 }
 0x6b3   :  { %v6923_v1 = vand.u32 4294901760, %v3035_v49 }
 0x6b5   :  { %v6926_v52 = vsub.f32 %v3035_v49, %v6923_v1  ;;  %3097 = vmatpush.msra.mxu0 %v6923_v1  ;;  %3237 = vmatpush.msra.mxu3 %v6923_v1  ;;  %v7037_v49 = vld [vmem:[%s7850_s1 + $0x45] ss:$8 sm:$0xf] }
 0x6b6   :  { %v6931_v43 = vpop.permute.xlu1 %2951  ;;  %v6933_v45 = vpop.permute.xlu2 %2789 }
 0x6b7   :  { %v7947_v18 = vand.u32 4294901760, %v6926_v52  ;;  %3099 = vmatpush.msra.mxu0 %v6906_v53  ;;  %3198 = vmatpush.msra.mxu2 %v6926_v52  ;;  %v6938_v10 = vpop.permute.xlu0 %2947 }
 0x6b8   :  { %8075 = vst [vmem:[#allocation24_spill] sm:$0xff] %v6938_v10  ;;  %3239 = vmatpush.msra.mxu3 %v6906_v53 }
 0x6b9   :  { %3201 = vmatpush.msra.mxu2 %v6921_v44  ;;  %v3133_v28 = vsub.f32 %v6926_v52, %v7947_v18 }
 0x6bb   :  { %v3134_v0 = vand.u32 4294901760, %v3133_v28  ;;  %v7042_v28 = vld [vmem:[%s7850_s1 + $0x42] ss:$8 sm:$0xf] }
 0x6bd   :  { %3135 = vmatpush.msra.mxu1 %v3134_v0  ;;  %v3043_v0 = vld [vmem:[%s7861_s10] sm:$0xff] }
 0x6be   :  { %v6955_v36 = vpop.permute.xlu1 %2919  ;;  %v6957_v42 = vpop.permute.xlu2 %2817 }
 0x6bf   :  { %8076 = vst [vmem:[#allocation4_spill] sm:$0xff] %v6957_v42  ;;  %3141 = vmatpush.msra.mxu1 %v3140_v7  ;;  %v6959_v3 = vpop.permute.xlu0 %2949  ;;  %v3029_v7 = vperm.slane %v6904_v39, 2  ;;  %v2826_v18 = vsel %vm2823_vm14, %v6912_v27, %v6957_v42 }
 0x6c0   :  { %v2958_v4 = vsel %vm2955_vm10, %v6938_v10, %v6959_v3 }
 0x6c1   :  { %v2971_v54 = vmul.f32 %v2963_v33, %v2958_v4  ;;  %v3030_v33 = vperm.slane %v6904_v39, 3  ;;  %v2802_v4 = vperm.slane %v7042_v28, 3 }
 0x6c3   :  { %v6965_v24 = vand.u32 4294901760, %v2971_v54 }
 0x6c5   :  { %3101 = vmatpush.msra.mxu0 %v6965_v24  ;;  %3241 = vmatpush.msra.mxu3 %v6965_v24  ;;  %v6977_v58 = vsub.f32 %v2971_v54, %v6965_v24  ;;  %v2898_v54 = vperm.slane %v7037_v49, 3 }
 0x6c6   :  { %v6983_v59 = vpop.permute.xlu1 %2783  ;;  %v2986_v14 = vpop.permute.xlu2 %2985 }
 0x6c7   :  { %v2988_v12 = vsel %vm2987_vm8, %v6910_v20, %v2986_v14  ;;  %v2991_v31 = vsel %vm2987_vm8, %v2986_v14, %v6871_v19  ;;  %3204 = vmatpush.msra.mxu2 %v6977_v58  ;;  %v6993_v63 = vpop.permute.xlu0 %2915  ;;  %v7945_v16 = vand.u32 4294901760, %v6977_v58 }
 0x6c8   :  { %v6996_v55 = vmul.f32 %v2997_v47, %v2988_v12  ;;  %v6998_v46 = vmul.f32 %v2998_v62, %v2991_v31  ;;  %v2926_v57 = vsel %vm2923_vm11, %v6993_v63, %v6874_v51  ;;  %v3158_v47 = vand.u32 4294901760, %v3157_v13 }
 0x6c9   :  { %v2939_v32 = vmul.f32 %v2931_v17, %v2926_v57  ;;  %v3145_v40 = vsub.f32 %v6977_v58, %v7945_v16  ;;  %v3028_v62 = vperm.slane %v6904_v39, 1  ;;  %v2895_v12 = vperm.slane %v7037_v49, 0 }
 0x6ca   :  { %8077 = vst [vmem:[#allocation27_spill] sm:$0xff] %v6998_v46  ;;  %v3087_v31 = vsel %vm361_vm6, %v3043_v0, 0  ;;  %vm2855_vm6 = vcmp.lt.s32.totalorder %v4988_v8, 75 }
 0x6cb   :  { %v7011_v15 = vand.u32 4294901760, %v2939_v32  ;;  %v3146_v19 = vand.u32 4294901760, %v3145_v40 }
 0x6cd   :  { %3103 = vmatpush.msra.mxu0 %v7011_v15  ;;  %3147 = vmatpush.msra.mxu1 %v3146_v19  ;;  %v7015_v37 = vsub.f32 %v2939_v32, %v7011_v15 }
 0x6ce   :  { %3243 = vmatpush.msra.mxu3 %v7011_v15  ;;  %v7019_v29 = vpop.permute.xlu1 %2849  ;;  %v7021_v2 = vpop.permute.xlu2 %2883 }
 0x6cf   :  { %3207 = vmatpush.msra.mxu2 %v7015_v37  ;;  %v3016_v30 = vpop.permute.xlu0 %3015  ;;  %3105 = vmatpush.msra.mxu0 %v6981_v22  ;;  %v7943_v9 = vand.u32 4294901760, %v7015_v37 }
 0x6d0   :  { %3245 = vmatpush.msra.mxu3 %v6981_v22  ;;  %v3021_v57 = vsel %vm3019_vm9, %v6914_v5, %v3016_v30 }
 0x6d1   :  { %3210 = vmatpush.msra.mxu2 %v7009_v21  ;;  %v3151_v6 = vsub.f32 %v7015_v37, %v7943_v9 }
 0x6d3   :  { %v3152_v38 = vand.u32 4294901760, %v3151_v6 }
 0x6d5   :  { %3153 = vmatpush.msra.mxu1 %v3152_v38 }
 0x6d6   :  { %v3018_v17 = vpop.permute.xlu1 %3017  ;;  %v7054_v14 = vpop.permute.xlu2 %2787 }
 0x6d7   :  { %8078 = vst [vmem:[#allocation20_spill] sm:$0xff] %v7054_v14  ;;  %v3020_v32 = vsel %vm3019_vm9, %v3016_v30, %v3018_v17  ;;  %v3023_v40 = vsel %vm3019_vm9, %v3018_v17, %v6899_v35  ;;  %v2792_v39 = vsel %vm2791_vm13, %v7054_v14, %v6933_v45  ;;  %v2886_v19 = vpop.permute.xlu0 %2885  ;;  %3159 = vmatpush.msra.mxu1 %v3158_v47  ;;  %v2996_v30 = vperm.slane %v6887_v50, 1 }
 0x6d8   :  { %v7070_v6 = vmul.f32 %v3029_v7, %v3020_v32  ;;  %v7072_v13 = vmul.f32 %v3030_v33, %v3023_v40  ;;  %v7074_v38 = vmul.f32 %v2802_v4, %v2792_v39  ;;  %v2888_v5 = vsel %vm2887_vm12, %v7021_v2, %v2886_v19 }
 0x6d9   :  { %v2891_v35 = vsel %vm2887_vm12, %v2886_v19, %v6879_v41  ;;  %v7083_v0 = vmul.f32 %v2898_v54, %v2888_v5  ;;  %v2989_v7 = vsel %vm2987_vm8, %v6891_v23, %v6910_v20  ;;  %v2964_v33 = vperm.slane %v6951_v48, 1  ;;  %v7100_v54 = vld [vmem:[%s7850_s1 + $0x44] ss:$8 sm:$0xf] }
 0x6da   :  { %8079 = vst [vmem:[#allocation26_spill] sm:$0xff] %v7072_v13  ;;  %v2903_v4 = vmul.f32 %v2895_v12, %v2891_v35  ;;  %v2932_v47 = vperm.slane %v6970_v56, 1  ;;  %v2957_v50 = vsel %vm2955_vm10, %v6959_v3, %v6931_v43  ;;  %v3036_v17 = vmul.f32 %v3028_v62, %v3021_v57 }
 0x6db   :  { %8080 = vst [vmem:[#allocation28_spill] sm:$0xff] %v7074_v38  ;;  %v7095_v32 = vand.u32 4294901760, %v3087_v31  ;;  %v2933_v23 = vperm.slane %v6970_v56, 2  ;;  %v2934_v20 = vperm.slane %v6970_v56, 3  ;;  %v3004_v12 = vmul.f32 %v2996_v30, %v2989_v7 }
 0x6dc   :  { %8081 = vst [vmem:[#allocation30_spill] sm:$0xff] %v7083_v0  ;;  %v7102_v40 = vand.u32 4294901760, %v2903_v4  ;;  %v2925_v3 = vsel %vm2923_vm11, %v6874_v51, %v6955_v36  ;;  %v2799_v62 = vperm.slane %v7042_v28, 0  ;;  %v2863_v57 = vperm.slane %v7100_v54, 0 }
 0x6dd   :  { %v2972_v39 = vmul.f32 %v2964_v33, %v2957_v50  ;;  %v2795_v19 = vsel %vm2791_vm13, %v6933_v45, %v6983_v59  ;;  %v7122_v51 = vand.u32 4294901760, %v3036_v17  ;;  %v7133_v7 = vsub.f32 %v3087_v31, %v7095_v32 }
 0x6de   :  { %3107 = vmatpush.msra.mxu0 %v7102_v40  ;;  %3247 = vmatpush.msra.mxu3 %v7102_v40  ;;  %v2922_v56 = vpop.permute.xlu1 %2921  ;;  %v7120_v5 = vsub.f32 %v2903_v4, %v7102_v40  ;;  %v2807_v9 = vmul.f32 %v2799_v62, %v2795_v19 }
 0x6df   :  { %v2924_v30 = vsel %vm2923_vm11, %v6955_v36, %v2922_v56  ;;  %v2927_v45 = vsel %vm2923_vm11, %v2922_v56, %v6993_v63  ;;  %v7130_v35 = vpop.permute.xlu0 %2853  ;;  %v7145_v63 = vand.u32 4294901760, %v3004_v12  ;;  %v2940_v56 = vmul.f32 %v2932_v47, %v2925_v3 }
 0x6e0   :  { %v7135_v33 = vmul.f32 %v2933_v23, %v2924_v30  ;;  %v7137_v50 = vmul.f32 %v2934_v20, %v2927_v45  ;;  %v2859_v4 = vsel %vm2855_vm6, %v7130_v35, %v6893_v60  ;;  %3213 = vmatpush.msra.mxu2 %v7120_v5  ;;  %v7944_v36 = vand.u32 4294901760, %v7120_v5  ;;  %v7153_v23 = vld [vmem:[%s7850_s1 + $0x43] ss:$8 sm:$0xf] }
 0x6e1   :  { %v2871_v25 = vmul.f32 %v2863_v57, %v2859_v4  ;;  %v7155_v20 = vand.u32 4294901760, %v2972_v39  ;;  %v7158_v30 = vsub.f32 %v3036_v17, %v7122_v51  ;;  %v2864_v47 = vperm.slane %v7100_v54, 1 }
 0x6e2   :  { %8082 = vst [vmem:[#allocation14_spill] sm:$0xff] %v7137_v50  ;;  %v3163_v31 = vsub.f32 %v7120_v5, %v7944_v36  ;;  %v7165_v62 = vand.u32 4294901760, %v7133_v7  ;;  %v2858_v57 = vsel %vm2855_vm6, %v6893_v60, %v7019_v29  ;;  %v2831_v17 = vperm.slane %v7153_v23, 0 }
 0x6e3   :  { %v7160_v45 = vand.u32 4294901760, %v2871_v25  ;;  %v2834_v19 = vperm.slane %v7153_v23, 3  ;;  %v7181_v36 = vand.u32 4294901760, %v2940_v56  ;;  %v2832_v16 = vperm.slane %v7153_v23, 1 }
 0x6e4   :  { %v3164_v3 = vand.u32 4294901760, %v3163_v31  ;;  %v7179_v31 = vsub.f32 %v3004_v12, %v7145_v63  ;;  %v7184_v34 = vand.u32 4294901760, %v2807_v9  ;;  %v2872_v11 = vmul.f32 %v2864_v47, %v2858_v57 }
 0x6e5   :  { %3109 = vmatpush.msra.mxu0 %v7160_v45  ;;  %3249 = vmatpush.msra.mxu3 %v7160_v45  ;;  %v7176_v4 = vsub.f32 %v2871_v25, %v7160_v45  ;;  %v7193_v25 = vsub.f32 %v2972_v39, %v7155_v20  ;;  %v3117_v39 = vsub.f32 %v7133_v7, %v7165_v62  ;;  %v7212_v47 = vand.u32 4294901760, %v6826_v61 }
 0x6e6   :  { %3165 = vmatpush.msra.mxu1 %v3164_v3  ;;  %v7186_v60 = vpop.permute.xlu1 %2819  ;;  %v7215_v57 = vsub.f32 %v2940_v56, %v7181_v36  ;;  %v2840_v10 = vmul.f32 %v2832_v16, %v2826_v18  ;;  %v7218_v14 = vsub.f32 %v2807_v9, %v7184_v34  ;;  %v2896_v18 = vperm.slane %v7037_v49, 1 }
 0x6e7   :  { %8083 = vst [vmem:[#allocation3_spill] sm:$0xff] %v7186_v60  ;;  %v2822_v38 = vpop.permute.xlu0 %2821  ;;  %3216 = vmatpush.msra.mxu2 %v7176_v4  ;;  %v7957_v0 = vand.u32 4294901760, %v7176_v4  ;;  %v2897_v16 = vperm.slane %v7037_v49, 2  ;;  %v7239_v56 = vsub.f32 %v6826_v61, %v7212_v47 }
 0x6e8   :  { %v2824_v3 = vsel %vm2823_vm14, %v7186_v60, %v2822_v38  ;;  %v2827_v50 = vsel %vm2823_vm14, %v2822_v38, %v6912_v27  ;;  %v7960_v27 = vand.u32 4294901760, %v7179_v31 }
 0x6e9   :  { %v2839_v46 = vmul.f32 %v2831_v17, %v2827_v50  ;;  %v7206_v13 = vmul.f32 %v2834_v19, %v2824_v3  ;;  %v3169_v12 = vsub.f32 %v7176_v4, %v7957_v0  ;;  %v8085_v17 = vand.u32 4294901760, %v7158_v30 }
 0x6ea   :  { %v7962_v3 = vand.u32 4294901760, %v7193_v25  ;;  %v7227_v0 = vand.u32 4294901760, %v2872_v11 }
 0x6eb   :  { %8084 = vst [vmem:[#allocation29_spill] sm:$0xff] %v7206_v13  ;;  %v7221_v38 = vand.u32 4294901760, %v2839_v46  ;;  %v3170_v50 = vand.u32 4294901760, %v3169_v12  ;;  %v3383_v19 = vsub.f32 %v7158_v30, %v8085_v17  ;;  %v7229_v13 = vand.u32 4294901760, %v3117_v39 }
 0x6ec   :  { %v3389_v12 = vsub.f32 %v7179_v31, %v7960_v27  ;;  %v7247_v17 = vand.u32 4294901760, %v2840_v10  ;;  %v3395_v61 = vsub.f32 %v7193_v25, %v7962_v3  ;;  %v7256_v27 = vsub.f32 %v2872_v11, %v7227_v0 }
 0x6ed   :  { %3111 = vmatpush.msra.mxu0 %v7221_v38  ;;  %3171 = vmatpush.msra.mxu1 %v3170_v50  ;;  %v7235_v9 = vsub.f32 %v2839_v46, %v7221_v38  ;;  %v3384_v46 = vand.u32 4294901760, %v3383_v19  ;;  %v8086_v3 = vand.u32 4294901760, %v6926_v52 }
 0x6ee   :  { %3251 = vmatpush.msra.mxu3 %v7221_v38 }
 0x6ef   :  { %v2882_v49 = vpop.permute.xlu0 %2881  ;;  %3113 = vmatpush.msra.mxu0 %v7184_v34  ;;  %3219 = vmatpush.msra.mxu2 %v7235_v9  ;;  %v3174_v42 = vand.u32 4294901760, %v7235_v9 }
 0x6f0   :  { %v2889_v50 = vsel %vm2887_vm12, %v2882_v49, %v7021_v2  ;;  %v2890_v39 = vsel %vm2887_vm12, %v6879_v41, %v2882_v49  ;;  %3253 = vmatpush.msra.mxu3 %v7184_v34  ;;  %3119 = vmatmul.f32.vlgmr.msra.gmra.mxu0 %v7229_v13  ;;  %v3406_v2 = vand.u32 4294901760, %v7239_v56  ;;  %v3390_v41 = vand.u32 4294901760, %v3389_v12 }
 0x6f1   :  { %v2904_v19 = vmul.f32 %v2896_v18, %v2890_v39  ;;  %v7266_v60 = vmul.f32 %v2897_v16, %v2889_v50  ;;  %3271 = vmatpush.msrb.mxu0 %v8086_v3  ;;  %v3175_v11 = vsub.f32 %v7235_v9, %v3174_v42  ;;  %3222 = vmatpush.msra.mxu2 %v7218_v14  ;;  %v8087_v49 = vand.u32 4294901760, %v7215_v57 }
 0x6f2   :  { %3385 = vmatpush.msrb.mxu3 %v3384_v46  ;;  %v8088_v16 = vand.u32 4294901760, %v7218_v14  ;;  %v7283_v3 = vsub.f32 %v2840_v10, %v7247_v17  ;;  %v8089_v50 = vand.u32 4294901760, %v6921_v44  ;;  %3225 = vmatmul.f32.vlgmr.msra.gmra.mxu2 %v7133_v7  ;;  %v3396_v46 = vand.u32 4294901760, %v3395_v61 }
 0x6f3   :  { %3257 = vmatmul.f32.vlgmr.msra.gmra.mxu3 %v7165_v62  ;;  %v3401_v18 = vsub.f32 %v7215_v57, %v8087_v49  ;;  %v7285_v39 = vand.u32 4294901760, %v2904_v19  ;;  %3347 = vmatpush.msrb.mxu2 %v7122_v51  ;;  %v3176_v12 = vand.u32 4294901760, %v3175_v11  ;;  %v2800_v10 = vperm.slane %v7042_v28, 1 }
 0x6f4   :  { %v3181_v52 = vsub.f32 %v7218_v14, %v8088_v16  ;;  %3275 = vmatpush.msrb.mxu0 %v8089_v50  ;;  %3391 = vmatpush.msrb.mxu3 %v3390_v41  ;;  %v8090_v16 = vand.u32 4294901760, %v6977_v58  ;;  %v3407_v44 = vsub.f32 %v7239_v56, %v3406_v2  ;;  %v3418_v11 = vand.u32 4294901760, %v7256_v27 }
 0x6f5   :  { %v7292_v49 = vsub.f32 %v2904_v19, %v7285_v39  ;;  %3349 = vmatpush.msrb.mxu2 %v7145_v63  ;;  %3177 = vmatpush.msra.mxu1 %v3176_v12  ;;  %v3402_v41 = vand.u32 4294901760, %v3401_v18  ;;  %v8091_v19 = vand.u32 4294901760, %v7015_v37  ;;  %v8092_v37 = vand.u32 4294901760, %v7009_v21 }
 0x6f6   :  { %3279 = vmatpush.msrb.mxu0 %v8090_v16  ;;  %3397 = vmatpush.msrb.mxu3 %v3396_v46  ;;  %v3182_v61 = vand.u32 4294901760, %v3181_v52  ;;  %v3424_v16 = vand.u32 4294901760, %v7283_v3  ;;  %v3408_v52 = vand.u32 4294901760, %v3407_v44 }
 0x6f7   :  { %3351 = vmatpush.msrb.mxu2 %v7155_v20  ;;  %v7305_v58 = vpop.permute.xlu0 %2785  ;;  %v3412_v50 = vand.u32 4294901760, %v7292_v49 }
 0x6f8   :  { %3283 = vmatpush.msrb.mxu0 %v8091_v19  ;;  %3403 = vmatpush.msrb.mxu3 %v3402_v41  ;;  %v2794_v46 = vsel %vm2791_vm13, %v6983_v59, %v7305_v58  ;;  %v3419_v41 = vsub.f32 %v7256_v27, %v3418_v11  ;;  %v3425_v44 = vsub.f32 %v7283_v3, %v3424_v16 }
 0x6f9   :  { %3183 = vmatpush.msra.mxu1 %v3182_v61  ;;  %v2808_v18 = vmul.f32 %v2800_v10, %v2794_v46  ;;  %v3413_v12 = vsub.f32 %v7292_v49, %v3412_v50  ;;  %3353 = vmatpush.msrb.mxu2 %v7181_v36  ;;  %v8093_v10 = vand.u32 4294901760, %v7120_v5 }
 0x6fa   :  { %3185 = vmatmul.f32.vlgmr.msra.gmra.mxu1 %v7095_v32  ;;  %3287 = vmatpush.msrb.mxu0 %v8092_v37  ;;  %v3420_v19 = vand.u32 4294901760, %v3419_v41  ;;  %v2965_v37 = vperm.slane %v6951_v48, 2 }
 0x6fb   :  { %3317 = vmatpush.msrb.mxu1 %v6923_v1  ;;  %v7324_v59 = vand.u32 4294901760, %v2808_v18  ;;  %3409 = vmatpush.msrb.mxu3 %v3408_v52  ;;  %v3414_v21 = vand.u32 4294901760, %v3413_v12  ;;  %v8094_v1 = vand.u32 4294901760, %v7176_v4  ;;  %v8095_v4 = vand.u32 4294901760, %v7218_v14 }
 0x6fc   :  { %3291 = vmatpush.msrb.mxu0 %v8093_v10  ;;  %3355 = vmatpush.msrb.mxu2 %v7212_v47  ;;  %v2866_v14 = vperm.slane %v7100_v54, 3 }
 0x6fd   :  { %3319 = vmatpush.msrb.mxu1 %v6906_v53  ;;  %v7334_v61 = vsub.f32 %v2808_v18, %v7324_v59  ;;  %3415 = vmatpush.msrb.mxu3 %v3414_v21  ;;  %v3426_v53 = vand.u32 4294901760, %v3425_v44  ;;  %v8097_v18 = vand.u32 4294901760, %v7179_v31  ;;  %v8104_v21 = vld [vmem:[#allocation26_spill] sm:$0xff] }
 0x6fe   :  { %3295 = vmatpush.msrb.mxu0 %v8094_v1  ;;  %3357 = vmatpush.msrb.mxu2 %v7285_v39 }
 0x6ff   :  { %3321 = vmatpush.msrb.mxu1 %v6965_v24  ;;  %v7342_v5 = vpop.permute.xlu0 %2953  ;;  %3421 = vmatpush.msrb.mxu3 %v3420_v19  ;;  %v3430_v46 = vand.u32 4294901760, %v7334_v61 }
 0x700   :  { %3299 = vmatpush.msrb.mxu0 %v3174_v42  ;;  %3359 = vmatpush.msrb.mxu2 %v7227_v0 }
 0x701   :  { %3323 = vmatpush.msrb.mxu1 %v7011_v15  ;;  %3427 = vmatpush.msrb.mxu3 %v3426_v53  ;;  %v3431_v24 = vsub.f32 %v7334_v61, %v3430_v46  ;;  %v2865_v15 = vperm.slane %v7100_v54, 2 }
 0x702   :  { %3303 = vmatpush.msrb.mxu0 %v8095_v4  ;;  %3361 = vmatpush.msrb.mxu2 %v7247_v17 }
 0x703   :  { %3325 = vmatpush.msrb.mxu1 %v6981_v22  ;;  %3305 = vmatmul.f32.vlgmr.msrb.gmra.mxu0 %v7095_v32  ;;  %v3432_v42 = vand.u32 4294901760, %v3431_v24  ;;  %v8096_v22 = vand.u32 4294901760, %v7158_v30 }
 0x704   :  { %3448 = vmatpush.msra.mxu0 %v7158_v30  ;;  %3363 = vmatpush.msrb.mxu2 %v7324_v59 }
 0x705   :  { %3327 = vmatpush.msrb.mxu1 %v7102_v40  ;;  %3433 = vmatpush.msrb.mxu3 %v3432_v42 }
 0x706   :  { %3369 = vmatmul.f32.vlgmr.msrb.gmra.mxu2 %v7229_v13  ;;  %3451 = vmatpush.msra.mxu0 %v7179_v31  ;;  %v8099_v31 = vand.u32 4294901760, %v7215_v57 }
 0x707   :  { %3521 = vmatpush.msra.mxu2 %v8096_v22  ;;  %3329 = vmatpush.msrb.mxu1 %v7160_v45  ;;  %v2852_v9 = vpop.permute.xlu0 %2851 }
 0x708   :  { %3454 = vmatpush.msra.mxu0 %v7193_v25  ;;  %3435 = vmatmul.f32.vlgmr.msrb.gmra.mxu3 %v7095_v32  ;;  %v2856_v40 = vsel %vm2855_vm6, %v2852_v9, %v7130_v35  ;;  %v2857_v54 = vsel %vm2855_vm6, %v7019_v29, %v2852_v9  ;;  %v8098_v35 = vand.u32 4294901760, %v7193_v25  ;;  %v2956_v29 = vsel %vm2955_vm10, %v6931_v43, %v7342_v5 }
 0x709   :  { %3525 = vmatpush.msra.mxu2 %v8097_v18  ;;  %3331 = vmatpush.msrb.mxu1 %v7221_v38  ;;  %v7376_v30 = vmul.f32 %v2865_v15, %v2857_v54  ;;  %v7378_v45 = vmul.f32 %v2866_v14, %v2856_v40  ;;  %v2973_v25 = vmul.f32 %v2965_v37, %v2956_v29  ;;  %v7406_v43 = vand.u32 4294901760, %v6996_v55  ;;  %v8101_v38 = vld [vmem:[#allocation4_spill] sm:$0xff]  ;;  %v8106_v37 = vld [vmem:[#allocation14_spill] sm:$0xff] }
 0x70a   :  { %3567 = vmatpush.msra.mxu3 %v7122_v51  ;;  %3457 = vmatpush.msra.mxu0 %v7215_v57 }
 0x70b   :  { %3529 = vmatpush.msra.mxu2 %v8098_v35  ;;  %3333 = vmatpush.msrb.mxu1 %v7184_v34  ;;  %v7398_v34 = vand.u32 4294901760, %v7070_v6  ;;  %v7482_v52 = vand.u32 4294901760, %v7376_v30  ;;  %v7556_v35 = vand.u32 4294901760, %v8106_v37 }
 0x70c   :  { %3569 = vmatpush.msra.mxu3 %v7145_v63  ;;  %3335 = vmatmul.f32.vlgmr.msrb.gmra.mxu1 %v7095_v32 }
 0x70d   :  { %3460 = vmatpush.msra.mxu0 %v7239_v56  ;;  %3487 = vmatpush.msra.mxu1 %v7122_v51  ;;  %v7415_v51 = vsub.f32 %v7070_v6, %v7398_v34  ;;  %v7431_v6 = vsub.f32 %v6996_v55, %v7406_v43  ;;  %v8100_v55 = vld [vmem:[#allocation3_spill] sm:$0xff] }
 0x70e   :  { %3533 = vmatpush.msra.mxu2 %v8099_v31  ;;  %3571 = vmatpush.msra.mxu3 %v7155_v20  ;;  %v2825_v56 = vsel %vm2823_vm14, %v8101_v38, %v8100_v55 }
 0x70f   :  { %3463 = vmatpush.msra.mxu0 %v7292_v49  ;;  %3489 = vmatpush.msra.mxu1 %v7145_v63  ;;  %v7417_v63 = vand.u32 4294901760, %v2973_v25  ;;  %v3632_v57 = vand.u32 4294901760, %v7415_v51  ;;  %v7462_v49 = vand.u32 4294901760, %v7266_v60 }
 0x710   :  { %3537 = vmatpush.msra.mxu2 %v3406_v2  ;;  %3573 = vmatpush.msra.mxu3 %v7181_v36  ;;  %v2801_v2 = vperm.slane %v7042_v28, 2 }
 0x711   :  { %3466 = vmatpush.msra.mxu0 %v7256_v27  ;;  %3491 = vmatpush.msra.mxu1 %v7155_v20  ;;  %v7425_v20 = vand.u32 4294901760, %v7135_v33  ;;  %v2833_v27 = vperm.slane %v7153_v23, 2  ;;  %v7500_v10 = vsub.f32 %v7266_v60, %v7462_v49  ;;  %v7517_v60 = vsub.f32 %v7376_v30, %v7482_v52 }
 0x712   :  { %3541 = vmatpush.msra.mxu2 %v3412_v50  ;;  %3575 = vmatpush.msra.mxu3 %v7212_v47  ;;  %v3633_v50 = vsub.f32 %v7415_v51, %v3632_v57 }
 0x713   :  { %3469 = vmatpush.msra.mxu0 %v7283_v3  ;;  %3493 = vmatpush.msra.mxu1 %v7181_v36  ;;  %v7437_v36 = vand.u32 4294901760, %v6833_v26  ;;  %v7458_v23 = vsub.f32 %v7135_v33, %v7425_v20  ;;  %v3638_v3 = vand.u32 4294901760, %v7431_v6  ;;  %v2841_v33 = vmul.f32 %v2833_v27, %v2825_v56  ;;  %v8107_v56 = vld [vmem:[#allocation25_spill] sm:$0xff] }
 0x714   :  { %3545 = vmatpush.msra.mxu2 %v3418_v11  ;;  %3577 = vmatpush.msra.mxu3 %v7285_v39  ;;  %v8102_v11 = vld [vmem:[#allocation20_spill] sm:$0xff]  ;;  %v3662_v24 = vand.u32 4294901760, %v7500_v10  ;;  %v3668_v40 = vand.u32 4294901760, %v7517_v60 }
 0x715   :  { %3472 = vmatpush.msra.mxu0 %v7334_v61  ;;  %3495 = vmatpush.msra.mxu1 %v7212_v47  ;;  %v7444_v47 = vsub.f32 %v2973_v25, %v7417_v63  ;;  %v7472_v28 = vsub.f32 %v6833_v26, %v7437_v36  ;;  %v3650_v41 = vand.u32 4294901760, %v7458_v23  ;;  %v7506_v44 = vand.u32 4294901760, %v2841_v33 }
 0x716   :  { %3549 = vmatpush.msra.mxu2 %v3424_v16  ;;  %3475 = vmatmul.f32.vlgmr.msra.gmra.mxu0 %v7133_v7  ;;  %v3634_v61 = vand.u32 4294901760, %v3633_v50  ;;  %v3663_v29 = vsub.f32 %v7500_v10, %v3662_v24  ;;  %v3669_v38 = vsub.f32 %v7517_v60, %v3668_v40  ;;  %v7584_v50 = vsub.f32 %v8106_v37, %v7556_v35 }
 0x717   :  { %3579 = vmatpush.msra.mxu3 %v7227_v0  ;;  %3597 = vmatpush.msrb.mxu0 %v7398_v34  ;;  %v3644_v16 = vand.u32 4294901760, %v7444_v47  ;;  %v3656_v8 = vand.u32 4294901760, %v7472_v28  ;;  %v3651_v53 = vsub.f32 %v7458_v23, %v3650_v41  ;;  %v7540_v22 = vsub.f32 %v2841_v33, %v7506_v44 }
 0x718   :  { %3497 = vmatpush.msra.mxu1 %v7285_v39  ;;  %3553 = vmatpush.msra.mxu2 %v3430_v46  ;;  %v2793_v39 = vsel %vm2791_vm13, %v7305_v58, %v8102_v11  ;;  %v2966_v58 = vperm.slane %v6951_v48, 3  ;;  %v3639_v48 = vsub.f32 %v7431_v6, %v3638_v3  ;;  %v8105_v46 = vld [vmem:[#allocation27_spill] sm:$0xff] }
 0x719   :  { %3581 = vmatpush.msra.mxu3 %v7247_v17  ;;  %3599 = vmatpush.msrb.mxu0 %v7406_v43  ;;  %v2809_v26 = vmul.f32 %v2801_v2, %v2793_v39  ;;  %v3645_v1 = vsub.f32 %v7444_v47, %v3644_v16  ;;  %v7526_v4 = vand.u32 4294901760, %v8105_v46  ;;  %v3657_v14 = vsub.f32 %v7472_v28, %v3656_v8  ;;  %v8108_v39 = vld [vmem:[#allocation30_spill] sm:$0xff] }
 0x71a   :  { %3698 = vmatpush.msrb.mxu2 %v7415_v51  ;;  %3499 = vmatpush.msra.mxu1 %v7227_v0  ;;  %v8103_v0 = vld [vmem:[#allocation24_spill] sm:$0xff]  ;;  %v3652_v54 = vand.u32 4294901760, %v3651_v53  ;;  %v3674_v27 = vand.u32 4294901760, %v7540_v22  ;;  %v7575_v2 = vand.u32 4294901760, %v8107_v56  ;;  %v7580_v33 = vand.u32 4294901760, %v8108_v39  ;;  %v8109_v53 = vld [vmem:[#allocation29_spill] sm:$0xff] }
 0x71b   :  { %3555 = vmatmul.f32.vlgmr.msra.gmra.mxu2 %v7095_v32  ;;  %3583 = vmatpush.msra.mxu3 %v7324_v59  ;;  %v2959_v12 = vsel %vm2955_vm10, %v7342_v5, %v8103_v0  ;;  %v7519_v5 = vand.u32 4294901760, %v2809_v26  ;;  %v3646_v15 = vand.u32 4294901760, %v3645_v1  ;;  %v7553_v30 = vsub.f32 %v8105_v46, %v7526_v4 }
 0x71c   :  { %3601 = vmatpush.msrb.mxu0 %v7417_v63  ;;  %3701 = vmatpush.msrb.mxu2 %v7431_v6  ;;  %v2974_v19 = vmul.f32 %v2966_v58, %v2959_v12  ;;  %v3658_v25 = vand.u32 4294901760, %v3657_v14  ;;  %v3664_v58 = vand.u32 4294901760, %v3663_v29  ;;  %v3675_v0 = vsub.f32 %v7540_v22, %v3674_v27 }
 0x71d   :  { %3501 = vmatpush.msra.mxu1 %v7247_v17  ;;  %3737 = vmatpush.msrb.mxu3 %v7398_v34  ;;  %v7504_v17 = vand.u32 4294901760, %v8104_v21  ;;  %v7549_v18 = vsub.f32 %v2809_v26, %v7519_v5  ;;  %v3888_v26 = vand.u32 4294901760, %v7553_v30  ;;  %v7605_v51 = vand.u32 4294901760, %v7378_v45 }
 0x71e   :  { %3585 = vmatmul.f32.vlgmr.msra.gmra.mxu3 %v7095_v32  ;;  %3603 = vmatpush.msrb.mxu0 %v7425_v20  ;;  %v7542_v9 = vand.u32 4294901760, %v2974_v19  ;;  %v7615_v1 = vsub.f32 %v8108_v39, %v7580_v33  ;;  %v7623_v6 = vand.u32 4294901760, %v8109_v53 }
 0x71f   :  { %3704 = vmatpush.msrb.mxu2 %v7444_v47  ;;  %3503 = vmatpush.msra.mxu1 %v7324_v59  ;;  %v3640_v59 = vand.u32 4294901760, %v3639_v48  ;;  %v7533_v42 = vsub.f32 %v8104_v21, %v7504_v17  ;;  %v3680_v11 = vand.u32 4294901760, %v7549_v18  ;;  %v3670_v48 = vand.u32 4294901760, %v3669_v38 }
 0x720   :  { %3739 = vmatpush.msrb.mxu3 %v7406_v43  ;;  %3507 = vmatmul.f32.vlgmr.msra.gmra.mxu1 %v7165_v62  ;;  %v7567_v55 = vsub.f32 %v2974_v19, %v7542_v9  ;;  %v3889_v19 = vsub.f32 %v7553_v30, %v3888_v26  ;;  %v7639_v29 = vsub.f32 %v7378_v45, %v7605_v51  ;;  %v3912_v38 = vand.u32 4294901760, %v7615_v1 }
 0x721   :  { %3605 = vmatpush.msrb.mxu0 %v7437_v36  ;;  %3635 = vmatpush.msrb.mxu1 %v3634_v61  ;;  %v3882_v31 = vand.u32 4294901760, %v7533_v42  ;;  %v7602_v61 = vsub.f32 %v8107_v56, %v7575_v2  ;;  %v7650_v56 = vsub.f32 %v8109_v53, %v7623_v6 }
 0x722   :  { %3707 = vmatpush.msrb.mxu2 %v7458_v23  ;;  %3741 = vmatpush.msrb.mxu3 %v7417_v63  ;;  %v3894_v21 = vand.u32 4294901760, %v7567_v55  ;;  %v3890_v47 = vand.u32 4294901760, %v3889_v19  ;;  %v3918_v39 = vand.u32 4294901760, %v7639_v29 }
 0x723   :  { %3607 = vmatpush.msrb.mxu0 %v7462_v49  ;;  %3641 = vmatpush.msrb.mxu1 %v3640_v59  ;;  %v3883_v12 = vsub.f32 %v7533_v42, %v3882_v31  ;;  %v3900_v59 = vand.u32 4294901760, %v7584_v50  ;;  %v3906_v14 = vand.u32 4294901760, %v7602_v61 }
 0x724   :  { %3710 = vmatpush.msrb.mxu2 %v7472_v28  ;;  %3743 = vmatpush.msrb.mxu3 %v7425_v20  ;;  %v3924_v28 = vand.u32 4294901760, %v7650_v56 }
 0x725   :  { %3609 = vmatpush.msrb.mxu0 %v7482_v52  ;;  %3647 = vmatpush.msrb.mxu1 %v3646_v15  ;;  %v3884_v46 = vand.u32 4294901760, %v3883_v12  ;;  %v3895_v15 = vsub.f32 %v7567_v55, %v3894_v21  ;;  %v3907_v23 = vsub.f32 %v7602_v61, %v3906_v14 }
 0x726   :  { %3713 = vmatpush.msrb.mxu2 %v7500_v10  ;;  %3745 = vmatpush.msrb.mxu3 %v7437_v36 }
 0x727   :  { %3611 = vmatpush.msrb.mxu0 %v7506_v44  ;;  %3653 = vmatpush.msrb.mxu1 %v3652_v54  ;;  %v8110_v54 = vld [vmem:[#allocation28_spill] sm:$0xff]  ;;  %v3896_v45 = vand.u32 4294901760, %v3895_v15 }
 0x728   :  { %3716 = vmatpush.msrb.mxu2 %v7517_v60  ;;  %3747 = vmatpush.msrb.mxu3 %v7462_v49  ;;  %v7635_v37 = vand.u32 4294901760, %v8110_v54  ;;  %v3925_v60 = vsub.f32 %v7650_v56, %v3924_v28 }
 0x729   :  { %3613 = vmatpush.msrb.mxu0 %v7519_v5  ;;  %3659 = vmatpush.msrb.mxu1 %v3658_v25 }
 0x72a   :  { %3719 = vmatpush.msrb.mxu2 %v7540_v22  ;;  %3619 = vmatmul.f32.vlgmr.msrb.gmra.mxu0 %v7229_v13 }
 0x72b   :  { %3749 = vmatpush.msrb.mxu3 %v7482_v52  ;;  %3771 = vmatpush.msra.mxu0 %v3632_v57  ;;  %v3681_v57 = vsub.f32 %v7549_v18, %v3680_v11 }
 0x72c   :  { %3665 = vmatpush.msrb.mxu1 %v3664_v58  ;;  %3722 = vmatpush.msrb.mxu2 %v7549_v18  ;;  %v8116_v18 = vld [vmem:[#allocation9_spill] sm:$0xff] }
 0x72d   :  { %3751 = vmatpush.msrb.mxu3 %v7506_v44  ;;  %3775 = vmatpush.msra.mxu0 %v3638_v3  ;;  %v3676_v3 = vand.u32 4294901760, %v3675_v0  ;;  %v3682_v25 = vand.u32 4294901760, %v3681_v57  ;;  %v3913_v0 = vsub.f32 %v7615_v1, %v3912_v38 }
 0x72e   :  { %3847 = vmatpush.msra.mxu2 %v7504_v17  ;;  %3671 = vmatpush.msrb.mxu1 %v3670_v48 }
 0x72f   :  { %3725 = vmatmul.f32.vlgmr.msrb.gmra.mxu2 %v7133_v7  ;;  %3753 = vmatpush.msrb.mxu3 %v7519_v5 }
 0x730   :  { %3779 = vmatpush.msra.mxu0 %v3644_v16  ;;  %3849 = vmatpush.msra.mxu2 %v7526_v4  ;;  %v3901_v16 = vsub.f32 %v7584_v50, %v3900_v59 }
 0x731   :  { %3677 = vmatpush.msrb.mxu1 %v3676_v3  ;;  %3885 = vmatpush.msra.mxu3 %v3884_v46  ;;  %v3084_v3 = vpop.permute.xlu0 %3083 }
 0x732   :  { %3757 = vmatmul.f32.vlgmr.msrb.gmra.mxu3 %v7165_v62  ;;  %3783 = vmatpush.msra.mxu0 %v3650_v41  ;;  %v7659_v41 = vsub.f32 %v8110_v54, %v7635_v37  ;;  %v3902_v58 = vand.u32 4294901760, %v3901_v16 }
 0x733   :  { %3851 = vmatpush.msra.mxu2 %v7542_v9  ;;  %3683 = vmatpush.msrb.mxu1 %v3682_v25 }
 0x734   :  { %3891 = vmatpush.msra.mxu3 %v3890_v47  ;;  %3685 = vmatmul.f32.vlgmr.msrb.gmra.mxu1 %v7095_v32  ;;  %v3930_v10 = vand.u32 4294901760, %v7659_v41 }
 0x735   :  { %3787 = vmatpush.msra.mxu0 %v3656_v8  ;;  %3817 = vmatpush.msra.mxu1 %v7398_v34  ;;  %v3908_v34 = vand.u32 4294901760, %v3907_v23  ;;  %v3919_v8 = vsub.f32 %v7639_v29, %v3918_v39 }
 0x736   :  { %3853 = vmatpush.msra.mxu2 %v7556_v35  ;;  %3897 = vmatpush.msra.mxu3 %v3896_v45 }
 0x737   :  { %3791 = vmatpush.msra.mxu0 %v3662_v24  ;;  %3819 = vmatpush.msra.mxu1 %v7406_v43  ;;  %v3914_v43 = vand.u32 4294901760, %v3913_v0  ;;  %v3931_v24 = vsub.f32 %v7659_v41, %v3930_v10 }
 0x738   :  { %3855 = vmatpush.msra.mxu2 %v7575_v2  ;;  %3903 = vmatpush.msra.mxu3 %v3902_v58 }
 0x739   :  { %3795 = vmatpush.msra.mxu0 %v3668_v40  ;;  %3821 = vmatpush.msra.mxu1 %v7417_v63  ;;  %v3920_v63 = vand.u32 4294901760, %v3919_v8  ;;  %v3932_v22 = vand.u32 4294901760, %v3931_v24  ;;  %v8115_v40 = vld [vmem:[#allocation23_spill] sm:$0xff] }
 0x73a   :  { %3857 = vmatpush.msra.mxu2 %v7580_v33  ;;  %3909 = vmatpush.msra.mxu3 %v3908_v34 }
 0x73b   :  { %3799 = vmatpush.msra.mxu0 %v3674_v27  ;;  %3823 = vmatpush.msra.mxu1 %v7425_v20  ;;  %v3926_v20 = vand.u32 4294901760, %v3925_v60  ;;  %v8122_v27 = vld [vmem:[#allocation6_spill] sm:$0xff] }
 0x73c   :  { %3859 = vmatpush.msra.mxu2 %v7605_v51  ;;  %3915 = vmatpush.msra.mxu3 %v3914_v43 }
 0x73d   :  { %3803 = vmatpush.msra.mxu0 %v3680_v11  ;;  %3825 = vmatpush.msra.mxu1 %v7437_v36  ;;  %v4141_v36 = vld [vmem:[%s7862_s14] sm:$0xff]  ;;  %v8125_v11 = vld [vmem:[#allocation22_spill] sm:$0xff] }
 0x73e   :  { %3861 = vmatpush.msra.mxu2 %v7623_v6  ;;  %3805 = vmatmul.f32.vlgmr.msra.gmra.mxu0 %v7095_v32 }
 0x73f   :  { %3921 = vmatpush.msra.mxu3 %v3920_v63  ;;  %3948 = vmatpush.msrb.mxu0 %v7533_v42  ;;  %v8113_v42 = vld [vmem:[#allocation8_spill] sm:$0xff] }
 0x740   :  { %3827 = vmatpush.msra.mxu1 %v7462_v49  ;;  %3863 = vmatpush.msra.mxu2 %v7635_v37  ;;  %v4150_v49 = vsel %vm4148_vm15, %v4141_v36, 0 }
 0x741   :  { %3869 = vmatmul.f32.vlgmr.msra.gmra.mxu2 %v7229_v13  ;;  %3927 = vmatpush.msra.mxu3 %v3926_v20  ;;  %v7715_v13 = vand.u32 4294901760, %v4150_v49 }
 0x742   :  { %3951 = vmatpush.msrb.mxu0 %v7553_v30  ;;  %4021 = vmatpush.msrb.mxu2 %v3882_v31  ;;  %v8117_v30 = vld [vmem:[#allocation19_spill] sm:$0xff] }
 0x743   :  { %3829 = vmatpush.msra.mxu1 %v7482_v52  ;;  %3933 = vmatpush.msra.mxu3 %v3932_v22  ;;  %v7728_v52 = vsub.f32 %v4150_v49, %v7715_v13  ;;  %v8121_v31 = vld [vmem:[#allocation15_spill] sm:$0xff] }
 0x744   :  { %3954 = vmatpush.msrb.mxu0 %v7567_v55  ;;  %4025 = vmatpush.msrb.mxu2 %v3888_v26  ;;  %v8123_v55 = vld [vmem:[#allocation18_spill] sm:$0xff] }
 0x745   :  { %3831 = vmatpush.msra.mxu1 %v7506_v44  ;;  %3935 = vmatmul.f32.vlgmr.msra.gmra.mxu3 %v7095_v32 }
 0x746   :  { %4067 = vmatpush.msrb.mxu3 %v7504_v17  ;;  %3957 = vmatpush.msrb.mxu0 %v7584_v50 }
 0x747   :  { %4029 = vmatpush.msrb.mxu2 %v3894_v21  ;;  %3833 = vmatpush.msra.mxu1 %v7519_v5  ;;  %v8111_v5 = vld [vmem:[#allocation5_spill] sm:$0xff] }
 0x748   :  { %4069 = vmatpush.msrb.mxu3 %v7526_v4  ;;  %3835 = vmatmul.f32.vlgmr.msra.gmra.mxu1 %v7095_v32 }
 0x749   :  { %3960 = vmatpush.msrb.mxu0 %v7602_v61  ;;  %3987 = vmatpush.msrb.mxu1 %v7504_v17  ;;  %v7741_v17 = vand.u32 4294901760, %v7728_v52 }
 0x74a   :  { %4033 = vmatpush.msrb.mxu2 %v3900_v59  ;;  %4071 = vmatpush.msrb.mxu3 %v7542_v9 }
 0x74b   :  { %3963 = vmatpush.msrb.mxu0 %v7615_v1  ;;  %3989 = vmatpush.msrb.mxu1 %v7526_v4  ;;  %v4172_v44 = vsub.f32 %v7728_v52, %v7741_v17 }
 0x74c   :  { %4037 = vmatpush.msrb.mxu2 %v3906_v14  ;;  %4073 = vmatpush.msrb.mxu3 %v7556_v35 }
 0x74d   :  { %3966 = vmatpush.msrb.mxu0 %v7639_v29  ;;  %3991 = vmatpush.msrb.mxu1 %v7542_v9  ;;  %v4173_v4 = vand.u32 4294901760, %v4172_v44  ;;  %v8114_v9 = vld [vmem:[#allocation17_spill] sm:$0xff] }
 0x74e   :  { %4041 = vmatpush.msrb.mxu2 %v3912_v38  ;;  %4075 = vmatpush.msrb.mxu3 %v7575_v2 }
 0x74f   :  { %3969 = vmatpush.msrb.mxu0 %v7650_v56  ;;  %3993 = vmatpush.msrb.mxu1 %v7556_v35  ;;  %v8120_v35 = vld [vmem:[#allocation16_spill] sm:$0xff] }
 0x750   :  { %4045 = vmatpush.msrb.mxu2 %v3918_v39  ;;  %4077 = vmatpush.msrb.mxu3 %v7580_v33 }
 0x751   :  { %3972 = vmatpush.msrb.mxu0 %v7659_v41  ;;  %3995 = vmatpush.msrb.mxu1 %v7575_v2  ;;  %v8124_v2 = vld [vmem:[#allocation13_spill] sm:$0xff] }
 0x752   :  { %4049 = vmatpush.msrb.mxu2 %v3924_v28  ;;  %3975 = vmatmul.f32.vlgmr.msrb.gmra.mxu0 %v7133_v7  ;;  %v8112_v7 = vld [vmem:[#allocation7_spill] sm:$0xff] }
 0x753   :  { %4079 = vmatpush.msrb.mxu3 %v7605_v51  ;;  %3997 = vmatpush.msrb.mxu1 %v7580_v33  ;;  %v8126_v33 = vld [vmem:[#allocation12_spill] sm:$0xff] }
 0x754   :  { %4053 = vmatpush.msrb.mxu2 %v3930_v10  ;;  %4168 = vmatpush.msra.mxu0 %v8111_v5 }
 0x755   :  { %4055 = vmatmul.f32.vlgmr.msrb.gmra.mxu2 %v7095_v32  ;;  %4081 = vmatpush.msrb.mxu3 %v7623_v6 }
 0x756   :  { %3999 = vmatpush.msrb.mxu1 %v7605_v51  ;;  %4221 = vmatpush.msra.mxu2 %v8112_v7 }
 0x757   :  { %4083 = vmatpush.msrb.mxu3 %v7635_v37  ;;  %4270 = vmatpush.msrb.mxu0 %v8113_v42 }
 0x758   :  { %4001 = vmatpush.msrb.mxu1 %v7623_v6  ;;  %4085 = vmatmul.f32.vlgmr.msrb.gmra.mxu3 %v7095_v32  ;;  %v8118_v32 = vld [vmem:[#allocation21_spill] sm:$0xff] }
 0x759   :  { %4244 = vmatpush.msra.mxu3 %v8111_v5  ;;  %4314 = vmatpush.msrb.mxu2 %v8114_v9 }
 0x75a   :  { %4003 = vmatpush.msrb.mxu1 %v7635_v37  ;;  %4174 = vmatmul.f32.vlgmr.msra.gmra.mxu0 %v4173_v4 }
 0x75b   :  { %4007 = vmatmul.f32.vlgmr.msrb.gmra.mxu1 %v7165_v62  ;;  %4344 = vmatpush.msrb.mxu3 %v8115_v40  ;;  %v8119_v62 = vld [vmem:[#allocation11_spill] sm:$0xff] }
 0x75c   :  { %4198 = vmatpush.msra.mxu1 %v8116_v18  ;;  %4367 = vmatpush.msra.mxu0 %v8117_v30 }
 0x75d   :  { %4224 = vmatmul.f32.vlgmr.msra.gmra.mxu2 %v7728_v52 }
 0x75e   :  { %4292 = vmatpush.msrb.mxu1 %v8111_v5  ;;  %4416 = vmatpush.msra.mxu2 %v8118_v32 }
 0x760   :  { %4248 = vmatmul.f32.vlgmr.msra.gmra.mxu3 %v7741_v17 }
 0x761   :  { %4438 = vmatpush.msra.mxu3 %v8114_v9 }
 0x762   :  { %4272 = vmatmul.f32.vlgmr.msrb.gmra.mxu0 %v7715_v13 }
 0x763   :  { %4200 = vmatmul.f32.vlgmr.msra.gmra.mxu1 %v7715_v13  ;;  %4460 = vmatpush.msrb.mxu0 %v8119_v62 }
 0x764   :  { %4390 = vmatpush.msra.mxu1 %v8114_v9 }
 0x765   :  { %4320 = vmatmul.f32.vlgmr.msrb.gmra.mxu2 %v4173_v4 }
 0x766   :  { %4513 = vmatpush.msrb.mxu2 %v8120_v35 }
 0x768   :  { %4346 = vmatmul.f32.vlgmr.msrb.gmra.mxu3 %v7715_v13 }
 0x769   :  { %4536 = vmatpush.msrb.mxu3 %v8119_v62 }
 0x76a   :  { %4370 = vmatmul.f32.vlgmr.msra.gmra.mxu0 %v7728_v52 }
 0x76b   :  { %4294 = vmatmul.f32.vlgmr.msrb.gmra.mxu1 %v7715_v13  ;;  %4562 = vmatpush.msra.mxu0 %v8121_v31 }
 0x76c   :  { %4490 = vmatpush.msrb.mxu1 %v8122_v27 }
 0x76d   :  { %4418 = vmatmul.f32.vlgmr.msra.gmra.mxu2 %v7715_v13  ;;  %v3120_v50 = vpop.f32.mrf.mxu0 }
 0x76e   :  { %4606 = vmatpush.msra.mxu2 %v8123_v55  ;;  %v3121_v37 = vadd.f32 %v3120_v50, %v3084_v3 }
 0x770   :  { %4440 = vmatmul.f32.vlgmr.msra.gmra.mxu3 %v7715_v13 }
 0x771   :  { %4636 = vmatpush.msra.mxu3 %v8124_v2 }
 0x772   :  { %4466 = vmatmul.f32.vlgmr.msrb.gmra.mxu0 %v4173_v4 }
 0x773   :  { %4394 = vmatmul.f32.vlgmr.msra.gmra.mxu1 %v7741_v17  ;;  %4659 = vmatpush.msrb.mxu0 %v8125_v11 }
 0x774   :  { %4584 = vmatpush.msra.mxu1 %v8119_v62 }
 0x775   :  { %4516 = vmatmul.f32.vlgmr.msrb.gmra.mxu2 %v7728_v52  ;;  %v3226_v26 = vpop.f32.mrf.mxu2 }
 0x776   :  { %4708 = vmatpush.msrb.mxu2 %v8126_v33  ;;  %v3258_v48 = vpop.f32.mrf.mxu3 }
 0x777   :  { %v3186_v12 = vpop.f32.mrf.mxu1 }
 0x778   :  { %4540 = vmatmul.f32.vlgmr.msrb.gmra.mxu3 %v7741_v17  ;;  %v3187_v16 = vadd.f32 %v3186_v12, %v3121_v37 }
 0x779   :  { %4730 = vmatpush.msrb.mxu3 %v8123_v55 }
 0x77a   :  { %4564 = vmatmul.f32.vlgmr.msra.gmra.mxu0 %v7715_v13  ;;  %v3227_v39 = vadd.f32 %v3226_v26, %v3187_v16 }
 0x77b   :  { %4492 = vmatmul.f32.vlgmr.msrb.gmra.mxu1 %v7715_v13 }
 0x77c   :  { %4682 = vmatpush.msrb.mxu1 %v8123_v55  ;;  %v3259_v10 = vadd.f32 %v3258_v48, %v3227_v39 }
 0x77d   :  { %4612 = vmatmul.f32.vlgmr.msra.gmra.mxu2 %v4173_v4 }
 0x780   :  { %4638 = vmatmul.f32.vlgmr.msra.gmra.mxu3 %v7715_v13  ;;  %v3306_v21 = vpop.f32.mrf.mxu0 }
 0x781   :  { %v3307_v63 = vadd.f32 %v3306_v21, %v3259_v10 }
 0x782   :  { %4662 = vmatmul.f32.vlgmr.msrb.gmra.mxu0 %v7728_v52 }
 0x783   :  { %4586 = vmatmul.f32.vlgmr.msra.gmra.mxu1 %v7715_v13 }
 0x785   :  { %4710 = vmatmul.f32.vlgmr.msrb.gmra.mxu2 %v7715_v13 }
 0x788   :  { %4732 = vmatmul.f32.vlgmr.msrb.gmra.mxu3 %v7715_v13 }
 0x789   :  { %v3370_v61 = vpop.f32.mrf.mxu2  ;;  %v3336_v51 = vpop.f32.mrf.mxu1 }
 0x78a   :  { %v3371_v15 = vadd.f32 %v3370_v61, %v3084_v3  ;;  %v3337_v49 = vadd.f32 %v3336_v51, %v3307_v63 }
 0x78b   :  { %4686 = vmatmul.f32.vlgmr.msrb.gmra.mxu1 %v7741_v17  ;;  %v3436_v57 = vpop.f32.mrf.mxu3 }
 0x78c   :  { %v3437_v29 = vadd.f32 %v3436_v57, %v3371_v15 }
 0x793   :  { %v3476_v1 = vpop.f32.mrf.mxu0 }
 0x794   :  { %v3477_v38 = vadd.f32 %v3476_v1, %v3437_v29 }
 0x79d   :  { %v3508_v59 = vpop.f32.mrf.mxu1 }
 0x79e   :  { %v3556_v19 = vpop.f32.mrf.mxu2  ;;  %v3509_v23 = vadd.f32 %v3508_v59, %v3477_v38 }
 0x7a0   :  { %v3557_v34 = vadd.f32 %v3556_v19, %v3509_v23  ;;  %v4089_v19 = vld [vmem:[%s7863_s12] sm:$0xff] }
 0x7a1   :  { %v3586_v53 = vpop.f32.mrf.mxu3 }
 0x7a2   :  { %v3587_v24 = vadd.f32 %v3586_v53, %v3557_v34  ;;  %v4146_v34 = vpop.permute.xlu0 %4145 }
 0x7a4   :  { %v4091_v44 = vadd.f32 %v3587_v24, %v3337_v49 }
 0x7a7   :  { %v3620_v6 = vpop.f32.mrf.mxu0 }
 0x7a8   :  { %v3621_v25 = vadd.f32 %v3620_v6, %v3084_v3 }
 0x7b1   :  { %v3686_v14 = vpop.f32.mrf.mxu1 }
 0x7b2   :  { %v3726_v46 = vpop.f32.mrf.mxu2  ;;  %v3687_v56 = vadd.f32 %v3686_v14, %v3621_v25 }
 0x7b4   :  { %v3727_v58 = vadd.f32 %v3726_v46, %v3687_v56 }
 0x7b5   :  { %v3758_v54 = vpop.f32.mrf.mxu3 }
 0x7b6   :  { %v3759_v43 = vadd.f32 %v3758_v54, %v3727_v58 }
 0x7bb   :  { %v3806_v47 = vpop.f32.mrf.mxu0 }
 0x7bc   :  { %v3807_v20 = vadd.f32 %v3806_v47, %v3759_v43 }
 0x7c4   :  { %v3870_v45 = vpop.f32.mrf.mxu2 }
 0x7c5   :  { %v3836_v41 = vpop.f32.mrf.mxu1  ;;  %v3871_v0 = vadd.f32 %v3870_v45, %v3084_v3  ;;  %v4090_v3 = vld [vmem:[%s7864_s13] sm:$0xff] }
 0x7c6   :  { %v3837_v13 = vadd.f32 %v3836_v41, %v3807_v20 }
 0x7c8   :  { %v3936_v28 = vpop.f32.mrf.mxu3  ;;  %v4092_v7 = vadd.f32 %v4091_v44, %v3837_v13 }
 0x7c9   :  { %v3937_v60 = vadd.f32 %v3936_v28, %v3871_v0 }
 0x7cf   :  { %v3976_v8 = vpop.f32.mrf.mxu0 }
 0x7d0   :  { %v3977_v36 = vadd.f32 %v3976_v8, %v3937_v60 }
 0x7d7   :  { %v4175_v46 = vpop.f32.mrf.mxu0 }
 0x7d8   :  { %v4008_v22 = vpop.f32.mrf.mxu1  ;;  %v4056_v17 = vpop.f32.mrf.mxu2  ;;  %v4176_v63 = vadd.f32 %v4175_v46, %v4146_v34 }
 0x7d9   :  { %v4009_v52 = vadd.f32 %v4008_v22, %v3977_v36 }
 0x7db   :  { %v4057_v5 = vadd.f32 %v4056_v17, %v4009_v52  ;;  %v4086_v4 = vpop.f32.mrf.mxu3 }
 0x7dd   :  { %v4087_v42 = vadd.f32 %v4086_v4, %v4057_v5 }
 0x7df   :  { %v4093_v9 = vadd.f32 %v4092_v7, %v4087_v42  ;;  %v4273_v37 = vpop.f32.mrf.mxu0 }
 0x7e0   :  { %v4225_v15 = vpop.f32.mrf.mxu2  ;;  %v4201_v14 = vpop.f32.mrf.mxu1 }
 0x7e1   :  { %4094 = vadd.xlane.f32.xlu1 %v4093_v9  ;;  %v4202_v20 = vadd.f32 %v4201_v14, %v4176_v63 }
 0x7e3   :  { %v4249_v54 = vpop.f32.mrf.mxu3  ;;  %v4226_v52 = vadd.f32 %v4225_v15, %v4202_v20 }
 0x7e5   :  { %v4250_v7 = vadd.f32 %v4249_v54, %v4226_v52 }
 0x7e7   :  { %v4371_v16 = vpop.f32.mrf.mxu0 }
 0x7e8   :  { %v4321_v29 = vpop.f32.mrf.mxu2  ;;  %v4295_v25 = vpop.f32.mrf.mxu1 }
 0x7e9   :  { %v4322_v10 = vadd.f32 %v4321_v29, %v4146_v34 }
 0x7eb   :  { %v4347_v47 = vpop.f32.mrf.mxu3 }
 0x7ec   :  { %v4348_v36 = vadd.f32 %v4347_v47, %v4322_v10 }
 0x7ee   :  { %v4372_v17 = vadd.f32 %v4371_v16, %v4348_v36 }
 0x7ef   :  { %v4467_v23 = vpop.f32.mrf.mxu0 }
 0x7f0   :  { %v4419_v38 = vpop.f32.mrf.mxu2  ;;  %v4395_v56 = vpop.f32.mrf.mxu1 }
 0x7f3   :  { %v4441_v45 = vpop.f32.mrf.mxu3 }
 0x7f7   :  { %v4565_v0 = vpop.f32.mrf.mxu0 }
 0x7f8   :  { %v4517_v41 = vpop.f32.mrf.mxu2  ;;  %v4493_v39 = vpop.f32.mrf.mxu1 }
 0x7fb   :  { %v4541_v58 = vpop.f32.mrf.mxu3 }
 0x800   :  { %v4613_v28 = vpop.f32.mrf.mxu2  ;;  %v4587_v8 = vpop.f32.mrf.mxu1 }
 0x801   :  { %v4614_v43 = vadd.f32 %v4613_v28, %v4146_v34 }
 0x803   :  { %v4639_v60 = vpop.f32.mrf.mxu3 }
 0x808   :  { %v4687_v4 = vpop.f32.mrf.mxu1 }
 0x854   :  { %v4095_v40 = vpop.xlane.xlu1 %4094 }
 0x855   :  { %v4096_v18 = vmul.f32 0.001953125, %v4095_v40 }
 0x857   :  { %v7811_v30 = vsub.f32 %v3337_v49, %v4096_v18  ;;  %v7813_v32 = vsub.f32 %v3587_v24, %v4096_v18  ;;  %v7815_v62 = vsub.f32 %v3837_v13, %v4096_v18  ;;  %v7817_v35 = vsub.f32 %v4087_v42, %v4096_v18  ;;  %v4663_v13 = vpop.f32.mrf.mxu0 }
 0x858   :  { %v4468_v24 = vadd.f32 %v4467_v23, %v4146_v34  ;;  %v4640_v49 = vadd.f32 %v4639_v60, %v4614_v43  ;;  %v4396_v42 = vadd.f32 %v4395_v56, %v4372_v17 }
 0x859   :  { %v4101_v31 = vmul.f32 %v7811_v30, %v7811_v30  ;;  %v4102_v27 = vmul.f32 %v7813_v32, %v7813_v32  ;;  %v4103_v55 = vmul.f32 %v7815_v62, %v7815_v62  ;;  %v4104_v11 = vmul.f32 %v7817_v35, %v7817_v35 }
 0x85a   :  { %v4494_v22 = vadd.f32 %v4493_v39, %v4468_v24  ;;  %v4664_v5 = vadd.f32 %v4663_v13, %v4640_v49 }
 0x85b   :  { %v4105_v2 = vadd.f32 %v4102_v27, %v4101_v31  ;;  %v4711_v31 = vpop.f32.mrf.mxu2  ;;  %v4274_v27 = vadd.f32 %v4273_v37, %v4250_v7 }
 0x85c   :  { %v4518_v44 = vadd.f32 %v4517_v41, %v4494_v22  ;;  %v4688_v40 = vadd.f32 %v4687_v4, %v4664_v5 }
 0x85d   :  { %v4106_v33 = vadd.f32 %v4105_v2, %v4103_v55  ;;  %v4420_v55 = vadd.f32 %v4419_v38, %v4396_v42 }
 0x85e   :  { %v4542_v9 = vadd.f32 %v4541_v58, %v4518_v44 }
 0x85f   :  { %v4107_v50 = vadd.f32 %v4106_v33, %v4104_v11  ;;  %v4712_v11 = vadd.f32 %v4711_v31, %v4688_v40  ;;  %v4733_v33 = vpop.f32.mrf.mxu3 }
 0x860   :  { %v4566_v2 = vadd.f32 %v4565_v0, %v4542_v9 }
 0x861   :  { %4108 = vadd.xlane.f32.xlu2 %v4107_v50 }
 0x8d4   :  { %v4109_v26 = vpop.xlane.xlu2 %4108 }
 0x8d5   :  { %v4110_v12 = vmul.f32 0.001953125, %v4109_v26 }
 0x8d7   :  { %v4111_v48 = vadd.f32 1e-05, %v4110_v12 }
 0x8d9   :  { %4806 = vrsqrt.f32 %v4111_v48  ;;  %vm4118_vm1 = vweird.f32 %v4111_v48 }
 0x8df   :  { %v4807_v21 = vpop.eup %4806 }
 0x8e0   :  { %v4113_v61 = vmul.f32 %v4807_v21, %v4111_v48  ;;  %vm4119_vm0 = vweird.f32 %v4807_v21 }
 0x8e1   :  { %vm4120_vm2 = vmor %vm4118_vm1, %vm4119_vm0 }
 0x8e2   :  { %v4114_v51 = vmul.f32 %v4807_v21, %v4113_v61  ;;  %v4442_v61 = vadd.f32 %v4441_v45, %v4420_v55 }
 0x8e4   :  { %v4115_v57 = vmul.f32 0.5, %v4114_v51  ;;  %v4588_v51 = vadd.f32 %v4587_v8, %v4566_v2 }
 0x8e6   :  { %v4116_v1 = vsub.f32 1.5, %v4115_v57  ;;  %v4734_v57 = vadd.f32 %v4733_v33, %v4712_v11 }
 0x8e8   :  { %v4117_v59 = vmul.f32 %v4807_v21, %v4116_v1 }
 0x8ea   :  { %v4121_v53 = vsel %vm4120_vm2, %v4807_v21, %v4117_v59  ;;  %v4296_v21 = vadd.f32 %v4295_v25, %v4274_v27 }
 0x8eb   :  { %v4122_v6 = vmul.f32 %v4121_v53, %v4089_v19 }
 0x8ed   :  { %4125 = vperm.xlu0 %4801, %v4122_v6  }
 0x8f5   :  { %4134 = vperm.xlu0 %4801, %v4090_v3  }
 0x95f   :  { %v4126_v18 = vpop.permute.xlu0 %4125 }
 0x960   :  { %v4128_v50 = vmul.f32 %v4126_v18, %v7811_v30  ;;  %v4129_v26 = vmul.f32 %v4126_v18, %v7813_v32  ;;  %v4130_v12 = vmul.f32 %v4126_v18, %v7815_v62  ;;  %v4131_v48 = vmul.f32 %v4126_v18, %v7817_v35 }
 0x967   :  { %v4135_v1 = vpop.permute.xlu0 %4134 }
 0x968   :  { %v4137_v19 = vadd.f32 %v4135_v1, %v4128_v50  ;;  %v4138_v59 = vadd.f32 %v4135_v1, %v4129_v26  ;;  %v4139_v53 = vadd.f32 %v4135_v1, %v4130_v12  ;;  %v4140_v6 = vadd.f32 %v4135_v1, %v4131_v48 }
 0x96a   :  { %v4736_v3 = vadd.f32 %v4296_v21, %v4137_v19  ;;  %v4737_v46 = vadd.f32 %v4442_v61, %v4138_v59  ;;  %v4738_v15 = vadd.f32 %v4588_v51, %v4139_v53  ;;  %v4739_v14 = vadd.f32 %v4734_v57, %v4140_v6 }
 0x96c   :  { %v4740_v30 = vmax.f32 %v4736_v3, 0.0  ;;  %v4741_v54 = vmax.f32 %v4737_v46, 0.0  ;;  %v4742_v32 = vmax.f32 %v4738_v15, 0.0  ;;  %v4743_v37 = vmax.f32 %v4739_v14, 0.0 }
 0x96e   :  { %4744 = vst [vmem:[%s7865_s16] sm:$0xff] %v4740_v30 }
 0x96f   :  { %4745 = vst [vmem:[%s7865_s16 + $0x8] sm:$0xff] %v4741_v54 }
 0x970   :  { %4746 = vst [vmem:[%s7865_s16 + $0x10] sm:$0xff] %v4742_v32 }
 0x971   :  { %4747 = vst [vmem:[%s7865_s16 + $0x18] sm:$0xff] %v4743_v37 }

</bundles_post_ra>
